<compile_context>
chip_gen: v7x
topology: tpu7x:2x2x1
jax: 0.10.0
libtpu: 0.0.40
codegen_flags: <defaults>
</compile_context>

<pallas_src>
import jax
import jax.numpy as jnp
from jax.experimental import pallas as pl
from jax.experimental.pallas import tpu as pltpu


def node_model_kernel(x_ref, row_ref, col_ref, ea_ref, batch_ref, uwb_ref,
                      w1x_ref, w1e_ref, b1_ref, w2x_ref, w2h_ref,
                      out_ref, xw1_ref, acc_ref):
    f32 = jnp.float32
    k = pl.program_id(0)
    TE = ea_ref.shape[0]            # edge tile
    N = x_ref.shape[0]
    B = uwb_ref.shape[0]
    OUT = out_ref.shape[1]

    @pl.when(k == 0)
    def _init():
        # x @ W1x done once per call, not per edge tile.  b1 folded in here:
        # every (valid) edge has exactly one source node, so the one-hot
        # gather re-adds b1 exactly once per edge.
        xw1_ref[...] = (jnp.dot(x_ref[...], w1x_ref[...],
                                preferred_element_type=f32) + b1_ref[...])
        acc_ref[...] = jnp.zeros_like(acc_ref)

    row = row_ref[...]              # (TE, 1) int32, source node of each edge
    col = col_ref[...]              # (1, TE) int32, target node of each edge

    # ---- gather x[row] in the already-projected H space --------------------
    #   G[e, n] = (row[e] == n);  h = G @ (x @ W1x + b1) + ea @ W1e
    gather_oh = (jax.lax.broadcasted_iota(jnp.int32, (TE, N), 1)
                 == row).astype(f32)                               # (TE, N)
    h = (jnp.dot(gather_oh, xw1_ref[...], preferred_element_type=f32)
         + jnp.dot(ea_ref[...], w1e_ref[...], preferred_element_type=f32))

    # ---- project by W2h BEFORE the scatter (scatter-mean is linear) --------
    hp = jnp.dot(h, w2h_ref[...], preferred_element_type=f32)      # (TE, OUT)
    # ones column -> same matmul also produces per-node edge counts
    hp1 = jnp.concatenate([hp, jnp.ones((TE, 1), f32)], axis=1)    # (TE, OUT+1)

    # ---- scatter-sum over target nodes, accumulated across edge tiles ------
    #   S[n, e] = (col[e] == n)   (padded edges have col == -1 -> no match)
    scatter_oh = (jax.lax.broadcasted_iota(jnp.int32, (N, TE), 0)
                  == col).astype(f32)                              # (N, TE)
    acc_ref[...] += jnp.dot(scatter_oh, hp1, preferred_element_type=f32)

    @pl.when(k == pl.num_programs(0) - 1)
    def _finalize():
        sums = acc_ref[:, :OUT]                                    # (N, OUT)
        counts = acc_ref[:, OUT:OUT + 1]                           # (N, 1)
        inv = pl.reciprocal(jnp.maximum(counts, 1.0), approx=True)
        mean_w2h = sums * inv            # == scatter_mean(h, col) @ W2h
        # u[batch] gather folded onto the precomputed (B, OUT) slab
        # uwb = u @ W2u + b2  (one-hot rows sum to 1 -> b2 added exactly once)
        u_oh = (jax.lax.broadcasted_iota(jnp.int32, (N, B), 1)
                == batch_ref[...]).astype(f32)                     # (N, B)
        out = (jnp.dot(x_ref[...], w2x_ref[...], preferred_element_type=f32)
               + mean_w2h
               + jnp.dot(u_oh, uwb_ref[...], preferred_element_type=f32))
        out_ref[...] = out.astype(out_ref.dtype)


def node_model_forward(x, edge_index, edge_attr, u, batch, params, *,
                       edge_tile=128):
    """x:(N,Fx) f32, edge_index:(2,E) int, edge_attr:(E,Fe) f32,
    u:(B,Fu) f32, batch:(N,) int."""
    w1x, w1e, b1, w2x, w2h, w2u, b2 = params
    N, Fx = x.shape
    E, Fe = edge_attr.shape
    B, _ = u.shape
    H = w1x.shape[1]
    OUT = w2x.shape[1]

    # Pad the edge dimension to a multiple of the edge tile.  Padded edges get
    # col = -1 so they never match any node (zero scatter contribution) and
    # row = 0 (valid but dropped by the scatter).
    n_tiles = pl.cdiv(E, edge_tile)
    E_pad = n_tiles * edge_tile
    pad = E_pad - E
    row = jnp.pad(edge_index[0].astype(jnp.int32), (0, pad),
                  constant_values=0).reshape(E_pad, 1)
    col = jnp.pad(edge_index[1].astype(jnp.int32), (0, pad),
                  constant_values=-1).reshape(1, E_pad)
    ea = jnp.pad(edge_attr, ((0, pad), (0, 0)))
    batch2 = batch.astype(jnp.int32).reshape(N, 1)

    # Fold the tiny u-path matmul and b2 into one (B, OUT) slab in plain XLA.
    uwb = jnp.dot(u, w2u) + b2                                     # (B, OUT)

    full2 = lambda s: pl.BlockSpec(s, lambda k: (0, 0))
    grid_spec = pltpu.PrefetchScalarGridSpec(
        num_scalar_prefetch=0,
        grid=(n_tiles,),
        in_specs=[
            full2((N, Fx)),                                        # x
            pl.BlockSpec((edge_tile, 1), lambda k: (k, 0)),        # row
            pl.BlockSpec((1, edge_tile), lambda k: (0, k)),        # col
            pl.BlockSpec((edge_tile, Fe), lambda k: (k, 0)),       # edge_attr
            full2((N, 1)),                                         # batch
            full2((B, OUT)),                                       # uwb
            full2((Fx, H)),                                        # w1x
            full2((Fe, H)),                                        # w1e
            full2((1, H)),                                         # b1
            full2((Fx, OUT)),                                      # w2x
            full2((H, OUT)),                                       # w2h
        ],
        out_specs=pl.BlockSpec((N, OUT), lambda k: (0, 0)),
        scratch_shapes=[
            pltpu.VMEM((N, H), jnp.float32),        # x @ W1x + b1, computed once
            pltpu.VMEM((N, OUT + 1), jnp.float32),  # [scatter sums | counts]
        ],
    )
    out = pl.pallas_call(
        node_model_kernel,
        out_shape=jax.ShapeDtypeStruct((N, OUT), jnp.float32),
        grid_spec=grid_spec,
        compiler_params=pltpu.CompilerParams(
            dimension_semantics=("arbitrary",)),   # edge axis is a reduction
    )(x, row, col, ea, batch2, uwb, w1x, w1e, b1, w2x, w2h)
    return out


def node_model_ref(x, edge_index, edge_attr, u, batch, params):
    """Pure-JAX reference mirroring the PyTorch forward."""
    w1x, w1e, b1, w2x, w2h, w2u, b2 = params
    row, col = edge_index
    W1 = jnp.concatenate([w1x, w1e], axis=0)          # (Fx+Fe, H)
    W2 = jnp.concatenate([w2x, w2h, w2u], axis=0)     # (Fx+H+Fu, 4)
    h = jnp.concatenate([x[row], edge_attr], axis=1) @ W1 + b1[0]
    N = x.shape[0]
    sums = jnp.zeros((N, h.shape[1]), jnp.float32).at[col].add(h)
    counts = jnp.zeros((N,), jnp.float32).at[col].add(1.0)
    mean = sums / jnp.maximum(counts, 1.0)[:, None]
    out = jnp.concatenate([x, mean, u[batch]], axis=1) @ W2 + b2[0]
    return out


if __name__ == "__main__":
    # Small shapes consistent with the module: node_mlp_1 in = Fx + Fe = 200,
    # hidden H = 128, node_mlp_2 out = 4, node_mlp_2 in = Fx + H + Fu.
    # E = 200 exercises 2 edge tiles (padded to 256) -> accumulation path.
    N, E, B = 200, 200, 2
    Fx, Fe, Fu, H, OUT = 192, 8, 8, 128, 4

    key = jax.random.PRNGKey(0)
    ks = jax.random.split(key, 10)

    x = jax.random.normal(ks[0], (N, Fx), jnp.float32)
    edge_index = jax.random.randint(ks[1], (2, E), 0, N, jnp.int32)
    edge_attr = jax.random.normal(ks[2], (E, Fe), jnp.float32)
    u = jax.random.normal(ks[3], (B, Fu), jnp.float32)
    batch = jax.random.randint(ks[4], (N,), 0, B, jnp.int32)

    # Deterministic parameter init (PyTorch Linear default: U(-1/sqrt(in), 1/sqrt(in)))
    bnd1 = 1.0 / jnp.sqrt(float(Fx + Fe))
    bnd2 = 1.0 / jnp.sqrt(float(Fx + H + Fu))
    W1 = jax.random.uniform(ks[5], (Fx + Fe, H), jnp.float32, -bnd1, bnd1)
    b1 = jax.random.uniform(ks[6], (1, H), jnp.float32, -bnd1, bnd1)
    W2 = jax.random.uniform(ks[7], (Fx + H + Fu, OUT), jnp.float32, -bnd2, bnd2)
    b2 = jax.random.uniform(ks[8], (1, OUT), jnp.float32, -bnd2, bnd2)

    params = (W1[:Fx], W1[Fx:], b1,                      # node_mlp_1 split over the concat
              W2[:Fx], W2[Fx:Fx + H], W2[Fx + H:], b2)   # node_mlp_2 split

    out = node_model_forward(x, edge_index, edge_attr, u, batch, params)
    out = jax.block_until_ready(out)

    ref = node_model_ref(x, edge_index, edge_attr, u, batch, params)
    assert out.shape == (N, OUT)
    err = jnp.max(jnp.abs(out - ref))
    # Tolerance 1e-3: the only approximate step is pl.reciprocal(approx=True)
    # on the (N,1) count vector; everything else is exact one-hot algebra.
    assert jnp.allclose(out, ref, atol=1e-3, rtol=1e-3), f"max abs err {err}"
    print("KERNEL_OK")
</pallas_src>

<mosaic_0001>
module attributes {stable_mosaic.version = 11 : i64} {
  func.func @node_model_kernel(%arg0: i32, %arg1: memref<200x192xf32, #tpu.memory_space<vmem>>, %arg2: memref<128x1xi32, #tpu.memory_space<vmem>>, %arg3: memref<1x128xi32, #tpu.memory_space<vmem>>, %arg4: memref<128x8xf32, #tpu.memory_space<vmem>>, %arg5: memref<200x1xi32, #tpu.memory_space<vmem>>, %arg6: memref<2x4xf32, #tpu.memory_space<vmem>>, %arg7: memref<192x128xf32, #tpu.memory_space<vmem>>, %arg8: memref<8x128xf32, #tpu.memory_space<vmem>>, %arg9: memref<1x128xf32, #tpu.memory_space<vmem>>, %arg10: memref<192x4xf32, #tpu.memory_space<vmem>>, %arg11: memref<128x4xf32, #tpu.memory_space<vmem>>, %arg12: memref<200x4xf32, #tpu.memory_space<vmem>>, %arg13: memref<200x128xf32, #tpu.memory_space<vmem>>, %arg14: memref<200x5xf32, #tpu.memory_space<vmem>>) attributes {dimension_semantics = [#tpu.dimension_semantics<arbitrary>], iteration_bounds = array<i64: 2>, scalar_prefetch = 0 : i64, scratch_operands = 2 : i64, tpu.core_type = #tpu.core_type<tc>, window_params = [{pipeline_mode = #tpu.pipeline_mode<synchronous>, transform_indices = @transform_0, window_bounds = array<i64: 200, 192>}, {transform_indices = @transform_1, window_bounds = array<i64: 128, 1>}, {transform_indices = @transform_2, window_bounds = array<i64: 1, 128>}, {transform_indices = @transform_3, window_bounds = array<i64: 128, 8>}, {pipeline_mode = #tpu.pipeline_mode<synchronous>, transform_indices = @transform_4, window_bounds = array<i64: 200, 1>}, {pipeline_mode = #tpu.pipeline_mode<synchronous>, transform_indices = @transform_5, window_bounds = array<i64: 2, 4>}, {pipeline_mode = #tpu.pipeline_mode<synchronous>, transform_indices = @transform_6, window_bounds = array<i64: 192, 128>}, {pipeline_mode = #tpu.pipeline_mode<synchronous>, transform_indices = @transform_7, window_bounds = array<i64: 8, 128>}, {pipeline_mode = #tpu.pipeline_mode<synchronous>, transform_indices = @transform_8, window_bounds = array<i64: 1, 128>}, {pipeline_mode = #tpu.pipeline_mode<synchronous>, transform_indices = @transform_9, window_bounds = array<i64: 192, 4>}, {pipeline_mode = #tpu.pipeline_mode<synchronous>, transform_indices = @transform_10, window_bounds = array<i64: 128, 4>}, {pipeline_mode = #tpu.pipeline_mode<synchronous>, transform_indices = @transform_11, window_bounds = array<i64: 200, 4>}]} {
    %c0_i32 = arith.constant 0 : i32
    %0 = arith.cmpi eq, %arg0, %c0_i32 : i32
    %1 = arith.extui %0 : i1 to i32
    %c0_i32_0 = arith.constant 0 : i32
    %2 = arith.cmpi ne, %1, %c0_i32_0 : i32
    scf.if %2 {
      %c0_21 = arith.constant 0 : index
      %c0_22 = arith.constant 0 : index
      %32 = vector.load %arg1[%c0_21, %c0_22] : memref<200x192xf32, #tpu.memory_space<vmem>>, vector<200x192xf32>
      %c0_23 = arith.constant 0 : index
      %c0_24 = arith.constant 0 : index
      %33 = vector.load %arg7[%c0_23, %c0_24] : memref<192x128xf32, #tpu.memory_space<vmem>>, vector<192x128xf32>
      %cst_25 = arith.constant dense<0.000000e+00> : vector<200x128xf32>
      %34 = tpu.matmul %32, %33, %cst_25 {dimension_numbers = #tpu.dot_dimension_numbers<[1], [0], [0], [1], [0, 0, 1, 1], [], []>} : vector<200x192xf32>, vector<192x128xf32>, vector<200x128xf32> -> vector<200x128xf32>
      %c0_26 = arith.constant 0 : index
      %c0_27 = arith.constant 0 : index
      %35 = vector.load %arg9[%c0_26, %c0_27] : memref<1x128xf32, #tpu.memory_space<vmem>>, vector<1x128xf32>
      %36 = vector.broadcast %35 : vector<1x128xf32> to vector<200x128xf32>
      %37 = arith.addf %34, %36 : vector<200x128xf32>
      %c0_28 = arith.constant 0 : index
      %c0_29 = arith.constant 0 : index
      %38 = vector.load %arg13[%c0_28, %c0_29] : memref<200x128xf32, #tpu.memory_space<vmem>>, vector<200x128xf32>
      tpu.vector_store %arg13[%c0_28, %c0_29], %37 {strides = array<i32>} : memref<200x128xf32, #tpu.memory_space<vmem>>, vector<200x128xf32>,
      %cst_30 = arith.constant 0.000000e+00 : f32
      %39 = vector.broadcast %cst_30 : f32 to vector<200x5xf32>
      %c0_31 = arith.constant 0 : index
      %c0_32 = arith.constant 0 : index
      %40 = vector.load %arg14[%c0_31, %c0_32] : memref<200x5xf32, #tpu.memory_space<vmem>>, vector<200x5xf32>
      tpu.vector_store %arg14[%c0_31, %c0_32], %39 {strides = array<i32>} : memref<200x5xf32, #tpu.memory_space<vmem>>, vector<200x5xf32>,
    } else {
    }
    %c0 = arith.constant 0 : index
    %c0_1 = arith.constant 0 : index
    %3 = vector.load %arg2[%c0, %c0_1] : memref<128x1xi32, #tpu.memory_space<vmem>>, vector<128x1xi32>
    %c0_2 = arith.constant 0 : index
    %c0_3 = arith.constant 0 : index
    %4 = vector.load %arg3[%c0_2, %c0_3] : memref<1x128xi32, #tpu.memory_space<vmem>>, vector<1x128xi32>
    %5 = tpu.iota {dimensions = array<i32: 1>} : vector<128x200xi32>
    %6 = vector.broadcast %3 : vector<128x1xi32> to vector<128x200xi32>
    %7 = arith.cmpi eq, %5, %6 : vector<128x200xi32>
    %8 = arith.extui %7 : vector<128x200xi1> to vector<128x200xi32>
    %9 = arith.sitofp %8 : vector<128x200xi32> to vector<128x200xf32>
    %c0_4 = arith.constant 0 : index
    %c0_5 = arith.constant 0 : index
    %10 = vector.load %arg13[%c0_4, %c0_5] : memref<200x128xf32, #tpu.memory_space<vmem>>, vector<200x128xf32>
    %cst = arith.constant dense<0.000000e+00> : vector<128x128xf32>
    %11 = tpu.matmul %9, %10, %cst {dimension_numbers = #tpu.dot_dimension_numbers<[1], [0], [0], [1], [0, 0, 1, 1], [], []>} : vector<128x200xf32>, vector<200x128xf32>, vector<128x128xf32> -> vector<128x128xf32>
    %c0_6 = arith.constant 0 : index
    %c0_7 = arith.constant 0 : index
    %12 = vector.load %arg4[%c0_6, %c0_7] : memref<128x8xf32, #tpu.memory_space<vmem>>, vector<128x8xf32>
    %c0_8 = arith.constant 0 : index
    %c0_9 = arith.constant 0 : index
    %13 = vector.load %arg8[%c0_8, %c0_9] : memref<8x128xf32, #tpu.memory_space<vmem>>, vector<8x128xf32>
    %cst_10 = arith.constant dense<0.000000e+00> : vector<128x128xf32>
    %14 = tpu.matmul %12, %13, %cst_10 {dimension_numbers = #tpu.dot_dimension_numbers<[1], [0], [0], [1], [0, 0, 1, 1], [], []>} : vector<128x8xf32>, vector<8x128xf32>, vector<128x128xf32> -> vector<128x128xf32>
    %15 = arith.addf %11, %14 : vector<128x128xf32>
    %c0_11 = arith.constant 0 : index
    %c0_12 = arith.constant 0 : index
    %16 = vector.load %arg11[%c0_11, %c0_12] : memref<128x4xf32, #tpu.memory_space<vmem>>, vector<128x4xf32>
    %cst_13 = arith.constant dense<0.000000e+00> : vector<128x4xf32>
    %17 = tpu.matmul %15, %16, %cst_13 {dimension_numbers = #tpu.dot_dimension_numbers<[1], [0], [0], [1], [0, 0, 1, 1], [], []>} : vector<128x128xf32>, vector<128x4xf32>, vector<128x4xf32> -> vector<128x4xf32>
    %cst_14 = arith.constant 1.000000e+00 : f32
    %18 = vector.broadcast %cst_14 : f32 to vector<128x1xf32>
    %19 = tpu.concatenate %17, %18 in 1 : vector<128x4xf32>, vector<128x1xf32> -> vector<128x5xf32>
    %20 = tpu.iota {dimensions = array<i32: 0>} : vector<200x128xi32>
    %21 = vector.broadcast %4 : vector<1x128xi32> to vector<200x128xi32>
    %22 = arith.cmpi eq, %20, %21 : vector<200x128xi32>
    %23 = arith.extui %22 : vector<200x128xi1> to vector<200x128xi32>
    %24 = arith.sitofp %23 : vector<200x128xi32> to vector<200x128xf32>
    %c0_15 = arith.constant 0 : index
    %c0_16 = arith.constant 0 : index
    %25 = vector.load %arg14[%c0_15, %c0_16] : memref<200x5xf32, #tpu.memory_space<vmem>>, vector<200x5xf32>
    %cst_17 = arith.constant dense<0.000000e+00> : vector<200x5xf32>
    %26 = tpu.matmul %24, %19, %cst_17 {dimension_numbers = #tpu.dot_dimension_numbers<[1], [0], [0], [1], [0, 0, 1, 1], [], []>} : vector<200x128xf32>, vector<128x5xf32>, vector<200x5xf32> -> vector<200x5xf32>
    %27 = arith.addf %25, %26 : vector<200x5xf32>
    %c0_18 = arith.constant 0 : index
    %c0_19 = arith.constant 0 : index
    %28 = vector.load %arg14[%c0_18, %c0_19] : memref<200x5xf32, #tpu.memory_space<vmem>>, vector<200x5xf32>
    tpu.vector_store %arg14[%c0_18, %c0_19], %27 {strides = array<i32>} : memref<200x5xf32, #tpu.memory_space<vmem>>, vector<200x5xf32>,
    %c1_i32 = arith.constant 1 : i32
    %29 = arith.cmpi eq, %arg0, %c1_i32 : i32
    %30 = arith.extui %29 : i1 to i32
    %c0_i32_20 = arith.constant 0 : i32
    %31 = arith.cmpi ne, %30, %c0_i32_20 : i32
    scf.if %31 {
      %c0_21 = arith.constant 0 : index
      %c0_22 = arith.constant 0 : index
      %32 = vector.load %arg14[%c0_21, %c0_22] : memref<200x5xf32, #tpu.memory_space<vmem>>, vector<200x4xf32>
      %c0_23 = arith.constant 0 : index
      %c4 = arith.constant 4 : index
      %33 = vector.load %arg14[%c0_23, %c4] : memref<200x5xf32, #tpu.memory_space<vmem>>, vector<200x1xf32>
      %cst_24 = arith.constant 1.000000e+00 : f32
      %34 = vector.broadcast %cst_24 : f32 to vector<200x1xf32>
      %35 = arith.maximumf %33, %34 : vector<200x1xf32>
      %36 = tpu.reciprocal %35 {approx = true} : vector<200x1xf32> -> vector<200x1xf32>
      %37 = vector.broadcast %36 : vector<200x1xf32> to vector<200x4xf32>
      %38 = arith.mulf %32, %37 : vector<200x4xf32>
      %39 = tpu.iota {dimensions = array<i32: 1>} : vector<200x2xi32>
      %c0_25 = arith.constant 0 : index
      %c0_26 = arith.constant 0 : index
      %40 = vector.load %arg5[%c0_25, %c0_26] : memref<200x1xi32, #tpu.memory_space<vmem>>, vector<200x1xi32>
      %41 = vector.broadcast %40 : vector<200x1xi32> to vector<200x2xi32>
      %42 = arith.cmpi eq, %39, %41 : vector<200x2xi32>
      %43 = arith.extui %42 : vector<200x2xi1> to vector<200x2xi32>
      %44 = arith.sitofp %43 : vector<200x2xi32> to vector<200x2xf32>
      %c0_27 = arith.constant 0 : index
      %c0_28 = arith.constant 0 : index
      %45 = vector.load %arg1[%c0_27, %c0_28] : memref<200x192xf32, #tpu.memory_space<vmem>>, vector<200x192xf32>
      %c0_29 = arith.constant 0 : index
      %c0_30 = arith.constant 0 : index
      %46 = vector.load %arg10[%c0_29, %c0_30] : memref<192x4xf32, #tpu.memory_space<vmem>>, vector<192x4xf32>
      %cst_31 = arith.constant dense<0.000000e+00> : vector<200x4xf32>
      %47 = tpu.matmul %45, %46, %cst_31 {dimension_numbers = #tpu.dot_dimension_numbers<[1], [0], [0], [1], [0, 0, 1, 1], [], []>} : vector<200x192xf32>, vector<192x4xf32>, vector<200x4xf32> -> vector<200x4xf32>
      %48 = arith.addf %47, %38 : vector<200x4xf32>
      %c0_32 = arith.constant 0 : index
      %c0_33 = arith.constant 0 : index
      %49 = vector.load %arg6[%c0_32, %c0_33] : memref<2x4xf32, #tpu.memory_space<vmem>>, vector<2x4xf32>
      %cst_34 = arith.constant dense<0.000000e+00> : vector<200x4xf32>
      %50 = tpu.matmul %44, %49, %cst_34 {dimension_numbers = #tpu.dot_dimension_numbers<[1], [0], [0], [1], [0, 0, 1, 1], [], []>} : vector<200x2xf32>, vector<2x4xf32>, vector<200x4xf32> -> vector<200x4xf32>
      %51 = arith.addf %48, %50 : vector<200x4xf32>
      %c0_35 = arith.constant 0 : index
      %c0_36 = arith.constant 0 : index
      %52 = vector.load %arg12[%c0_35, %c0_36] : memref<200x4xf32, #tpu.memory_space<vmem>>, vector<200x4xf32>
      tpu.vector_store %arg12[%c0_35, %c0_36], %51 {strides = array<i32>} : memref<200x4xf32, #tpu.memory_space<vmem>>, vector<200x4xf32>,
    } else {
    }
    return
  }
  func.func @transform_0(%arg0: i32) -> (i32, i32) {
    %c0_i32 = arith.constant 0 : i32
    %c0_i32_0 = arith.constant 0 : i32
    %c0_i32_1 = arith.constant 0 : i32
    return %c0_i32, %c0_i32_0 : i32, i32
  }
  func.func @transform_1(%arg0: i32) -> (i32, i32) {
    %c0_i32 = arith.constant 0 : i32
    %c0_i32_0 = arith.constant 0 : i32
    return %arg0, %c0_i32 : i32, i32
  }
  func.func @transform_2(%arg0: i32) -> (i32, i32) {
    %c0_i32 = arith.constant 0 : i32
    %c0_i32_0 = arith.constant 0 : i32
    return %c0_i32, %arg0 : i32, i32
  }
  func.func @transform_3(%arg0: i32) -> (i32, i32) {
    %c0_i32 = arith.constant 0 : i32
    %c0_i32_0 = arith.constant 0 : i32
    return %arg0, %c0_i32 : i32, i32
  }
  func.func @transform_4(%arg0: i32) -> (i32, i32) {
    %c0_i32 = arith.constant 0 : i32
    %c0_i32_0 = arith.constant 0 : i32
    %c0_i32_1 = arith.constant 0 : i32
    return %c0_i32, %c0_i32_0 : i32, i32
  }
  func.func @transform_5(%arg0: i32) -> (i32, i32) {
    %c0_i32 = arith.constant 0 : i32
    %c0_i32_0 = arith.constant 0 : i32
    %c0_i32_1 = arith.constant 0 : i32
    return %c0_i32, %c0_i32_0 : i32, i32
  }
  func.func @transform_6(%arg0: i32) -> (i32, i32) {
    %c0_i32 = arith.constant 0 : i32
    %c0_i32_0 = arith.constant 0 : i32
    %c0_i32_1 = arith.constant 0 : i32
    return %c0_i32, %c0_i32_0 : i32, i32
  }
  func.func @transform_7(%arg0: i32) -> (i32, i32) {
    %c0_i32 = arith.constant 0 : i32
    %c0_i32_0 = arith.constant 0 : i32
    %c0_i32_1 = arith.constant 0 : i32
    return %c0_i32, %c0_i32_0 : i32, i32
  }
  func.func @transform_8(%arg0: i32) -> (i32, i32) {
    %c0_i32 = arith.constant 0 : i32
    %c0_i32_0 = arith.constant 0 : i32
    %c0_i32_1 = arith.constant 0 : i32
    return %c0_i32, %c0_i32_0 : i32, i32
  }
  func.func @transform_9(%arg0: i32) -> (i32, i32) {
    %c0_i32 = arith.constant 0 : i32
    %c0_i32_0 = arith.constant 0 : i32
    %c0_i32_1 = arith.constant 0 : i32
    return %c0_i32, %c0_i32_0 : i32, i32
  }
  func.func @transform_10(%arg0: i32) -> (i32, i32) {
    %c0_i32 = arith.constant 0 : i32
    %c0_i32_0 = arith.constant 0 : i32
    %c0_i32_1 = arith.constant 0 : i32
    return %c0_i32, %c0_i32_0 : i32, i32
  }
  func.func @transform_11(%arg0: i32) -> (i32, i32) {
    %c0_i32 = arith.constant 0 : i32
    %c0_i32_0 = arith.constant 0 : i32
    %c0_i32_1 = arith.constant 0 : i32
    return %c0_i32, %c0_i32_0 : i32, i32
  }
}

</mosaic_0001>

<bundles_post_ra>
// kernel: tpu_custom_call.1
= control target key start
LH: loop header
LB: loop body
LE: loop exit
PB: predicated region body
PF: predicated region fallthrough
CT: control target
= control target key end

     0   :  { %s4107_s17 = smov 0   ;;  %s5589_s0 = inlined_call_operand.vmem [shape: f32[200,192], index: 0, kind: input, shape index: {}]   ;;  %s5590_s1 = inlined_call_operand.vmem [shape: s32[256,1], index: 1, kind: input, shape index: {}]   ;;  %s5591_s2 = inlined_call_operand.vmem [shape: s32[1,256], index: 2, kind: input, shape index: {}]   ;;  %s5592_s3 = inlined_call_operand.vmem [shape: f32[256,8], index: 3, kind: input, shape index: {}]   ;;  %s5593_s4 = inlined_call_operand.vmem [shape: s32[200,1], index: 4, kind: input, shape index: {}]   ;;  %s5594_s5 = inlined_call_operand.vmem [shape: f32[2,4], index: 5, kind: input, shape index: {}]   ;;  %s5595_s6 = inlined_call_operand.vmem [shape: f32[192,128], index: 6, kind: input, shape index: {}]   ;;  %s5596_s7 = inlined_call_operand.vmem [shape: f32[8,128], index: 7, kind: input, shape index: {}]   ;;  %s5597_s8 = inlined_call_operand.vmem [shape: f32[1,128], index: 8, kind: input, shape index: {}]   ;;  %s5598_s9 = inlined_call_operand.vmem [shape: f32[192,4], index: 9, kind: input, shape index: {}]   ;;  %s5599_s10 = inlined_call_operand.vmem [shape: f32[128,4], index: 10, kind: input, shape index: {}]   ;;  %s5600_s11 = inlined_call_operand.vmem [shape: f32[200,4], index: 11, kind: output, shape index: {}]  }
   0x1 LB: > { %s4113_s18 = sadd.s32 4294967295, %s4033_s17   ;;  %p3072_p0 = scmp.ge.s32.totalorder %s4033_s17, 1  ;;  %s4033_s17 = sphi %s4107_s17, %s21_s17  }
   0x2   : > { %p352_p1 = scmp.lt.s32.totalorder %s4033_s17, 3 }
   0x4   : > { %p353_p2 = pnand %p3072_p0, %p352_p1 }
   0x5   : > { %s3073_s19 = sshll.u32 (!%p353_p2), %s4113_s18, 4  ;;  %p401_p3 = scmp.lt.s32.totalorder (!%p353_p2), %s4113_s18, 1 }
   0x6   : > { %356 = sbr.rel (%p353_p2) target bundleno = 1626 (0x65a), region = 64  ;;  %p396_p4 = scmp.lt.s32.totalorder (!%p353_p2), %s3073_s19, 31 }
   0x7   : > { %p3077_p5 = scmp.ne.s32.totalorder (!%p353_p2), %s4113_s18, 0 }
   0xd   : > { %s4120_s20 = scalar_select %p401_p3, %s4113_s18, 1 }
   0xe   : > { %s5602_s19 = smov (!%p396_p4, %s3073_s19), 31  ;;  %413 = sbr.rel (%p3077_p5) target bundleno = 328 (0x148), region = 68 }
   0xf   : > { %s403_s23 = scalar_lea.vmem %s5591_s2, %s4120_s20  ;;  %s3074_s24 = sshll.u32 %s5602_s19, 3  ;;  %v464_v0 = vld [vmem:[%s5595_s6] sm:$0xff] (!%p3077_p5)  ;;  %v465_v1 = vld [vmem:[%s5595_s6 + $0x8] sm:$0xff] (!%p3077_p5)  ;;  %v466_v2 = vld [vmem:[%s5595_s6 + $0x10] sm:$0xff] (!%p3077_p5)  ;;  %v4035_v3 = vmov (!%p3077_p5), 0.0|0.0   ;;  %vm495_vm0 = vcmask (!%p3077_p5), 523264  }
  0x10   : > { %s4129_s27 = scalar_lea.vmem %s5590_s1, %s3074_s24  ;;  %s4134_s30 = scalar_lea.vmem %s5592_s3, %s3074_s24  ;;  %3696 = vmatprep.subr.bf16.mxu0 (!%p3077_p5), %v4035_v3  ;;  %v3697_v4 = vpack.c.bf16 (!%p3077_p5), %v465_v1, %v464_v0  ;;  %3860 = vmatprep.subr.bf16.mxu1 (!%p3077_p5), %v4035_v3  ;;  %v467_v5 = vld [vmem:[%s5595_s6 + $0x18] sm:$0xff] (!%p3077_p5)  ;;  %v468_v7 = vld [vmem:[%s5595_s6 + $0x20] sm:$0xff] (!%p3077_p5)  ;;  %v469_v8 = vld [vmem:[%s5595_s6 + $0x28] sm:$0xff] (!%p3077_p5)  ;;  %vm786_vm1 = vcmask (!%p3077_p5), 39936  }
  0x11   : > { %v3700_v6 = vpack.c.bf16 (!%p3077_p5), %v467_v5, %v466_v2  ;;  %v3703_v9 = vpack.c.bf16 (!%p3077_p5), %v469_v8, %v468_v7  ;;  %v470_v10 = vld [vmem:[%s5595_s6 + $0x30] sm:$0xff] (!%p3077_p5)  ;;  %v471_v11 = vld [vmem:[%s5595_s6 + $0x38] sm:$0xff] (!%p3077_p5)  ;;  %v415_v12 = vld [vmem:[%s5589_s0 + $0x8] sm:$0xff] (!%p3077_p5) }
  0x12   : > { %3698 = vmatpush1.bf16.msra.mxu0 (!%p3077_p5), %v3697_v4  ;;  %3872 = vmatpush1.bf16.msra.mxu1 (!%p3077_p5), %v3697_v4  ;;  %v441_v13 = vld [vmem:[%s5589_s0 + $0xd8] sm:$0xff] (!%p3077_p5)  ;;  %v3706_v14 = vpack.c.bf16 (!%p3077_p5), %v471_v11, %v470_v10  ;;  %v472_v15 = vld [vmem:[%s5595_s6 + $0x40] sm:$0xff] (!%p3077_p5)  ;;  %v473_v16 = vld [vmem:[%s5595_s6 + $0x48] sm:$0xff] (!%p3077_p5) }
  0x13   : > { %3699 = vmatprep.subr.bf16.mxu0 (!%p3077_p5), %v4035_v3  ;;  %3861 = vmatprep.subr.bf16.mxu1 (!%p3077_p5), %v4035_v3  ;;  %v3709_v17 = vpack.c.bf16 (!%p3077_p5), %v473_v16, %v472_v15  ;;  %v474_v18 = vld [vmem:[%s5595_s6 + $0x50] sm:$0xff] (!%p3077_p5)  ;;  %v475_v19 = vld [vmem:[%s5595_s6 + $0x58] sm:$0xff] (!%p3077_p5)  ;;  %v476_v21 = vld [vmem:[%s5595_s6 + $0x60] sm:$0xff] (!%p3077_p5) }
  0x14   : > { %3079 = vmatprep.mubr.msk.f32.mxu0 (!%p3077_p5), %vm495_vm0, %v415_v12  ;;  %3092 = vmatprep.mubr.msk.f32.mxu1 (!%p3077_p5), %vm495_vm0, %v441_v13  ;;  %v3712_v20 = vpack.c.bf16 (!%p3077_p5), %v475_v19, %v474_v18  ;;  %v477_v22 = vld [vmem:[%s5595_s6 + $0x68] sm:$0xff] (!%p3077_p5)  ;;  %v478_v24 = vld [vmem:[%s5595_s6 + $0x70] sm:$0xff] (!%p3077_p5)  ;;  %v479_v25 = vld [vmem:[%s5595_s6 + $0x78] sm:$0xff] (!%p3077_p5) }
  0x15   : > { %v3715_v23 = vpack.c.bf16 %v477_v22, %v476_v21  ;;  %v3718_v26 = vpack.c.bf16 %v479_v25, %v478_v24  ;;  %v480_v27 = vld [vmem:[%s5595_s6 + $0x80] sm:$0xff]  ;;  %v481_v28 = vld [vmem:[%s5595_s6 + $0x88] sm:$0xff]  ;;  %v482_v30 = vld [vmem:[%s5595_s6 + $0x90] sm:$0xff] }
  0x16   : > { %3701 = vmatpush1.bf16.msra.mxu0 %v3700_v6  ;;  %3873 = vmatpush1.bf16.msra.mxu1 %v3700_v6  ;;  %v3721_v29 = vpack.c.bf16 %v481_v28, %v480_v27  ;;  %v483_v31 = vld [vmem:[%s5595_s6 + $0x98] sm:$0xff]  ;;  %v484_v33 = vld [vmem:[%s5595_s6 + $0xa0] sm:$0xff]  ;;  %v485_v34 = vld [vmem:[%s5595_s6 + $0xa8] sm:$0xff] }
  0x17   : > { %3702 = vmatprep.subr.bf16.mxu0 %v4035_v3  ;;  %3862 = vmatprep.subr.bf16.mxu1 %v4035_v3  ;;  %v3724_v32 = vpack.c.bf16 %v483_v31, %v482_v30  ;;  %v3727_v35 = vpack.c.bf16 %v485_v34, %v484_v33  ;;  %v486_v36 = vld [vmem:[%s5595_s6 + $0xb0] sm:$0xff]  ;;  %v487_v37 = vld [vmem:[%s5595_s6 + $0xb8] sm:$0xff]  ;;  %v414_v39 = vld [vmem:[%s5589_s0] sm:$0xff] }
  0x18   : > { %v3730_v38 = vpack.c.bf16 %v487_v37, %v486_v36  ;;  %v440_v40 = vld [vmem:[%s5589_s0 + $0xd0] sm:$0xff]  ;;  %v417_v41 = vld [vmem:[%s5589_s0 + $0x18] sm:$0xff]  ;;  %v443_v42 = vld [vmem:[%s5589_s0 + $0xe8] sm:$0xff] }
  0x19   : > { %v416_v43 = vld [vmem:[%s5589_s0 + $0x10] sm:$0xff]  ;;  %v442_v44 = vld [vmem:[%s5589_s0 + $0xe0] sm:$0xff]  ;;  %v419_v45 = vld [vmem:[%s5589_s0 + $0x28] sm:$0xff] }
  0x1a   : > { %3704 = vmatpush1.bf16.msra.mxu0 %v3703_v9  ;;  %3874 = vmatpush1.bf16.msra.mxu1 %v3703_v9  ;;  %v445_v46 = vld [vmem:[%s5589_s0 + $0xf8] sm:$0xff]  ;;  %v418_v47 = vld [vmem:[%s5589_s0 + $0x20] sm:$0xff]  ;;  %v444_v48 = vld [vmem:[%s5589_s0 + $0xf0] sm:$0xff] }
  0x1b   : > { %3705 = vmatprep.subr.bf16.mxu0 %v4035_v3  ;;  %3863 = vmatprep.subr.bf16.mxu1 %v4035_v3  ;;  %v421_v49 = vld [vmem:[%s5589_s0 + $0x38] sm:$0xff]  ;;  %v447_v50 = vld [vmem:[%s5589_s0 + $0x108] sm:$0xff]  ;;  %v420_v51 = vld [vmem:[%s5589_s0 + $0x30] sm:$0xff] }
  0x1c   : > { %v446_v52 = vld [vmem:[%s5589_s0 + $0x100] sm:$0xff]  ;;  %v423_v53 = vld [vmem:[%s5589_s0 + $0x48] sm:$0xff]  ;;  %v449_v54 = vld [vmem:[%s5589_s0 + $0x118] sm:$0xff] }
  0x1d   : > { %v422_v55 = vld [vmem:[%s5589_s0 + $0x40] sm:$0xff]  ;;  %v448_v56 = vld [vmem:[%s5589_s0 + $0x110] sm:$0xff]  ;;  %v425_v57 = vld [vmem:[%s5589_s0 + $0x58] sm:$0xff] }
  0x1e   : > { %3707 = vmatpush1.bf16.msra.mxu0 %v3706_v14  ;;  %3875 = vmatpush1.bf16.msra.mxu1 %v3706_v14  ;;  %v451_v58 = vld [vmem:[%s5589_s0 + $0x128] sm:$0xff]  ;;  %v424_v59 = vld [vmem:[%s5589_s0 + $0x50] sm:$0xff]  ;;  %v450_v60 = vld [vmem:[%s5589_s0 + $0x120] sm:$0xff] }
  0x1f   : > { %3708 = vmatprep.subr.bf16.mxu0 %v4035_v3  ;;  %3864 = vmatprep.subr.bf16.mxu1 %v4035_v3  ;;  %v427_v61 = vld [vmem:[%s5589_s0 + $0x68] sm:$0xff]  ;;  %v453_v62 = vld [vmem:[%s5589_s0 + $0x138] sm:$0xff]  ;;  %v426_v63 = vld [vmem:[%s5589_s0 + $0x60] sm:$0xff] }
  0x20   : > { %v452_v0 = vld [vmem:[%s5589_s0 + $0x130] sm:$0xff]  ;;  %v429_v1 = vld [vmem:[%s5589_s0 + $0x78] sm:$0xff]  ;;  %v455_v2 = vld [vmem:[%s5589_s0 + $0x148] sm:$0xff] }
  0x21   : > { %v454_v4 = vld [vmem:[%s5589_s0 + $0x140] sm:$0xff]  ;;  %v431_v5 = vld [vmem:[%s5589_s0 + $0x88] sm:$0xff]  ;;  %v457_v6 = vld [vmem:[%s5589_s0 + $0x158] sm:$0xff] }
  0x22   : > { %3710 = vmatpush1.bf16.msra.mxu0 %v3709_v17  ;;  %3876 = vmatpush1.bf16.msra.mxu1 %v3709_v17  ;;  %v430_v7 = vld [vmem:[%s5589_s0 + $0x80] sm:$0xff]  ;;  %v456_v8 = vld [vmem:[%s5589_s0 + $0x150] sm:$0xff]  ;;  %v433_v9 = vld [vmem:[%s5589_s0 + $0x98] sm:$0xff] }
  0x23   : > { %3711 = vmatprep.subr.bf16.mxu0 %v4035_v3  ;;  %3865 = vmatprep.subr.bf16.mxu1 %v4035_v3  ;;  %v459_v10 = vld [vmem:[%s5589_s0 + $0x168] sm:$0xff]  ;;  %v432_v11 = vld [vmem:[%s5589_s0 + $0x90] sm:$0xff]  ;;  %v458_v12 = vld [vmem:[%s5589_s0 + $0x160] sm:$0xff] }
  0x24   : > { %v435_v13 = vld [vmem:[%s5589_s0 + $0xa8] sm:$0xff]  ;;  %v461_v14 = vld [vmem:[%s5589_s0 + $0x178] sm:$0xff]  ;;  %v434_v15 = vld [vmem:[%s5589_s0 + $0xa0] sm:$0xff] }
  0x25   : > { %v460_v16 = vld [vmem:[%s5589_s0 + $0x170] sm:$0xff]  ;;  %v437_v17 = vld [vmem:[%s5589_s0 + $0xb8] sm:$0xff]  ;;  %v463_v18 = vld [vmem:[%s5589_s0 + $0x188] sm:$0xff] }
  0x26   : > { %3713 = vmatpush1.bf16.msra.mxu0 %v3712_v20  ;;  %3877 = vmatpush1.bf16.msra.mxu1 %v3712_v20  ;;  %v436_v19 = vld [vmem:[%s5589_s0 + $0xb0] sm:$0xff]  ;;  %v462_v20 = vld [vmem:[%s5589_s0 + $0x180] sm:$0xff]  ;;  %v439_v21 = vld [vmem:[%s5589_s0 + $0xc8] sm:$0xff] }
  0x27   : > { %3714 = vmatprep.subr.bf16.mxu0 %v4035_v3  ;;  %3866 = vmatprep.subr.bf16.mxu1 %v4035_v3  ;;  %v438_v22 = vld [vmem:[%s5589_s0 + $0xc0] sm:$0xff] }
  0x28   : > { %v4436_v24 = vld [vmem:[%s5597_s8] ss:$0 sm:$0xff] }
  0x2a   : > { %3716 = vmatpush1.bf16.msra.mxu0 %v3715_v23  ;;  %3878 = vmatpush1.bf16.msra.mxu1 %v3715_v23  ;;  %v4036_v23 = vmov 0.0  }
  0x2b   : > { %3717 = vmatprep.subr.bf16.mxu0 %v4035_v3  ;;  %3867 = vmatprep.subr.bf16.mxu1 %v4035_v3  ;;  %787 = vst.msk [vmem:[#allocation3] sm:$0xff] %vm786_vm1, %v4036_v23  ;;  %788 = vst.msk [vmem:[#allocation3 + $0x8] sm:$0xff] %vm786_vm1, %v4036_v23 }
  0x2c   : > { %789 = vst.msk [vmem:[#allocation3 + $0x10] sm:$0xff] %vm786_vm1, %v4036_v23  ;;  %790 = vst.msk [vmem:[#allocation3 + $0x18] sm:$0xff] %vm786_vm1, %v4036_v23 }
  0x2d   : > { %791 = vst.msk [vmem:[#allocation3 + $0x20] sm:$0xff] %vm786_vm1, %v4036_v23  ;;  %792 = vst.msk [vmem:[#allocation3 + $0x28] sm:$0xff] %vm786_vm1, %v4036_v23 }
  0x2e   : > { %3719 = vmatpush1.bf16.msra.mxu0 %v3718_v26  ;;  %3879 = vmatpush1.bf16.msra.mxu1 %v3718_v26  ;;  %793 = vst.msk [vmem:[#allocation3 + $0x30] sm:$0xff] %vm786_vm1, %v4036_v23  ;;  %794 = vst.msk [vmem:[#allocation3 + $0x38] sm:$0xff] %vm786_vm1, %v4036_v23 }
  0x2f   : > { %3720 = vmatprep.subr.bf16.mxu0 %v4035_v3  ;;  %3868 = vmatprep.subr.bf16.mxu1 %v4035_v3  ;;  %795 = vst.msk [vmem:[#allocation3 + $0x40] sm:$0xff] %vm786_vm1, %v4036_v23  ;;  %796 = vst.msk [vmem:[#allocation3 + $0x48] sm:$0xff] %vm786_vm1, %v4036_v23 }
  0x30   : > { %797 = vst.msk [vmem:[#allocation3 + $0x50] sm:$0xff] %vm786_vm1, %v4036_v23  ;;  %798 = vst.msk [vmem:[#allocation3 + $0x58] sm:$0xff] %vm786_vm1, %v4036_v23 }
  0x31   : > { %799 = vst.msk [vmem:[#allocation3 + $0x60] sm:$0xff] %vm786_vm1, %v4036_v23  ;;  %800 = vst.msk [vmem:[#allocation3 + $0x68] sm:$0xff] %vm786_vm1, %v4036_v23 }
  0x32   : > { %3722 = vmatpush1.bf16.msra.mxu0 %v3721_v29  ;;  %3880 = vmatpush1.bf16.msra.mxu1 %v3721_v29  ;;  %801 = vst.msk [vmem:[#allocation3 + $0x70] sm:$0xff] %vm786_vm1, %v4036_v23  ;;  %802 = vst.msk [vmem:[#allocation3 + $0x78] sm:$0xff] %vm786_vm1, %v4036_v23 }
  0x33   : > { %3723 = vmatprep.subr.bf16.mxu0 %v4035_v3  ;;  %3869 = vmatprep.subr.bf16.mxu1 %v4035_v3  ;;  %803 = vst.msk [vmem:[#allocation3 + $0x80] sm:$0xff] %vm786_vm1, %v4036_v23  ;;  %804 = vst.msk [vmem:[#allocation3 + $0x88] sm:$0xff] %vm786_vm1, %v4036_v23 }
  0x34   : > { %805 = vst.msk [vmem:[#allocation3 + $0x90] sm:$0xff] %vm786_vm1, %v4036_v23  ;;  %806 = vst.msk [vmem:[#allocation3 + $0x98] sm:$0xff] %vm786_vm1, %v4036_v23 }
  0x35   : > { %807 = vst.msk [vmem:[#allocation3 + $0xa0] sm:$0xff] %vm786_vm1, %v4036_v23  ;;  %808 = vst.msk [vmem:[#allocation3 + $0xa8] sm:$0xff] %vm786_vm1, %v4036_v23 }
  0x36   : > { %3725 = vmatpush1.bf16.msra.mxu0 %v3724_v32  ;;  %3881 = vmatpush1.bf16.msra.mxu1 %v3724_v32  ;;  %809 = vst.msk [vmem:[#allocation3 + $0xb0] sm:$0xff] %vm786_vm1, %v4036_v23  ;;  %810 = vst.msk [vmem:[#allocation3 + $0xb8] sm:$0xff] %vm786_vm1, %v4036_v23 }
  0x37   : > { %3726 = vmatprep.subr.bf16.mxu0 %v4035_v3  ;;  %3870 = vmatprep.subr.bf16.mxu1 %v4035_v3  ;;  %811 = vst.msk [vmem:[#allocation3 + $0xc0] sm:$0xff] %vm786_vm1, %v4036_v23 }
  0x3a   : > { %3728 = vmatpush1.bf16.msra.mxu0 %v3727_v35  ;;  %3882 = vmatpush1.bf16.msra.mxu1 %v3727_v35 }
  0x3b   : > { %3729 = vmatprep.subr.bf16.mxu0 %v4035_v3  ;;  %3871 = vmatprep.subr.bf16.mxu1 %v4035_v3  ;;  %v428_v3 = vld [vmem:[%s5589_s0 + $0x70] sm:$0xff] }
  0x3e   : > { %3731 = vmatpush1.bf16.msra.mxu0 %v3730_v38  ;;  %3883 = vmatpush1.bf16.msra.mxu1 %v3730_v38 }
  0x41   : > { %636 = vmatmul.mubr.f32.vlgmr.msra.gmra.mrb[0].mxu0 %v414_v39  ;;  %701 = vmatmul.mubr.f32.vlgmr.msra.gmra.mrb[0].mxu1 %v440_v40 }
  0x42   : > { %3080 = vmatprep.mubr.msk.f32.mxu0 %vm495_vm0, %v417_v41  ;;  %3093 = vmatprep.mubr.msk.f32.mxu1 %vm495_vm0, %v443_v42 }
  0x45   : > { %641 = vmatmul.mubr.f32.gmra.mrb[2].mxu0 %v416_v43  ;;  %706 = vmatmul.mubr.f32.gmra.mrb[2].mxu1 %v442_v44 }
  0x46   : > { %3081 = vmatprep.mubr.msk.f32.mxu0 %vm495_vm0, %v419_v45  ;;  %3094 = vmatprep.mubr.msk.f32.mxu1 %vm495_vm0, %v445_v46 }
  0x49   : > { %646 = vmatmul.mubr.f32.gmra.mrb[4].mxu0 %v418_v47  ;;  %711 = vmatmul.mubr.f32.gmra.mrb[4].mxu1 %v444_v48 }
  0x4a   : > { %3082 = vmatprep.mubr.msk.f32.mxu0 %vm495_vm0, %v421_v49  ;;  %3095 = vmatprep.mubr.msk.f32.mxu1 %vm495_vm0, %v447_v50 }
  0x4d   : > { %651 = vmatmul.mubr.f32.gmra.mrb[6].mxu0 %v420_v51  ;;  %716 = vmatmul.mubr.f32.gmra.mrb[6].mxu1 %v446_v52 }
  0x4e   : > { %3083 = vmatprep.mubr.msk.f32.mxu0 %vm495_vm0, %v423_v53  ;;  %3096 = vmatprep.mubr.msk.f32.mxu1 %vm495_vm0, %v449_v54 }
  0x51   : > { %656 = vmatmul.mubr.f32.gmra.mrb[8].mxu0 %v422_v55  ;;  %721 = vmatmul.mubr.f32.gmra.mrb[8].mxu1 %v448_v56 }
  0x52   : > { %3084 = vmatprep.mubr.msk.f32.mxu0 %vm495_vm0, %v425_v57  ;;  %3097 = vmatprep.mubr.msk.f32.mxu1 %vm495_vm0, %v451_v58 }
  0x55   : > { %661 = vmatmul.mubr.f32.gmra.mrb[10].mxu0 %v424_v59  ;;  %726 = vmatmul.mubr.f32.gmra.mrb[10].mxu1 %v450_v60 }
  0x56   : > { %3085 = vmatprep.mubr.msk.f32.mxu0 %vm495_vm0, %v427_v61  ;;  %3098 = vmatprep.mubr.msk.f32.mxu1 %vm495_vm0, %v453_v62 }
  0x59   : > { %666 = vmatmul.mubr.f32.gmra.mrb[12].mxu0 %v426_v63  ;;  %731 = vmatmul.mubr.f32.gmra.mrb[12].mxu1 %v452_v0 }
  0x5a   : > { %3086 = vmatprep.mubr.msk.f32.mxu0 %vm495_vm0, %v429_v1  ;;  %3099 = vmatprep.mubr.msk.f32.mxu1 %vm495_vm0, %v455_v2 }
  0x5d   : > { %671 = vmatmul.mubr.f32.gmra.mrb[14].mxu0 %v428_v3  ;;  %736 = vmatmul.mubr.f32.gmra.mrb[14].mxu1 %v454_v4 }
  0x5e   : > { %3087 = vmatprep.mubr.msk.f32.mxu0 %vm495_vm0, %v431_v5  ;;  %3100 = vmatprep.mubr.msk.f32.mxu1 %vm495_vm0, %v457_v6 }
  0x61   : > { %676 = vmatmul.mubr.f32.gmra.mrb[16].mxu0 %v430_v7  ;;  %741 = vmatmul.mubr.f32.gmra.mrb[16].mxu1 %v456_v8 }
  0x62   : > { %3088 = vmatprep.mubr.msk.f32.mxu0 %vm495_vm0, %v433_v9  ;;  %3101 = vmatprep.mubr.msk.f32.mxu1 %vm495_vm0, %v459_v10 }
  0x65   : > { %681 = vmatmul.mubr.f32.gmra.mrb[18].mxu0 %v432_v11  ;;  %746 = vmatmul.mubr.f32.gmra.mrb[18].mxu1 %v458_v12 }
  0x66   : > { %3089 = vmatprep.mubr.msk.f32.mxu0 %vm495_vm0, %v435_v13  ;;  %3102 = vmatprep.mubr.msk.f32.mxu1 %vm495_vm0, %v461_v14 }
  0x69   : > { %686 = vmatmul.mubr.f32.gmra.mrb[20].mxu0 %v434_v15  ;;  %751 = vmatmul.mubr.f32.gmra.mrb[20].mxu1 %v460_v16 }
  0x6a   : > { %3090 = vmatprep.mubr.msk.f32.mxu0 %vm495_vm0, %v437_v17  ;;  %3103 = vmatprep.mubr.msk.f32.mxu1 %vm495_vm0, %v463_v18 }
  0x6d   : > { %691 = vmatmul.mubr.f32.gmra.mrb[22].mxu0 %v436_v19  ;;  %756 = vmatmul.mubr.f32.gmra.mrb[22].mxu1 %v462_v20 }
  0x6e   : > { %3091 = vmatprep.mubr.msk.f32.mxu0 %vm495_vm0, %v439_v21 }
  0x71   : > { %696 = vmatmul.mubr.f32.gmra.mrb[24].mxu0 %v438_v22 }
 0x114   : > { %v637_v25 = vpop.f32.mrb[0].mxu0  ;;  %v702_v26 = vpop.f32.mrb[0].mxu1 }
 0x115   : > { %v638_v27 = vadd.f32 %v4436_v24, %v637_v25  ;;  %v639_v28 = vpop.f32.mrb[1].mxu0  ;;  %v703_v29 = vadd.f32 %v4436_v24, %v702_v26  ;;  %v704_v30 = vpop.f32.mrb[1].mxu1 }
 0x117   : > { %761 = vst [vmem:[#allocation2] sm:$0xff] %v638_v27  ;;  %774 = vst [vmem:[#allocation2 + $0x68] sm:$0xff] %v703_v29 }
 0x118   : > { %v642_v31 = vpop.f32.mrb[2].mxu0  ;;  %v707_v32 = vpop.f32.mrb[2].mxu1 }
 0x119   : > { %v643_v33 = vadd.f32 %v4436_v24, %v642_v31  ;;  %v644_v34 = vpop.f32.mrb[3].mxu0  ;;  %v708_v35 = vadd.f32 %v4436_v24, %v707_v32  ;;  %v709_v36 = vpop.f32.mrb[3].mxu1 }
 0x11b   : > { %762 = vst [vmem:[#allocation2 + $0x8] sm:$0xff] %v643_v33  ;;  %775 = vst [vmem:[#allocation2 + $0x70] sm:$0xff] %v708_v35 }
 0x11c   : > { %v647_v37 = vpop.f32.mrb[4].mxu0  ;;  %v712_v38 = vpop.f32.mrb[4].mxu1 }
 0x11d   : > { %v648_v39 = vadd.f32 %v4436_v24, %v647_v37  ;;  %v649_v40 = vpop.f32.mrb[5].mxu0  ;;  %v713_v41 = vadd.f32 %v4436_v24, %v712_v38  ;;  %v714_v42 = vpop.f32.mrb[5].mxu1 }
 0x11f   : > { %763 = vst [vmem:[#allocation2 + $0x10] sm:$0xff] %v648_v39  ;;  %776 = vst [vmem:[#allocation2 + $0x78] sm:$0xff] %v713_v41 }
 0x120   : > { %v652_v43 = vpop.f32.mrb[6].mxu0  ;;  %v717_v44 = vpop.f32.mrb[6].mxu1 }
 0x121   : > { %v653_v45 = vadd.f32 %v4436_v24, %v652_v43  ;;  %v654_v46 = vpop.f32.mrb[7].mxu0  ;;  %v718_v47 = vadd.f32 %v4436_v24, %v717_v44  ;;  %v719_v48 = vpop.f32.mrb[7].mxu1 }
 0x123   : > { %764 = vst [vmem:[#allocation2 + $0x18] sm:$0xff] %v653_v45  ;;  %777 = vst [vmem:[#allocation2 + $0x80] sm:$0xff] %v718_v47 }
 0x124   : > { %v657_v49 = vpop.f32.mrb[8].mxu0  ;;  %v722_v50 = vpop.f32.mrb[8].mxu1 }
 0x125   : > { %v658_v51 = vadd.f32 %v4436_v24, %v657_v49  ;;  %v659_v52 = vpop.f32.mrb[9].mxu0  ;;  %v723_v53 = vadd.f32 %v4436_v24, %v722_v50  ;;  %v724_v54 = vpop.f32.mrb[9].mxu1 }
 0x127   : > { %765 = vst [vmem:[#allocation2 + $0x20] sm:$0xff] %v658_v51  ;;  %778 = vst [vmem:[#allocation2 + $0x88] sm:$0xff] %v723_v53 }
 0x128   : > { %v662_v55 = vpop.f32.mrb[10].mxu0  ;;  %v727_v56 = vpop.f32.mrb[10].mxu1 }
 0x129   : > { %v663_v57 = vadd.f32 %v4436_v24, %v662_v55  ;;  %v664_v58 = vpop.f32.mrb[11].mxu0  ;;  %v728_v59 = vadd.f32 %v4436_v24, %v727_v56  ;;  %v729_v60 = vpop.f32.mrb[11].mxu1 }
 0x12b   : > { %766 = vst [vmem:[#allocation2 + $0x28] sm:$0xff] %v663_v57  ;;  %779 = vst [vmem:[#allocation2 + $0x90] sm:$0xff] %v728_v59 }
 0x12c   : > { %v667_v61 = vpop.f32.mrb[12].mxu0  ;;  %v732_v62 = vpop.f32.mrb[12].mxu1 }
 0x12d   : > { %v668_v63 = vadd.f32 %v4436_v24, %v667_v61  ;;  %v669_v0 = vpop.f32.mrb[13].mxu0  ;;  %v733_v1 = vadd.f32 %v4436_v24, %v732_v62  ;;  %v734_v2 = vpop.f32.mrb[13].mxu1 }
 0x12f   : > { %767 = vst [vmem:[#allocation2 + $0x30] sm:$0xff] %v668_v63  ;;  %780 = vst [vmem:[#allocation2 + $0x98] sm:$0xff] %v733_v1 }
 0x130   : > { %v672_v3 = vpop.f32.mrb[14].mxu0  ;;  %v737_v4 = vpop.f32.mrb[14].mxu1 }
 0x131   : > { %v673_v5 = vadd.f32 %v4436_v24, %v672_v3  ;;  %v674_v6 = vpop.f32.mrb[15].mxu0  ;;  %v738_v7 = vadd.f32 %v4436_v24, %v737_v4  ;;  %v739_v8 = vpop.f32.mrb[15].mxu1 }
 0x133   : > { %768 = vst [vmem:[#allocation2 + $0x38] sm:$0xff] %v673_v5  ;;  %781 = vst [vmem:[#allocation2 + $0xa0] sm:$0xff] %v738_v7 }
 0x134   : > { %v677_v9 = vpop.f32.mrb[16].mxu0  ;;  %v742_v10 = vpop.f32.mrb[16].mxu1 }
 0x135   : > { %v678_v11 = vadd.f32 %v4436_v24, %v677_v9  ;;  %v679_v12 = vpop.f32.mrb[17].mxu0  ;;  %v743_v13 = vadd.f32 %v4436_v24, %v742_v10  ;;  %v744_v14 = vpop.f32.mrb[17].mxu1 }
 0x137   : > { %769 = vst [vmem:[#allocation2 + $0x40] sm:$0xff] %v678_v11  ;;  %782 = vst [vmem:[#allocation2 + $0xa8] sm:$0xff] %v743_v13 }
 0x138   : > { %v682_v15 = vpop.f32.mrb[18].mxu0  ;;  %v747_v16 = vpop.f32.mrb[18].mxu1 }
 0x139   : > { %v683_v17 = vadd.f32 %v4436_v24, %v682_v15  ;;  %v684_v18 = vpop.f32.mrb[19].mxu0  ;;  %v748_v19 = vadd.f32 %v4436_v24, %v747_v16  ;;  %v749_v20 = vpop.f32.mrb[19].mxu1 }
 0x13b   : > { %770 = vst [vmem:[#allocation2 + $0x48] sm:$0xff] %v683_v17  ;;  %783 = vst [vmem:[#allocation2 + $0xb0] sm:$0xff] %v748_v19 }
 0x13c   : > { %v687_v21 = vpop.f32.mrb[20].mxu0  ;;  %v752_v22 = vpop.f32.mrb[20].mxu1 }
 0x13d   : > { %v688_v23 = vadd.f32 %v4436_v24, %v687_v21  ;;  %v689_v25 = vpop.f32.mrb[21].mxu0  ;;  %v753_v26 = vadd.f32 %v4436_v24, %v752_v22  ;;  %v754_v27 = vpop.f32.mrb[21].mxu1 }
 0x13f   : > { %771 = vst [vmem:[#allocation2 + $0x50] sm:$0xff] %v688_v23  ;;  %784 = vst [vmem:[#allocation2 + $0xb8] sm:$0xff] %v753_v26 }
 0x140   : > { %v692_v28 = vpop.f32.mrb[22].mxu0  ;;  %v757_v29 = vpop.f32.mrb[22].mxu1 }
 0x141   : > { %v693_v30 = vadd.f32 %v4436_v24, %v692_v28  ;;  %v694_v31 = vpop.f32.mrb[23].mxu0  ;;  %v758_v32 = vadd.f32 %v4436_v24, %v757_v29  ;;  %v759_v33 = vpop.f32.mrb[23].mxu1 }
 0x143   : > { %772 = vst [vmem:[#allocation2 + $0x58] sm:$0xff] %v693_v30  ;;  %785 = vst [vmem:[#allocation2 + $0xc0] sm:$0xff] %v758_v32 }
 0x144   : > { %v697_v34 = vpop.f32.mrb[24].mxu0 }
 0x145   : > { %v698_v35 = vadd.f32 %v4436_v24, %v697_v34  ;;  %v699_v36 = vpop.f32.mrb[25].mxu0 }
 0x147   : > { %773 = vst [vmem:[#allocation2 + $0x60] sm:$0xff] %v698_v35 }
 0x148 PF: > { %v814_v37 = vld [vmem:[%s4129_s27 + $0x10] sm:$0xff]  ;;  %v812_v38 = vld [vmem:[%s4129_s27] sm:$0xff]  ;;  %v4037_v39 = vmov 0   ;;  %v815_v40 = vld [vmem:[%s4129_s27 + $0x18] sm:$0xff]  ;;  %vm1018_vm2 = vcmask 64512   ;;  %v4038_v51 = vmov 0.0|0.0  }
 0x149   : > { %3971 = vset.pattern.permute.xlu1 %v4037_v39  ;;  %3970 = vset.pattern.permute.xlu0 %v4037_v39  ;;  %v813_v24 = vld [vmem:[%s4129_s27 + $0x8] sm:$0xff]  ;;  %v1017_v41 = vld [vmem:[%s5596_s7] sm:$0xff]  ;;  %v978_v49 = vld [vmem:[#allocation2 + $0x10] sm:$0xff]  ;;  %vm1212_vm3 = vcmask 588800   ;;  %p3235_p6 = scmp.ne.s32.totalorder %s4113_s18, 1 }
 0x14a   : > { %839 = vperm.xlu1 %3971, %v814_v37   ;;  %833 = vperm.xlu0 %3970, %v812_v38   ;;  %v1001_v42 = vld [vmem:[%s4134_s30] sm:$0xff]  ;;  %v1002_v43 = vld [vmem:[%s4134_s30 + $0x8] sm:$0xff]  ;;  %v979_v50 = vld [vmem:[#allocation2 + $0x18] sm:$0xff] }
 0x14b   : > { %v976_v44 = vld [vmem:[#allocation2] sm:$0xff]  ;;  %v977_v45 = vld [vmem:[#allocation2 + $0x8] sm:$0xff]  ;;  %3430 = vmatprep.subr.mxu1 %v1017_v41  ;;  %3432 = vmatprep.mubr.msk.f32.mxu1 %vm1018_vm2, %v1001_v42  ;;  %v1003_v52 = vld [vmem:[%s4134_s30 + $0x10] sm:$0xff]  ;;  %v3736_v56 = vpack.c.bf16 %v979_v50, %v978_v49 }
 0x14c   : > { %v817_v46 = vld [vmem:[%s4129_s27 + $0x28] sm:$0xff]  ;;  %v816_v47 = vld [vmem:[%s4129_s27 + $0x20] sm:$0xff]  ;;  %v3733_v48 = vpack.c.bf16 %v977_v45, %v976_v44  ;;  %3431 = vmatpush3.msra.mxu1 %v1017_v41  ;;  %v1004_v53 = vld [vmem:[%s4134_s30 + $0x18] sm:$0xff] }
 0x14d   : > { %3433 = vmatmul.mubr.msk.f32.vlgmr.msra.gmra.mrb[0].mxu1 %vm1018_vm2, %v1002_v43  ;;  %3732 = vmatprep.subr.bf16.mxu1 %v4038_v51  ;;  %v819_v54 = vld [vmem:[%s4129_s27 + $0x38] sm:$0xff]  ;;  %v818_v55 = vld [vmem:[%s4129_s27 + $0x30] sm:$0xff]  ;;  %v980_v57 = vld [vmem:[#allocation2 + $0x20] sm:$0xff]  ;;  %v4039_v43 = vmov 0.0  }
 0x14e   : > { %842 = vperm.xlu1 %3971, %v815_v40   ;;  %836 = vperm.xlu0 %3970, %v813_v24   ;;  %v981_v58 = vld [vmem:[#allocation2 + $0x28] sm:$0xff]  ;;  %v1005_v59 = vld [vmem:[%s4134_s30 + $0x20] sm:$0xff]  ;;  %v982_v0 = vld [vmem:[#allocation2 + $0x30] sm:$0xff] }
 0x14f   : > { %3734 = vmatpush1.bf16.msra.mxu1 %v3733_v48  ;;  %3435 = vmatprep.mubr.msk.f32.mxu1 %vm1018_vm2, %v1003_v52  ;;  %v1006_v60 = vld [vmem:[%s4134_s30 + $0x28] sm:$0xff]  ;;  %v820_v62 = vld [vmem:[%s4129_s27 + $0x40] sm:$0xff]  ;;  %v3739_v63 = vpack.c.bf16 %v981_v58, %v980_v57  ;;  %v983_v1 = vld [vmem:[#allocation2 + $0x38] sm:$0xff] }
 0x150   : > { %3735 = vmatprep.subr.bf16.mxu1 %v4038_v51  ;;  %v821_v61 = vld [vmem:[%s4129_s27 + $0x48] sm:$0xff]  ;;  %v1007_v2 = vld [vmem:[%s4134_s30 + $0x30] sm:$0xff]  ;;  %v1008_v3 = vld [vmem:[%s4134_s30 + $0x38] sm:$0xff]  ;;  %v3742_v6 = vpack.c.bf16 %v983_v1, %v982_v0 }
 0x151   : > { %3436 = vmatmul.mubr.msk.f32.gmra.mrb[2].mxu1 %vm1018_vm2, %v1004_v53  ;;  %v823_v4 = vld [vmem:[%s4129_s27 + $0x58] sm:$0xff]  ;;  %v822_v5 = vld [vmem:[%s4129_s27 + $0x50] sm:$0xff]  ;;  %v984_v7 = vld [vmem:[#allocation2 + $0x40] sm:$0xff] }
 0x152   : > { %848 = vperm.xlu1 %3971, %v817_v46   ;;  %845 = vperm.xlu0 %3970, %v816_v47   ;;  %v985_v8 = vld [vmem:[#allocation2 + $0x48] sm:$0xff]  ;;  %v1009_v9 = vld [vmem:[%s4134_s30 + $0x40] sm:$0xff]  ;;  %v986_v14 = vld [vmem:[#allocation2 + $0x50] sm:$0xff] }
 0x153   : > { %3737 = vmatpush1.bf16.msra.mxu1 %v3736_v56  ;;  %3438 = vmatprep.mubr.msk.f32.mxu1 %vm1018_vm2, %v1005_v59  ;;  %v1010_v10 = vld [vmem:[%s4134_s30 + $0x48] sm:$0xff]  ;;  %v824_v12 = vld [vmem:[%s4129_s27 + $0x60] sm:$0xff]  ;;  %v3745_v13 = vpack.c.bf16 %v985_v8, %v984_v7  ;;  %v987_v15 = vld [vmem:[#allocation2 + $0x58] sm:$0xff] }
 0x154   : > { %3738 = vmatprep.subr.bf16.mxu1 %v4038_v51  ;;  %v825_v11 = vld [vmem:[%s4129_s27 + $0x68] sm:$0xff]  ;;  %v1011_v16 = vld [vmem:[%s4134_s30 + $0x50] sm:$0xff]  ;;  %v1012_v17 = vld [vmem:[%s4134_s30 + $0x58] sm:$0xff]  ;;  %v3748_v20 = vpack.c.bf16 %v987_v15, %v986_v14 }
 0x155   : > { %3439 = vmatmul.mubr.msk.f32.gmra.mrb[4].mxu1 %vm1018_vm2, %v1006_v60  ;;  %v827_v18 = vld [vmem:[%s4129_s27 + $0x78] sm:$0xff]  ;;  %v826_v19 = vld [vmem:[%s4129_s27 + $0x70] sm:$0xff]  ;;  %v988_v21 = vld [vmem:[#allocation2 + $0x60] sm:$0xff] }
 0x156   : > { %854 = vperm.xlu1 %3971, %v819_v54   ;;  %851 = vperm.xlu0 %3970, %v818_v55   ;;  %v989_v22 = vld [vmem:[#allocation2 + $0x68] sm:$0xff]  ;;  %v1013_v23 = vld [vmem:[%s4134_s30 + $0x60] sm:$0xff]  ;;  %v1015_v27 = vld [vmem:[%s4134_s30 + $0x70] sm:$0xff] }
 0x157   : > { %3740 = vmatpush1.bf16.msra.mxu1 %v3739_v63  ;;  %3441 = vmatprep.mubr.msk.f32.mxu1 %vm1018_vm2, %v1007_v2  ;;  %v1014_v25 = vld [vmem:[%s4134_s30 + $0x68] sm:$0xff]  ;;  %v3751_v26 = vpack.c.bf16 %v989_v22, %v988_v21  ;;  %v990_v28 = vld [vmem:[#allocation2 + $0x70] sm:$0xff]  ;;  %v991_v29 = vld [vmem:[#allocation2 + $0x78] sm:$0xff] }
 0x158   : > { %3741 = vmatprep.subr.bf16.mxu1 %v4038_v51  ;;  %v1016_v30 = vld [vmem:[%s4134_s30 + $0x78] sm:$0xff]  ;;  %v3754_v31 = vpack.c.bf16 %v991_v29, %v990_v28  ;;  %v992_v32 = vld [vmem:[#allocation2 + $0x80] sm:$0xff]  ;;  %v993_v33 = vld [vmem:[#allocation2 + $0x88] sm:$0xff] }
 0x159   : > { %3442 = vmatmul.mubr.msk.f32.gmra.mrb[6].mxu1 %vm1018_vm2, %v1008_v3  ;;  %v3757_v34 = vpack.c.bf16 %v993_v33, %v992_v32  ;;  %v994_v35 = vld [vmem:[#allocation2 + $0x90] sm:$0xff]  ;;  %v995_v36 = vld [vmem:[#allocation2 + $0x98] sm:$0xff]  ;;  %v996_v38 = vld [vmem:[#allocation2 + $0xa0] sm:$0xff] }
 0x15a   : > { %860 = vperm.xlu1 %3971, %v821_v61   ;;  %857 = vperm.xlu0 %3970, %v820_v62   ;;  %v3760_v37 = vpack.c.bf16 %v995_v36, %v994_v35  ;;  %v997_v39 = vld [vmem:[#allocation2 + $0xa8] sm:$0xff]  ;;  %v998_v24 = vld [vmem:[#allocation2 + $0xb0] sm:$0xff]  ;;  %v999_v41 = vld [vmem:[#allocation2 + $0xb8] sm:$0xff]  ;;  %v829_v61 = vlaneseq }
 0x15b   : > { %3743 = vmatpush1.bf16.msra.mxu1 %v3742_v6  ;;  %3444 = vmatprep.mubr.msk.f32.mxu1 %vm1018_vm2, %v1009_v9  ;;  %v3763_v40 = vpack.c.bf16 %v997_v39, %v996_v38  ;;  %v3766_v42 = vpack.c.bf16 %v999_v41, %v998_v24  ;;  %v1000_v44 = vld [vmem:[#allocation2 + $0xc0] sm:$0xff]  ;;  %v1407_v46 = vld [vmem:[%s5599_s10 + $0x8] sm:$0xff]  ;;  %v1408_v48 = vld [vmem:[%s5599_s10 + $0x10] sm:$0xff]  ;;  %v4040_v9 = vmov 1.0  }
 0x15c   : > { %3744 = vmatprep.subr.bf16.mxu1 %v4038_v51  ;;  %v1406_v45 = vld [vmem:[%s5599_s10] sm:$0xff]  ;;  %v1409_v49 = vld [vmem:[%s5599_s10 + $0x18] sm:$0xff]  ;;  %v1411_v53 = vld [vmem:[%s5599_s10 + $0x28] sm:$0xff]  ;;  %v4571_v3 = vand.u32 127, %v829_v61 }
 0x15d   : > { %3445 = vmatmul.mubr.msk.f32.gmra.mrb[8].mxu1 %vm1018_vm2, %v1010_v10  ;;  %v3768_v47 = vpack.c.bf16 %v1407_v46, %v1406_v45  ;;  %v3772_v50 = vpack.c.bf16 %v1409_v49, %v1408_v48  ;;  %v1410_v52 = vld [vmem:[%s5599_s10 + $0x20] sm:$0xff]  ;;  %v1412_v55 = vld [vmem:[%s5599_s10 + $0x30] sm:$0xff]  ;;  %v1413_v56 = vld [vmem:[%s5599_s10 + $0x38] sm:$0xff] }
 0x15e   : > { %866 = vperm.xlu1 %3971, %v823_v4   ;;  %863 = vperm.xlu0 %3970, %v822_v5   ;;  %v3776_v54 = vpack.c.bf16 %v1411_v53, %v1410_v52  ;;  %v3780_v57 = vpack.c.bf16 %v1413_v56, %v1412_v55  ;;  %v1414_v58 = vld [vmem:[%s5599_s10 + $0x40] sm:$0xff]  ;;  %v1415_v59 = vld [vmem:[%s5599_s10 + $0x48] sm:$0xff]  ;;  %v1416_v62 = vld [vmem:[%s5599_s10 + $0x50] sm:$0xff]  ;;  %v4574_v5 = vadd.s32 128, %v4571_v3 }
 0x15f   : > { %3746 = vmatpush1.bf16.msra.mxu1 %v3745_v13  ;;  %3447 = vmatprep.mubr.msk.f32.mxu1 %vm1018_vm2, %v1011_v16  ;;  %v3784_v60 = vpack.c.bf16 %v1415_v59, %v1414_v58  ;;  %v1417_v63 = vld [vmem:[%s5599_s10 + $0x58] sm:$0xff]  ;;  %v1418_v1 = vld [vmem:[%s5599_s10 + $0x60] sm:$0xff]  ;;  %v1419_v2 = vld [vmem:[%s5599_s10 + $0x68] sm:$0xff] }
 0x160   : > { %3747 = vmatprep.subr.bf16.mxu1 %v4038_v51  ;;  %3769 = vmatprep.subr.bf16.mxu0 %v3768_v47  ;;  %v3788_v0 = vpack.c.bf16 %v1417_v63, %v1416_v62  ;;  %v3792_v4 = vpack.c.bf16 %v1419_v2, %v1418_v1  ;;  %v1421_v24 = vld [vmem:[%s5599_s10 + $0x78] sm:$0xff] }
 0x161   : > { %3448 = vmatmul.mubr.msk.f32.gmra.mrb[10].mxu1 %vm1018_vm2, %v1012_v17  ;;  %3771 = vmatpush3.bf16.msra.mxu0 %v3768_v47 }
 0x162   : > { %872 = vperm.xlu1 %3971, %v825_v11   ;;  %869 = vperm.xlu0 %3970, %v824_v12  }
 0x163   : > { %3749 = vmatpush1.bf16.msra.mxu1 %v3748_v20  ;;  %3450 = vmatprep.mubr.msk.f32.mxu1 %vm1018_vm2, %v1013_v23 }
 0x164   : > { %3750 = vmatprep.subr.bf16.mxu1 %v4038_v51  ;;  %3773 = vmatprep.subr.bf16.mxu0 %v3772_v50 }
 0x165   : > { %3451 = vmatmul.mubr.msk.f32.gmra.mrb[12].mxu1 %vm1018_vm2, %v1014_v25  ;;  %3775 = vmatpush3.bf16.msra.mxu0 %v3772_v50 }
 0x166   : > { %878 = vperm.xlu1 %3971, %v827_v18   ;;  %875 = vperm.xlu0 %3970, %v826_v19  }
 0x167   : > { %3453 = vmatprep.mubr.msk.f32.mxu1 %vm1018_vm2, %v1015_v27  ;;  %3752 = vmatpush1.bf16.msra.mxu1 %v3751_v26 }
 0x168   : > { %3753 = vmatprep.subr.bf16.mxu1 %v4038_v51  ;;  %3777 = vmatprep.subr.bf16.mxu0 %v3776_v54 }
 0x169   : > { %3454 = vmatmul.mubr.msk.f32.gmra.mrb[14].mxu1 %vm1018_vm2, %v1016_v30  ;;  %3779 = vmatpush3.bf16.msra.mxu0 %v3776_v54 }
 0x16a   : > { %3781 = vmatprep.subr.bf16.mxu0 %v3780_v57 }
 0x16b   : > { %3755 = vmatpush1.bf16.msra.mxu1 %v3754_v31 }
 0x16c   : > { %3756 = vmatprep.subr.bf16.mxu1 %v4038_v51 }
 0x16d   : > { %3783 = vmatpush3.bf16.msra.mxu0 %v3780_v57 }
 0x16e   : > { %3785 = vmatprep.subr.bf16.mxu0 %v3784_v60 }
 0x16f   : > { %3758 = vmatpush1.bf16.msra.mxu1 %v3757_v34 }
 0x170   : > { %3759 = vmatprep.subr.bf16.mxu1 %v4038_v51 }
 0x171   : > { %3787 = vmatpush3.bf16.msra.mxu0 %v3784_v60 }
 0x172   : > { %3789 = vmatprep.subr.bf16.mxu0 %v3788_v0 }
 0x173   : > { %3761 = vmatpush1.bf16.msra.mxu1 %v3760_v37 }
 0x174   : > { %3762 = vmatprep.subr.bf16.mxu1 %v4038_v51 }
 0x175   : > { %3791 = vmatpush3.bf16.msra.mxu0 %v3788_v0 }
 0x176   : > { %3793 = vmatprep.subr.bf16.mxu0 %v3792_v4 }
 0x177   : > { %3764 = vmatpush1.bf16.msra.mxu1 %v3763_v40  ;;  %v1420_v40 = vld [vmem:[%s5599_s10 + $0x70] sm:$0xff] }
 0x178   : > { %3765 = vmatprep.subr.bf16.mxu1 %v4038_v51  ;;  %v3796_v41 = vpack.c.bf16 %v1421_v24, %v1420_v40 }
 0x179   : > { %3795 = vmatpush3.bf16.msra.mxu0 %v3792_v4 }
 0x17a   : > { %3797 = vmatprep.subr.bf16.mxu0 %v3796_v41 }
 0x17b   : > { %3767 = vmatpush1.bf16.msra.mxu1 %v3766_v42 }
 0x17c   : > { %1309 = vmatprep.subr.mxu1 %v4039_v43 }
 0x17d   : > { %3799 = vmatpush3.bf16.msra.mxu0 %v3796_v41 }
 0x17e   : > { %3800 = vmatprep.subr.bf16.mxu0 %v4038_v51 }
 0x17f   : > { %1310 = vmatpush1.msra.mxu1 %v1000_v44 }
 0x180   : > { %3884 = vmatprep.subr.bf16.mxu1 %v4038_v51 }
 0x1c9   : > { %v834_v6 = vpop.permute.xlu0 %833  ;;  %v840_v7 = vpop.permute.xlu1 %839 }
 0x1ca   : > { %vm881_vm4 = vcmp.eq.s32.totalorder %v4574_v5, %v834_v6  ;;  %vm885_vm5 = vcmp.eq.s32.totalorder %v4574_v5, %v840_v7  ;;  %vm880_vm6 = vcmp.eq.s32.totalorder %v4571_v3, %v834_v6  ;;  %vm884_vm10 = vcmp.eq.s32.totalorder %v4571_v3, %v840_v7 }
 0x1cb   : > { %v3105_v8 = vsel %vm881_vm4, 1.0, %v4039_v43  ;;  %v3109_v11 = vsel %vm885_vm5, 1.0, %v4039_v43 }
 0x1cc   : > { %3152 = vmatprep.mubr.msk.f32.mxu1 %vm1212_vm3, %v3105_v8 }
 0x1cd   : > { %3153 = vmatmul.mubr.msk.f32.vlgmr.msra.gmra.mrb[16].mxu1 %vm880_vm6, %v4040_v9  ;;  %v837_v10 = vpop.permute.xlu0 %836  ;;  %v843_v13 = vpop.permute.xlu1 %842 }
 0x1ce   : > { %vm883_vm7 = vcmp.eq.s32.totalorder %v4574_v5, %v837_v10  ;;  %vm882_vm8 = vcmp.eq.s32.totalorder %v4571_v3, %v837_v10  ;;  %vm887_vm9 = vcmp.eq.s32.totalorder %v4574_v5, %v843_v13  ;;  %vm886_vm12 = vcmp.eq.s32.totalorder %v4571_v3, %v843_v13 }
 0x1cf   : > { %v3107_v12 = vsel %vm883_vm7, 1.0, %v4039_v43  ;;  %v3111_v15 = vsel %vm887_vm9, 1.0, %v4039_v43 }
 0x1d0   : > { %3154 = vmatprep.mubr.msk.f32.mxu1 %vm1212_vm3, %v3107_v12 }
 0x1d1   : > { %3155 = vmatmul.mubr.msk.f32.gmra.mrb[18].mxu1 %vm882_vm8, %v4040_v9  ;;  %v846_v14 = vpop.permute.xlu0 %845  ;;  %v849_v16 = vpop.permute.xlu1 %848 }
 0x1d2   : > { %3156 = vmatprep.mubr.msk.f32.mxu1 %vm1212_vm3, %v3109_v11  ;;  %vm889_vm11 = vcmp.eq.s32.totalorder %v4574_v5, %v846_v14  ;;  %vm891_vm13 = vcmp.eq.s32.totalorder %v4574_v5, %v849_v16  ;;  %vm888_vm14 = vcmp.eq.s32.totalorder %v4571_v3, %v846_v14  ;;  %vm890_vm0 = vcmp.eq.s32.totalorder %v4571_v3, %v849_v16 }
 0x1d3   : > { %v3113_v17 = vsel %vm889_vm11, 1.0, %v4039_v43  ;;  %v3115_v19 = vsel %vm891_vm13, 1.0, %v4039_v43 }
 0x1d5   : > { %3157 = vmatmul.mubr.msk.f32.gmra.mrb[20].mxu1 %vm884_vm10, %v4040_v9  ;;  %v852_v18 = vpop.permute.xlu0 %851  ;;  %v855_v20 = vpop.permute.xlu1 %854 }
 0x1d6   : > { %3158 = vmatprep.mubr.msk.f32.mxu1 %vm1212_vm3, %v3111_v15  ;;  %vm893_vm15 = vcmp.eq.s32.totalorder %v4574_v5, %v852_v18  ;;  %vm895_vm1 = vcmp.eq.s32.totalorder %v4574_v5, %v855_v20  ;;  %vm892_vm2 = vcmp.eq.s32.totalorder %v4571_v3, %v852_v18  ;;  %vm894_vm5 = vcmp.eq.s32.totalorder %v4571_v3, %v855_v20 }
 0x1d7   : > { %v3117_v21 = vsel %vm893_vm15, 1.0, %v4039_v43  ;;  %v3119_v23 = vsel %vm895_vm1, 1.0, %v4039_v43 }
 0x1d9   : > { %3159 = vmatmul.mubr.msk.f32.gmra.mrb[22].mxu1 %vm886_vm12, %v4040_v9  ;;  %v858_v22 = vpop.permute.xlu0 %857  ;;  %v861_v25 = vpop.permute.xlu1 %860 }
 0x1da   : > { %3160 = vmatprep.mubr.msk.f32.mxu1 %vm1212_vm3, %v3113_v17  ;;  %vm897_vm4 = vcmp.eq.s32.totalorder %v4574_v5, %v858_v22  ;;  %vm899_vm6 = vcmp.eq.s32.totalorder %v4574_v5, %v861_v25  ;;  %vm896_vm7 = vcmp.eq.s32.totalorder %v4571_v3, %v858_v22  ;;  %vm898_vm9 = vcmp.eq.s32.totalorder %v4571_v3, %v861_v25 }
 0x1db   : > { %v3121_v26 = vsel %vm897_vm4, 1.0, %v4039_v43  ;;  %v3123_v28 = vsel %vm899_vm6, 1.0, %v4039_v43  ;;  %vm1567_vm6 = vcmask 31744  }
 0x1dd   : > { %3161 = vmatmul.mubr.msk.f32.gmra.mrb[24].mxu1 %vm888_vm14, %v4040_v9  ;;  %v864_v27 = vpop.permute.xlu0 %863  ;;  %v867_v29 = vpop.permute.xlu1 %866 }
 0x1de   : > { %3162 = vmatprep.mubr.msk.f32.mxu1 %vm1212_vm3, %v3115_v19  ;;  %vm901_vm8 = vcmp.eq.s32.totalorder %v4574_v5, %v864_v27  ;;  %vm903_vm10 = vcmp.eq.s32.totalorder %v4574_v5, %v867_v29  ;;  %vm900_vm11 = vcmp.eq.s32.totalorder %v4571_v3, %v864_v27  ;;  %vm902_vm13 = vcmp.eq.s32.totalorder %v4571_v3, %v867_v29 }
 0x1df   : > { %v3125_v30 = vsel %vm901_vm8, 1.0, %v4039_v43  ;;  %v3127_v32 = vsel %vm903_vm10, 1.0, %v4039_v43 }
 0x1e1   : > { %3163 = vmatmul.mubr.msk.f32.gmra.mrb[26].mxu1 %vm890_vm0, %v4040_v9  ;;  %v870_v31 = vpop.permute.xlu0 %869  ;;  %v873_v33 = vpop.permute.xlu1 %872 }
 0x1e2   : > { %3164 = vmatprep.mubr.msk.f32.mxu1 %vm1212_vm3, %v3117_v21  ;;  %vm905_vm12 = vcmp.eq.s32.totalorder %v4574_v5, %v870_v31  ;;  %vm907_vm14 = vcmp.eq.s32.totalorder %v4574_v5, %v873_v33  ;;  %vm904_vm15 = vcmp.eq.s32.totalorder %v4571_v3, %v870_v31  ;;  %vm906_vm1 = vcmp.eq.s32.totalorder %v4571_v3, %v873_v33 }
 0x1e3   : > { %v3129_v34 = vsel %vm905_vm12, 1.0, %v4039_v43  ;;  %v3131_v36 = vsel %vm907_vm14, 1.0, %v4039_v43 }
 0x1e5   : > { %3165 = vmatmul.mubr.msk.f32.gmra.mrb[28].mxu1 %vm892_vm2, %v4040_v9  ;;  %v876_v35 = vpop.permute.xlu0 %875  ;;  %v879_v37 = vpop.permute.xlu1 %878 }
 0x1e6   : > { %3166 = vmatprep.mubr.msk.f32.mxu1 %vm1212_vm3, %v3119_v23  ;;  %vm909_vm0 = vcmp.eq.s32.totalorder %v4574_v5, %v876_v35  ;;  %vm911_vm2 = vcmp.eq.s32.totalorder %v4574_v5, %v879_v37  ;;  %vm908_vm4 = vcmp.eq.s32.totalorder %v4571_v3, %v876_v35 }
 0x1e7   : > { %v3133_v38 = vsel %vm909_vm0, 1.0, %v4039_v43  ;;  %v3135_v39 = vsel %vm911_vm2, 1.0, %v4039_v43 }
 0x1e9   : > { %3167 = vmatmul.mubr.msk.f32.gmra.mrb[30].mxu1 %vm894_vm5, %v4040_v9  ;;  %vm910_vm5 = vcmp.eq.s32.totalorder %v4571_v3, %v879_v37 }
 0x1ea   : > { %3168 = vmatprep.mubr.msk.f32.mxu1 %vm1212_vm3, %v3121_v26 }
 0x1ed   : > { %3169 = vmatmul.mubr.msk.f32.gmra.mrb[32].mxu1 %vm896_vm7, %v4040_v9 }
 0x1ee   : > { %3170 = vmatprep.mubr.msk.f32.mxu1 %vm1212_vm3, %v3123_v28 }
 0x1f1   : > { %3171 = vmatmul.mubr.msk.f32.gmra.mrb[34].mxu1 %vm898_vm9, %v4040_v9 }
 0x1f2   : > { %3172 = vmatprep.mubr.msk.f32.mxu1 %vm1212_vm3, %v3125_v30 }
 0x1f5   : > { %3173 = vmatmul.mubr.msk.f32.gmra.mrb[36].mxu1 %vm900_vm11, %v4040_v9 }
 0x1f6   : > { %3174 = vmatprep.mubr.msk.f32.mxu1 %vm1212_vm3, %v3127_v32 }
 0x1f9   : > { %3175 = vmatmul.mubr.msk.f32.gmra.mrb[38].mxu1 %vm902_vm13, %v4040_v9 }
 0x1fa   : > { %3176 = vmatprep.mubr.msk.f32.mxu1 %vm1212_vm3, %v3129_v34 }
 0x1fd   : > { %3177 = vmatmul.mubr.msk.f32.gmra.mrb[40].mxu1 %vm904_vm15, %v4040_v9 }
 0x1fe   : > { %3178 = vmatprep.mubr.msk.f32.mxu1 %vm1212_vm3, %v3131_v36 }
 0x201   : > { %3179 = vmatmul.mubr.msk.f32.gmra.mrb[42].mxu1 %vm906_vm1, %v4040_v9 }
 0x202   : > { %3180 = vmatprep.mubr.msk.f32.mxu1 %vm1212_vm3, %v3133_v38 }
 0x205   : > { %3181 = vmatmul.mubr.msk.f32.gmra.mrb[44].mxu1 %vm908_vm4, %v4040_v9 }
 0x206   : > { %3182 = vmatprep.mubr.msk.f32.mxu1 %vm1212_vm3, %v3135_v39  ;;  %vm4041_vm3 = vmmov 0  }
 0x209   : > { %3183 = vmatmul.mubr.msk.f32.gmra.mrb[46].mxu1 %vm910_vm5, %v4040_v9 }
 0x20a   : > { %3601 = vmatprep.mubr.msk.f32.mxu1 %vm4041_vm3, %v4039_v43 }
 0x220   : > { %v3434_v42 = vpop.f32.mrb[0].mxu1 }
 0x221   : > { %v1133_v44 = vpop.f32.mrb[1].mxu1 }
 0x224   : > { %v3437_v45 = vpop.f32.mrb[2].mxu1 }
 0x225   : > { %v1143_v46 = vpop.f32.mrb[3].mxu1 }
 0x228   : > { %v3440_v47 = vpop.f32.mrb[4].mxu1 }
 0x229   : > { %v1153_v48 = vpop.f32.mrb[5].mxu1 }
 0x22c   : > { %v3443_v49 = vpop.f32.mrb[6].mxu1 }
 0x22d   : > { %v1163_v50 = vpop.f32.mrb[7].mxu1 }
 0x230   : > { %v3446_v52 = vpop.f32.mrb[8].mxu1 }
 0x231   : > { %v1173_v53 = vpop.f32.mrb[9].mxu1 }
 0x234   : > { %v3449_v54 = vpop.f32.mrb[10].mxu1 }
 0x235   : > { %v1183_v55 = vpop.f32.mrb[11].mxu1 }
 0x238   : > { %v3452_v56 = vpop.f32.mrb[12].mxu1 }
 0x239   : > { %v1193_v57 = vpop.f32.mrb[13].mxu1 }
 0x23c   : > { %v4663_v58 = vpop.f32.mrb[14].mxu1 }
 0x23d   : > { %v1203_v59 = vpop.f32.mrb[15].mxu1 }
 0x2a0   : > { %v1327_v60 = vpop.f32.mrb[16].mxu1 }
 0x2a1   : > { %v1329_v62 = vpop.f32.mrb[17].mxu1  ;;  %v1328_v63 = vadd.f32 %v1327_v60, %v1133_v44 }
 0x2a3   : > { %3488 = vmatprep.mubr.f32.mxu0 %v1328_v63 }
 0x2a4   : > { %v1332_v0 = vpop.f32.mrb[18].mxu1 }
 0x2a5   : > { %v1333_v1 = vadd.f32 %v3434_v42, %v1332_v0  ;;  %v1334_v2 = vpop.f32.mrb[19].mxu1 }
 0x2a7   : > { %3489 = vmatmul.mubr.f32.vlgmr.msra.gmra.mrb[0].mxu0 %v1333_v1 }
 0x2a8   : > { %v1337_v4 = vpop.f32.mrb[20].mxu1 }
 0x2a9   : > { %v1338_v5 = vadd.f32 %v1337_v4, %v1143_v46  ;;  %v1339_v6 = vpop.f32.mrb[21].mxu1 }
 0x2ab   : > { %3491 = vmatprep.mubr.f32.mxu0 %v1338_v5 }
 0x2ac   : > { %v1342_v7 = vpop.f32.mrb[22].mxu1 }
 0x2ad   : > { %v1343_v8 = vadd.f32 %v3437_v45, %v1342_v7  ;;  %v1344_v10 = vpop.f32.mrb[23].mxu1 }
 0x2af   : > { %3492 = vmatmul.mubr.f32.gmra.mrb[2].mxu0 %v1343_v8 }
 0x2b0   : > { %v1347_v11 = vpop.f32.mrb[24].mxu1 }
 0x2b1   : > { %v1348_v12 = vadd.f32 %v1347_v11, %v1153_v48  ;;  %v1349_v13 = vpop.f32.mrb[25].mxu1 }
 0x2b3   : > { %3494 = vmatprep.mubr.f32.mxu0 %v1348_v12 }
 0x2b4   : > { %v1352_v14 = vpop.f32.mrb[26].mxu1 }
 0x2b5   : > { %v1353_v15 = vadd.f32 %v3440_v47, %v1352_v14  ;;  %v1354_v16 = vpop.f32.mrb[27].mxu1 }
 0x2b7   : > { %3495 = vmatmul.mubr.f32.gmra.mrb[4].mxu0 %v1353_v15 }
 0x2b8   : > { %v1357_v17 = vpop.f32.mrb[28].mxu1 }
 0x2b9   : > { %v1358_v18 = vadd.f32 %v1357_v17, %v1163_v50  ;;  %v1359_v19 = vpop.f32.mrb[29].mxu1 }
 0x2bb   : > { %3497 = vmatprep.mubr.f32.mxu0 %v1358_v18 }
 0x2bc   : > { %v1362_v20 = vpop.f32.mrb[30].mxu1 }
 0x2bd   : > { %v1363_v21 = vadd.f32 %v3443_v49, %v1362_v20  ;;  %v1364_v22 = vpop.f32.mrb[31].mxu1 }
 0x2bf   : > { %3498 = vmatmul.mubr.f32.gmra.mrb[6].mxu0 %v1363_v21 }
 0x2c0   : > { %v1367_v23 = vpop.f32.mrb[32].mxu1 }
 0x2c1   : > { %v1368_v25 = vadd.f32 %v1367_v23, %v1173_v53  ;;  %v1369_v26 = vpop.f32.mrb[33].mxu1  ;;  %v4699_v23 = vshrl.u32 %v829_v61, 7 }
 0x2c3   : > { %3500 = vmatprep.mubr.f32.mxu0 %v1368_v25  ;;  %v1605_v61 = vadd.s32 160, %v4699_v23 }
 0x2c4   : > { %v1372_v27 = vpop.f32.mrb[34].mxu1 }
 0x2c5   : > { %v1373_v28 = vadd.f32 %v3446_v52, %v1372_v27  ;;  %v1374_v29 = vpop.f32.mrb[35].mxu1 }
 0x2c7   : > { %3501 = vmatmul.mubr.f32.gmra.mrb[8].mxu0 %v1373_v28  ;;  %v1604_v28 = vadd.s32 152, %v4699_v23 }
 0x2c8   : > { %v1377_v30 = vpop.f32.mrb[36].mxu1 }
 0x2c9   : > { %v1378_v31 = vadd.f32 %v1377_v30, %v1183_v55  ;;  %v1379_v32 = vpop.f32.mrb[37].mxu1  ;;  %v4709_v30 = vld [vmem:[%s403_s23] ss:$0 sm:$0xff] }
 0x2ca   : > { %vm1614_vm7 = vcmp.eq.s32.totalorder %v4699_v23, %v4709_v30  ;;  %vm1633_vm8 = vcmp.eq.s32.totalorder %v1604_v28, %v4709_v30  ;;  %v1587_v32 = vadd.s32 16, %v4699_v23  ;;  %vm1634_vm10 = vcmp.eq.s32.totalorder %v1605_v61, %v4709_v30  ;;  %v1713_v61 = vld [vmem:[#allocation3 + $0xc0] sm:$0xff] }
 0x2cb   : > { %3503 = vmatprep.mubr.f32.mxu0 %v1378_v31 }
 0x2cc   : > { %v1382_v33 = vpop.f32.mrb[38].mxu1  ;;  %vm1616_vm11 = vcmp.eq.s32.totalorder %v1587_v32, %v4709_v30 }
 0x2cd   : > { %v1383_v34 = vadd.f32 %v3449_v54, %v1382_v33  ;;  %v1384_v35 = vpop.f32.mrb[39].mxu1  ;;  %v1606_v33 = vadd.s32 168, %v4699_v23 }
 0x2ce   : > { %v1607_v35 = vadd.s32 176, %v4699_v23 }
 0x2cf   : > { %3504 = vmatmul.mubr.f32.gmra.mrb[10].mxu0 %v1383_v34  ;;  %v1588_v34 = vadd.s32 24, %v4699_v23  ;;  %vm1635_vm12 = vcmp.eq.s32.totalorder %v1606_v33, %v4709_v30 }
 0x2d0   : > { %v1387_v36 = vpop.f32.mrb[40].mxu1  ;;  %vm1636_vm14 = vcmp.eq.s32.totalorder %v1607_v35, %v4709_v30 }
 0x2d1   : > { %v1388_v37 = vadd.f32 %v1387_v36, %v1193_v57  ;;  %v1389_v38 = vpop.f32.mrb[41].mxu1  ;;  %vm1617_vm13 = vcmp.eq.s32.totalorder %v1588_v34, %v4709_v30  ;;  %v1589_v36 = vadd.s32 32, %v4699_v23 }
 0x2d2   : > { %v1590_v38 = vadd.s32 40, %v4699_v23 }
 0x2d3   : > { %3506 = vmatprep.mubr.f32.mxu0 %v1388_v37  ;;  %v1608_v37 = vadd.s32 184, %v4699_v23  ;;  %vm1618_vm15 = vcmp.eq.s32.totalorder %v1589_v36, %v4709_v30 }
 0x2d4   : > { %v1392_v39 = vpop.f32.mrb[42].mxu1  ;;  %vm1619_vm1 = vcmp.eq.s32.totalorder %v1590_v38, %v4709_v30  ;;  %v1695_v38 = vld [vmem:[#allocation3 + $0x30] sm:$0xff] }
 0x2d5   : > { %v1393_v40 = vadd.f32 %v3452_v56, %v1392_v39  ;;  %v1394_v24 = vpop.f32.mrb[43].mxu1  ;;  %vm1637_vm0 = vcmp.eq.s32.totalorder %v1608_v37, %v4709_v30  ;;  %v1609_v39 = vadd.s32 192, %v4699_v23 }
 0x2d6   : > { %v1592_v24 = vadd.s32 56, %v4699_v23 }
 0x2d7   : > { %3507 = vmatmul.mubr.f32.gmra.mrb[12].mxu0 %v1393_v40  ;;  %v1591_v40 = vadd.s32 48, %v4699_v23  ;;  %vm1638_vm2 = vcmp.eq.s32.totalorder %v1609_v39, %v4709_v30 }
 0x2d8   : > { %v1397_v41 = vpop.f32.mrb[44].mxu1  ;;  %vm1621_vm5 = vcmp.eq.s32.totalorder %v1592_v24, %v4709_v30 }
 0x2d9   : > { %v1398_v42 = vadd.f32 %v1397_v41, %v1203_v59  ;;  %v1399_v44 = vpop.f32.mrb[45].mxu1  ;;  %vm1620_vm4 = vcmp.eq.s32.totalorder %v1591_v40, %v4709_v30  ;;  %v1593_v41 = vadd.s32 64, %v4699_v23 }
 0x2da   : > { %v1595_v44 = vadd.s32 80, %v4699_v23 }
 0x2db   : > { %3509 = vmatprep.mubr.f32.mxu0 %v1398_v42  ;;  %v1594_v42 = vadd.s32 72, %v4699_v23 }
 0x2dc   : > { %v1402_v45 = vpop.f32.mrb[46].mxu1 }
 0x2dd   : > { %v1403_v46 = vadd.f32 %v4663_v58, %v1402_v45  ;;  %v1404_v47 = vpop.f32.mrb[47].mxu1  ;;  %v1596_v45 = vadd.s32 88, %v4699_v23 }
 0x2de   : > { %v1598_v47 = vadd.s32 104, %v4699_v23 }
 0x2df   : > { %3510 = vmatmul.mubr.f32.gmra.mrb[14].mxu0 %v1403_v46  ;;  %v1597_v46 = vadd.s32 96, %v4699_v23 }
 0x2e0   : > { %3544 = vmatprep.mubr.msk.f32.mxu0 %vm4041_vm3, %v4039_v43 }
 0x37a   : > { %v3490_v48 = vpop.f32.mrb[0].mxu0 }
 0x37b   : > { %v1569_v49 = vsel %vm1567_vm6, %v3490_v48, 1.0  ;;  %v1488_v50 = vpop.f32.mrb[1].mxu0  ;;  %v1599_v48 = vadd.s32 112, %v4699_v23 }
 0x37c   : > { %v1568_v52 = vsel %vm1567_vm6, %v1488_v50, 1.0  ;;  %v1601_v50 = vadd.s32 128, %v4699_v23 }
 0x37d   : > { %v3801_v53 = vpack.c.bf16 %v1569_v49, %v1568_v52  ;;  %v1600_v49 = vadd.s32 120, %v4699_v23  ;;  %v1602_v52 = vadd.s32 136, %v4699_v23 }
 0x37f   : > { %3802 = vmatpush3.bf16.msra.mxu0 %v3801_v53  ;;  %3892 = vmatpush3.bf16.msra.mxu1 %v3801_v53  ;;  %v1603_v53 = vadd.s32 144, %v4699_v23 }
 0x380   : > { %3803 = vmatprep.subr.bf16.mxu0 %v4038_v51  ;;  %3885 = vmatprep.subr.bf16.mxu1 %v4038_v51 }
 0x382   : > { %v3493_v54 = vpop.f32.mrb[2].mxu0 }
 0x383   : > { %v1571_v55 = vsel %vm1567_vm6, %v3493_v54, 1.0  ;;  %v1498_v56 = vpop.f32.mrb[3].mxu0  ;;  %v1689_v54 = vld [vmem:[#allocation3] sm:$0xff] }
 0x384   : > { %v1570_v57 = vsel %vm1567_vm6, %v1498_v56, 1.0 }
 0x385   : > { %v3804_v58 = vpack.c.bf16 %v1571_v55, %v1570_v57  ;;  %v1708_v55 = vld [vmem:[#allocation3 + $0x98] sm:$0xff] }
 0x387   : > { %3805 = vmatpush3.bf16.msra.mxu0 %v3804_v58  ;;  %3893 = vmatpush3.bf16.msra.mxu1 %v3804_v58 }
 0x388   : > { %3806 = vmatprep.subr.bf16.mxu0 %v4038_v51  ;;  %3886 = vmatprep.subr.bf16.mxu1 %v4038_v51 }
 0x38a   : > { %v3496_v59 = vpop.f32.mrb[4].mxu0 }
 0x38b   : > { %v1573_v60 = vsel %vm1567_vm6, %v3496_v59, 1.0  ;;  %v1508_v62 = vpop.f32.mrb[5].mxu0 }
 0x38c   : > { %v1572_v63 = vsel %vm1567_vm6, %v1508_v62, 1.0 }
 0x38d   : > { %v3807_v0 = vpack.c.bf16 %v1573_v60, %v1572_v63  ;;  %v1690_v63 = vld [vmem:[#allocation3 + $0x8] sm:$0xff] }
 0x38f   : > { %3808 = vmatpush3.bf16.msra.mxu0 %v3807_v0  ;;  %3894 = vmatpush3.bf16.msra.mxu1 %v3807_v0  ;;  %v1709_v0 = vld [vmem:[#allocation3 + $0xa0] sm:$0xff] }
 0x390   : > { %3809 = vmatprep.subr.bf16.mxu0 %v4038_v51  ;;  %3887 = vmatprep.subr.bf16.mxu1 %v4038_v51 }
 0x392   : > { %v3499_v1 = vpop.f32.mrb[6].mxu0 }
 0x393   : > { %v1575_v2 = vsel %vm1567_vm6, %v3499_v1, 1.0  ;;  %v1518_v4 = vpop.f32.mrb[7].mxu0 }
 0x394   : > { %v1574_v5 = vsel %vm1567_vm6, %v1518_v4, 1.0 }
 0x395   : > { %v3810_v6 = vpack.c.bf16 %v1575_v2, %v1574_v5 }
 0x397   : > { %3811 = vmatpush3.bf16.msra.mxu0 %v3810_v6  ;;  %3895 = vmatpush3.bf16.msra.mxu1 %v3810_v6  ;;  %v1691_v6 = vld [vmem:[#allocation3 + $0x10] sm:$0xff] }
 0x398   : > { %3812 = vmatprep.subr.bf16.mxu0 %v4038_v51  ;;  %3888 = vmatprep.subr.bf16.mxu1 %v4038_v51 }
 0x39a   : > { %v3502_v7 = vpop.f32.mrb[8].mxu0 }
 0x39b   : > { %v1577_v8 = vsel %vm1567_vm6, %v3502_v7, 1.0  ;;  %v1528_v10 = vpop.f32.mrb[9].mxu0  ;;  %v1710_v7 = vld [vmem:[#allocation3 + $0xa8] sm:$0xff] }
 0x39c   : > { %v1576_v11 = vsel %vm1567_vm6, %v1528_v10, 1.0 }
 0x39d   : > { %v3813_v12 = vpack.c.bf16 %v1577_v8, %v1576_v11 }
 0x39f   : > { %3814 = vmatpush3.bf16.msra.mxu0 %v3813_v12  ;;  %3896 = vmatpush3.bf16.msra.mxu1 %v3813_v12 }
 0x3a0   : > { %3815 = vmatprep.subr.bf16.mxu0 %v4038_v51  ;;  %3889 = vmatprep.subr.bf16.mxu1 %v4038_v51 }
 0x3a2   : > { %v3505_v13 = vpop.f32.mrb[10].mxu0 }
 0x3a3   : > { %v1579_v14 = vsel %vm1567_vm6, %v3505_v13, 1.0  ;;  %v1538_v15 = vpop.f32.mrb[11].mxu0 }
 0x3a4   : > { %v1578_v16 = vsel %vm1567_vm6, %v1538_v15, 1.0  ;;  %v1692_v15 = vld [vmem:[#allocation3 + $0x18] sm:$0xff] }
 0x3a5   : > { %v3816_v17 = vpack.c.bf16 %v1579_v14, %v1578_v16  ;;  %v1711_v16 = vld [vmem:[#allocation3 + $0xb0] sm:$0xff] }
 0x3a7   : > { %3817 = vmatpush3.bf16.msra.mxu0 %v3816_v17  ;;  %3897 = vmatpush3.bf16.msra.mxu1 %v3816_v17 }
 0x3a8   : > { %3818 = vmatprep.subr.bf16.mxu0 %v4038_v51  ;;  %3890 = vmatprep.subr.bf16.mxu1 %v4038_v51 }
 0x3aa   : > { %v3508_v18 = vpop.f32.mrb[12].mxu0 }
 0x3ab   : > { %v1581_v19 = vsel %vm1567_vm6, %v3508_v18, 1.0  ;;  %v1548_v20 = vpop.f32.mrb[13].mxu0 }
 0x3ac   : > { %v1580_v21 = vsel %vm1567_vm6, %v1548_v20, 1.0 }
 0x3ad   : > { %v3819_v22 = vpack.c.bf16 %v1581_v19, %v1580_v21 }
 0x3af   : > { %3820 = vmatpush3.bf16.msra.mxu0 %v3819_v22  ;;  %3898 = vmatpush3.bf16.msra.mxu1 %v3819_v22 }
 0x3b0   : > { %3821 = vmatprep.subr.bf16.mxu0 %v4038_v51  ;;  %3891 = vmatprep.subr.bf16.mxu1 %v4038_v51  ;;  %v1586_v51 = vadd.s32 8, %v4699_v23  ;;  %v1693_v23 = vld [vmem:[#allocation3 + $0x20] sm:$0xff] }
 0x3b2   : > { %v3511_v25 = vpop.f32.mrb[14].mxu0  ;;  %vm1615_vm9 = vcmp.eq.s32.totalorder %v1586_v51, %v4709_v30  ;;  %v1694_v51 = vld [vmem:[#allocation3 + $0x28] sm:$0xff] }
 0x3b3   : > { %v1583_v26 = vsel %vm1567_vm6, %v3511_v25, 1.0  ;;  %v1558_v27 = vpop.f32.mrb[15].mxu0  ;;  %v1712_v25 = vld [vmem:[#allocation3 + $0xb8] sm:$0xff] }
 0x3b4   : > { %v1582_v29 = vsel %vm1567_vm6, %v1558_v27, 1.0 }
 0x3b5   : > { %v3822_v31 = vpack.c.bf16 %v1583_v26, %v1582_v29 }
 0x3b7   : > { %3823 = vmatpush3.bf16.msra.mxu0 %v3822_v31  ;;  %3899 = vmatpush3.bf16.msra.mxu1 %v3822_v31 }
 0x3ba   : > { %3545 = vmatmul.mubr.msk.f32.vlgmr.msra.gmra.mrb[16].mxu0 %vm1614_vm7, %v4040_v9  ;;  %3602 = vmatmul.mubr.msk.f32.vlgmr.msra.gmra.mrb[48].mxu1 %vm1633_vm8, %v4040_v9  ;;  %vm1622_vm7 = vcmp.eq.s32.totalorder %v1593_v41, %v4709_v30  ;;  %vm1623_vm8 = vcmp.eq.s32.totalorder %v1594_v42, %v4709_v30  ;;  %v1696_v41 = vld [vmem:[#allocation3 + $0x38] sm:$0xff] }
 0x3bb   : > { %3547 = vmatprep.mubr.msk.f32.mxu0 %vm4041_vm3, %v4039_v43  ;;  %3604 = vmatprep.mubr.msk.f32.mxu1 %vm4041_vm3, %v4039_v43 }
 0x3be   : > { %3548 = vmatmul.mubr.msk.f32.gmra.mrb[18].mxu0 %vm1615_vm9, %v4040_v9  ;;  %3605 = vmatmul.mubr.msk.f32.gmra.mrb[50].mxu1 %vm1634_vm10, %v4040_v9  ;;  %vm1624_vm9 = vcmp.eq.s32.totalorder %v1595_v44, %v4709_v30  ;;  %vm1625_vm10 = vcmp.eq.s32.totalorder %v1596_v45, %v4709_v30 }
 0x3bf   : > { %3550 = vmatprep.mubr.msk.f32.mxu0 %vm4041_vm3, %v4039_v43  ;;  %3607 = vmatprep.mubr.msk.f32.mxu1 %vm4041_vm3, %v4039_v43 }
 0x3c2   : > { %3551 = vmatmul.mubr.msk.f32.gmra.mrb[20].mxu0 %vm1616_vm11, %v4040_v9  ;;  %3608 = vmatmul.mubr.msk.f32.gmra.mrb[52].mxu1 %vm1635_vm12, %v4040_v9  ;;  %vm1626_vm11 = vcmp.eq.s32.totalorder %v1597_v46, %v4709_v30  ;;  %vm1627_vm12 = vcmp.eq.s32.totalorder %v1598_v47, %v4709_v30  ;;  %v1697_v46 = vld [vmem:[#allocation3 + $0x40] sm:$0xff] }
 0x3c3   : > { %3553 = vmatprep.mubr.msk.f32.mxu0 %vm4041_vm3, %v4039_v43  ;;  %3610 = vmatprep.mubr.msk.f32.mxu1 %vm4041_vm3, %v4039_v43 }
 0x3c6   : > { %3554 = vmatmul.mubr.msk.f32.gmra.mrb[22].mxu0 %vm1617_vm13, %v4040_v9  ;;  %3611 = vmatmul.mubr.msk.f32.gmra.mrb[54].mxu1 %vm1636_vm14, %v4040_v9  ;;  %vm1628_vm13 = vcmp.eq.s32.totalorder %v1599_v48, %v4709_v30  ;;  %vm1629_vm14 = vcmp.eq.s32.totalorder %v1600_v49, %v4709_v30 }
 0x3c7   : > { %3556 = vmatprep.mubr.msk.f32.mxu0 %vm4041_vm3, %v4039_v43  ;;  %3613 = vmatprep.mubr.msk.f32.mxu1 %vm4041_vm3, %v4039_v43 }
 0x3ca   : > { %3557 = vmatmul.mubr.msk.f32.gmra.mrb[24].mxu0 %vm1618_vm15, %v4040_v9  ;;  %3614 = vmatmul.mubr.msk.f32.gmra.mrb[56].mxu1 %vm1637_vm0, %v4040_v9  ;;  %vm1630_vm15 = vcmp.eq.s32.totalorder %v1601_v50, %v4709_v30  ;;  %vm1631_vm0 = vcmp.eq.s32.totalorder %v1602_v52, %v4709_v30  ;;  %v1698_v50 = vld [vmem:[#allocation3 + $0x48] sm:$0xff] }
 0x3cb   : > { %3559 = vmatprep.mubr.msk.f32.mxu0 %vm4041_vm3, %v4039_v43  ;;  %3616 = vmatprep.mubr.msk.f32.mxu1 %vm4041_vm3, %v4039_v43 }
 0x3ce   : > { %3560 = vmatmul.mubr.msk.f32.gmra.mrb[26].mxu0 %vm1619_vm1, %v4040_v9  ;;  %3617 = vmatmul.mubr.msk.f32.gmra.mrb[58].mxu1 %vm1638_vm2, %v4040_v9  ;;  %vm1632_vm1 = vcmp.eq.s32.totalorder %v1603_v53, %v4709_v30  ;;  %vm1929_vm2 = vcmask 39936  }
 0x3cf   : > { %3562 = vmatprep.mubr.msk.f32.mxu0 %vm4041_vm3, %v4039_v43 }
 0x3d2   : > { %3563 = vmatmul.mubr.msk.f32.gmra.mrb[28].mxu0 %vm1620_vm4, %v4040_v9  ;;  %vm2433_vm4 = vcmask (!%p3235_p6), 523264  }
 0x3d3   : > { %3565 = vmatprep.mubr.msk.f32.mxu0 %vm4041_vm3, %v4039_v43 }
 0x3d6   : > { %3566 = vmatmul.mubr.msk.f32.gmra.mrb[30].mxu0 %vm1621_vm5, %v4040_v9  ;;  %vm2776_vm5 = vcmask (!%p3235_p6), 1041408  }
 0x3d7   : > { %3568 = vmatprep.mubr.msk.f32.mxu0 %vm4041_vm3, %v4039_v43 }
 0x3da   : > { %3569 = vmatmul.mubr.msk.f32.gmra.mrb[32].mxu0 %vm1622_vm7, %v4040_v9  ;;  %vm2700_vm7 = vcmask (!%p3235_p6), 15360  }
 0x3db   : > { %3571 = vmatprep.mubr.msk.f32.mxu0 %vm4041_vm3, %v4039_v43 }
 0x3de   : > { %3572 = vmatmul.mubr.msk.f32.gmra.mrb[34].mxu0 %vm1623_vm8, %v4040_v9 }
 0x3df   : > { %3574 = vmatprep.mubr.msk.f32.mxu0 %vm4041_vm3, %v4039_v43 }
 0x3e2   : > { %3575 = vmatmul.mubr.msk.f32.gmra.mrb[36].mxu0 %vm1624_vm9, %v4040_v9 }
 0x3e3   : > { %3577 = vmatprep.mubr.msk.f32.mxu0 %vm4041_vm3, %v4039_v43 }
 0x3e6   : > { %3578 = vmatmul.mubr.msk.f32.gmra.mrb[38].mxu0 %vm1625_vm10, %v4040_v9 }
 0x3e7   : > { %3580 = vmatprep.mubr.msk.f32.mxu0 %vm4041_vm3, %v4039_v43 }
 0x3ea   : > { %3581 = vmatmul.mubr.msk.f32.gmra.mrb[40].mxu0 %vm1626_vm11, %v4040_v9 }
 0x3eb   : > { %3583 = vmatprep.mubr.msk.f32.mxu0 %vm4041_vm3, %v4039_v43 }
 0x3ee   : > { %3584 = vmatmul.mubr.msk.f32.gmra.mrb[42].mxu0 %vm1627_vm12, %v4040_v9 }
 0x3ef   : > { %3586 = vmatprep.mubr.msk.f32.mxu0 %vm4041_vm3, %v4039_v43 }
 0x3f2   : > { %3587 = vmatmul.mubr.msk.f32.gmra.mrb[44].mxu0 %vm1628_vm13, %v4040_v9 }
 0x3f3   : > { %3589 = vmatprep.mubr.msk.f32.mxu0 %vm4041_vm3, %v4039_v43 }
 0x3f6   : > { %3590 = vmatmul.mubr.msk.f32.gmra.mrb[46].mxu0 %vm1629_vm14, %v4040_v9 }
 0x3f7   : > { %3592 = vmatprep.mubr.msk.f32.mxu0 %vm4041_vm3, %v4039_v43 }
 0x3fa   : > { %3593 = vmatmul.mubr.msk.f32.gmra.mrb[48].mxu0 %vm1630_vm15, %v4040_v9 }
 0x3fb   : > { %3595 = vmatprep.mubr.msk.f32.mxu0 %vm4041_vm3, %v4039_v43 }
 0x3fe   : > { %3596 = vmatmul.mubr.msk.f32.gmra.mrb[50].mxu0 %vm1631_vm0, %v4040_v9 }
 0x3ff   : > { %3598 = vmatprep.mubr.msk.f32.mxu0 %vm4041_vm3, %v4039_v43  ;;  %vm4045_vm3 = vmmov (!%p3235_p6), 0  }
 0x402   : > { %3599 = vmatmul.mubr.msk.f32.gmra.mrb[52].mxu0 %vm1632_vm1, %v4040_v9 }
 0x48d   : > { %v1780_v56 = vpop.f32.mrb[16].mxu0  ;;  %v1875_v57 = vpop.f32.mrb[48].mxu1 }
 0x48e   : > { %v1904_v58 = vadd.f32 %v1780_v56, %v1689_v54  ;;  %v3546_v59 = vpop.f32.mrb[17].mxu0  ;;  %v1923_v60 = vadd.f32 %v1875_v57, %v1708_v55  ;;  %v3603_v62 = vpop.f32.mrb[49].mxu1  ;;  %v1699_v55 = vld [vmem:[#allocation3 + $0x50] sm:$0xff] }
 0x48f   : > { %v1700_v59 = vld [vmem:[#allocation3 + $0x58] sm:$0xff] }
 0x490   : > { %1930 = vst.msk [vmem:[#allocation3] sm:$0xff] %vm1929_vm2, %v1904_v58  ;;  %1949 = vst.msk [vmem:[#allocation3 + $0x98] sm:$0xff] %vm1929_vm2, %v1923_v60 }
 0x491   : > { %v1785_v43 = vpop.f32.mrb[18].mxu0  ;;  %v1880_v1 = vpop.f32.mrb[50].mxu1 }
 0x492   : > { %v1905_v2 = vadd.f32 %v1785_v43, %v1690_v63  ;;  %v3549_v4 = vpop.f32.mrb[19].mxu0  ;;  %v1924_v9 = vadd.f32 %v1880_v1, %v1709_v0  ;;  %v3606_v5 = vpop.f32.mrb[51].mxu1  ;;  %v1701_v0 = vld [vmem:[#allocation3 + $0x60] sm:$0xff] }
 0x493   : > { %v1702_v4 = vld [vmem:[#allocation3 + $0x68] sm:$0xff] }
 0x494   : > { %1931 = vst.msk [vmem:[#allocation3 + $0x8] sm:$0xff] %vm1929_vm2, %v1905_v2  ;;  %1950 = vst.msk [vmem:[#allocation3 + $0xa0] sm:$0xff] %vm1929_vm2, %v1924_v9 }
 0x495   : > { %v1790_v8 = vpop.f32.mrb[20].mxu0  ;;  %v1885_v10 = vpop.f32.mrb[52].mxu1 }
 0x496   : > { %v1906_v11 = vadd.f32 %v1790_v8, %v1691_v6  ;;  %v3552_v12 = vpop.f32.mrb[21].mxu0  ;;  %v1925_v13 = vadd.f32 %v1885_v10, %v1710_v7  ;;  %v3609_v14 = vpop.f32.mrb[53].mxu1  ;;  %v1703_v7 = vld [vmem:[#allocation3 + $0x70] sm:$0xff] }
 0x497   : > { %v1704_v12 = vld [vmem:[#allocation3 + $0x78] sm:$0xff] }
 0x498   : > { %1932 = vst.msk [vmem:[#allocation3 + $0x10] sm:$0xff] %vm1929_vm2, %v1906_v11  ;;  %1951 = vst.msk [vmem:[#allocation3 + $0xa8] sm:$0xff] %vm1929_vm2, %v1925_v13 }
 0x499   : > { %v1795_v17 = vpop.f32.mrb[22].mxu0  ;;  %v1890_v18 = vpop.f32.mrb[54].mxu1 }
 0x49a   : > { %v1907_v19 = vadd.f32 %v1795_v17, %v1692_v15  ;;  %v3555_v20 = vpop.f32.mrb[23].mxu0  ;;  %v1926_v21 = vadd.f32 %v1890_v18, %v1711_v16  ;;  %v3612_v22 = vpop.f32.mrb[55].mxu1  ;;  %v1705_v16 = vld [vmem:[#allocation3 + $0x80] sm:$0xff] }
 0x49b   : > { %v1706_v20 = vld [vmem:[#allocation3 + $0x88] sm:$0xff] }
 0x49c   : > { %1933 = vst.msk [vmem:[#allocation3 + $0x18] sm:$0xff] %vm1929_vm2, %v1907_v19  ;;  %1952 = vst.msk [vmem:[#allocation3 + $0xb0] sm:$0xff] %vm1929_vm2, %v1926_v21 }
 0x49d   : > { %v1800_v26 = vpop.f32.mrb[24].mxu0  ;;  %v1895_v27 = vpop.f32.mrb[56].mxu1 }
 0x49e   : > { %v1908_v28 = vadd.f32 %v1800_v26, %v1693_v23  ;;  %v3558_v29 = vpop.f32.mrb[25].mxu0  ;;  %v1927_v30 = vadd.f32 %v1895_v27, %v1712_v25  ;;  %v3615_v31 = vpop.f32.mrb[57].mxu1  ;;  %v1707_v25 = vld [vmem:[#allocation3 + $0x90] sm:$0xff] }
 0x49f   : > { %v2186_v29 = vld [vmem:[%s5593_s4 + $0x10] sm:$0xff] (!%p3235_p6)  ;;  %v4042_v31 = vmov (!%p3235_p6), 0  }
 0x4a0   : > { %1934 = vst.msk [vmem:[#allocation3 + $0x20] sm:$0xff] %vm1929_vm2, %v1908_v28  ;;  %1953 = vst.msk [vmem:[#allocation3 + $0xb8] sm:$0xff] %vm1929_vm2, %v1927_v30  ;;  %v2184_v30 = vld [vmem:[%s5593_s4] sm:$0xff] (!%p3235_p6)  ;;  %3973 = vset.pattern.permute.xlu1 (!%p3235_p6), %v4042_v31  ;;  %3972 = vset.pattern.permute.xlu0 (!%p3235_p6), %v4042_v31 }
 0x4a1   : > { %v1805_v32 = vpop.f32.mrb[26].mxu0  ;;  %v1900_v33 = vpop.f32.mrb[58].mxu1  ;;  %2216 = vperm.xlu1 (!%p3235_p6), %3973, %v2186_v29   ;;  %2210 = vperm.xlu0 (!%p3235_p6), %3972, %v2184_v30   ;;  %v2431_v29 = vld [vmem:[%s5598_s9 + $0xb0] sm:$0xff] (!%p3235_p6)  ;;  %v2432_v30 = vld [vmem:[%s5598_s9 + $0xb8] sm:$0xff] (!%p3235_p6) }
 0x4a2   : > { %v1909_v34 = vadd.f32 %v1805_v32, %v1694_v51  ;;  %v3561_v35 = vpop.f32.mrb[27].mxu0  ;;  %v1928_v36 = vadd.f32 %v1900_v33, %v1713_v61  ;;  %v3618_v37 = vpop.f32.mrb[59].mxu1  ;;  %v2187_v51 = vld [vmem:[%s5593_s4 + $0x18] sm:$0xff] (!%p3235_p6)  ;;  %v2185_v61 = vld [vmem:[%s5593_s4 + $0x8] sm:$0xff] (!%p3235_p6)  ;;  %v4043_v32 = vmov (!%p3235_p6), 0.0|0.0   ;;  %v4044_v33 = vmov (!%p3235_p6), 0.0  }
 0x4a3   : > { %3824 = vmatprep.subr.bf16.mxu1 (!%p3235_p6), %v4043_v32  ;;  %3619 = vmatprep.subr.mxu0 (!%p3235_p6), %v4044_v33  ;;  %v2189_v35 = vld [vmem:[%s5593_s4 + $0x28] sm:$0xff] (!%p3235_p6) }
 0x4a4   : > { %1935 = vst.msk [vmem:[#allocation3 + $0x28] sm:$0xff] %vm1929_vm2, %v1909_v34  ;;  %1954 = vst.msk [vmem:[#allocation3 + $0xc0] sm:$0xff] %vm1929_vm2, %v1928_v36  ;;  %3621 = vmatprep.mubr.msk.f32.mxu0 (!%p3235_p6), %vm4045_vm3, %v4044_v33  ;;  %v2409_v34 = vld [vmem:[%s5598_s9] sm:$0xff] (!%p3235_p6)  ;;  %v2410_v37 = vld [vmem:[%s5598_s9 + $0x8] sm:$0xff] (!%p3235_p6) }
 0x4a5   : > { %v1810_v39 = vpop.f32.mrb[28].mxu0  ;;  %2219 = vperm.xlu1 (!%p3235_p6), %3973, %v2187_v51   ;;  %2213 = vperm.xlu0 (!%p3235_p6), %3972, %v2185_v61   ;;  %v2188_v36 = vld [vmem:[%s5593_s4 + $0x20] sm:$0xff] (!%p3235_p6)  ;;  %v3858_v51 = vpack.c.bf16 (!%p3235_p6), %v2432_v30, %v2431_v29 }
 0x4a6   : > { %v1910_v40 = vadd.f32 %v1810_v39, %v1695_v38  ;;  %v3564_v24 = vpop.f32.mrb[29].mxu0  ;;  %v3825_v38 = vpack.c.bf16 (!%p3235_p6), %v2410_v37, %v2409_v34  ;;  %v2411_v39 = vld [vmem:[%s5598_s9 + $0x10] sm:$0xff] (!%p3235_p6)  ;;  %v2359_v61 = vld [vmem:[%s5589_s0] sm:$0xff] (!%p3235_p6)  ;;  %v2362_v34 = vld [vmem:[%s5589_s0 + $0x18] sm:$0xff] (!%p3235_p6) }
 0x4a7   : > { %v2191_v24 = vld [vmem:[%s5593_s4 + $0x38] sm:$0xff] (!%p3235_p6) }
 0x4a8   : > { %1936 = vst.msk [vmem:[#allocation3 + $0x30] sm:$0xff] %vm1929_vm2, %v1910_v40  ;;  %v2412_v40 = vld [vmem:[%s5598_s9 + $0x18] sm:$0xff] (!%p3235_p6)  ;;  %3826 = vmatpush1.bf16.msra.mxu1 (!%p3235_p6), %v3825_v38  ;;  %v2365_v38 = vld [vmem:[%s5589_s0 + $0x30] sm:$0xff] (!%p3235_p6) }
 0x4a9   : > { %v1815_v42 = vpop.f32.mrb[30].mxu0  ;;  %2225 = vperm.xlu1 (!%p3235_p6), %3973, %v2189_v35   ;;  %2222 = vperm.xlu0 (!%p3235_p6), %3972, %v2188_v36   ;;  %v2361_v35 = vld [vmem:[%s5589_s0 + $0x10] sm:$0xff] (!%p3235_p6)  ;;  %v2363_v36 = vld [vmem:[%s5589_s0 + $0x20] sm:$0xff] (!%p3235_p6)  ;;  %v2366_v37 = vld [vmem:[%s5589_s0 + $0x38] sm:$0xff] (!%p3235_p6) }
 0x4aa   : > { %v1911_v44 = vadd.f32 %v1815_v42, %v1696_v41  ;;  %v3567_v45 = vpop.f32.mrb[31].mxu0  ;;  %v2190_v41 = vld [vmem:[%s5593_s4 + $0x30] sm:$0xff] (!%p3235_p6)  ;;  %v3828_v42 = vpack.c.bf16 (!%p3235_p6), %v2412_v40, %v2411_v39  ;;  %3827 = vmatprep.subr.bf16.mxu1 (!%p3235_p6), %v4043_v32  ;;  %v2368_v39 = vld [vmem:[%s5589_s0 + $0x48] sm:$0xff] (!%p3235_p6) }
 0x4ab   : > { %v2414_v45 = vld [vmem:[%s5598_s9 + $0x28] sm:$0xff] (!%p3235_p6) }
 0x4ac   : > { %1937 = vst.msk [vmem:[#allocation3 + $0x38] sm:$0xff] %vm1929_vm2, %v1911_v44  ;;  %v2413_v44 = vld [vmem:[%s5598_s9 + $0x20] sm:$0xff] (!%p3235_p6)  ;;  %3829 = vmatpush1.bf16.msra.mxu1 (!%p3235_p6), %v3828_v42  ;;  %v5055_v40 = vld [vmem:[#allocation3] sm:$0xff] (!%p3235_p6)  ;;  %v2370_v42 = vld [vmem:[%s5589_s0 + $0x58] sm:$0xff] (!%p3235_p6) }
 0x4ad   : > { %v1820_v47 = vpop.f32.mrb[32].mxu0  ;;  %2231 = vperm.xlu1 (!%p3235_p6), %3973, %v2191_v24   ;;  %2228 = vperm.xlu0 (!%p3235_p6), %3972, %v2190_v41   ;;  %v2367_v24 = vld [vmem:[%s5589_s0 + $0x40] sm:$0xff] (!%p3235_p6)  ;;  %v1984_v41 = vmax.f32 (!%p3235_p6), %v5055_v40, 1.0 }
 0x4ae   : > { %v1912_v48 = vadd.f32 %v1820_v47, %v1697_v46  ;;  %v3570_v49 = vpop.f32.mrb[33].mxu0  ;;  %v2193_v46 = vld [vmem:[%s5593_s4 + $0x48] sm:$0xff] (!%p3235_p6)  ;;  %v2192_v47 = vld [vmem:[%s5593_s4 + $0x40] sm:$0xff] (!%p3235_p6)  ;;  %3830 = vmatprep.subr.bf16.mxu1 (!%p3235_p6), %v4043_v32 }
 0x4af   : > { %v2415_v49 = vld [vmem:[%s5598_s9 + $0x30] sm:$0xff] (!%p3235_p6)  ;;  %3977 = vrcp.f32 (!%p3235_p6), %v1984_v41 }
 0x4b0   : > { %1938 = vst.msk [vmem:[#allocation3 + $0x40] sm:$0xff] %vm1929_vm2, %v1912_v48  ;;  %v3831_v48 = vpack.c.bf16 (!%p3235_p6), %v2414_v45, %v2413_v44  ;;  %v5065_v44 = vld [vmem:[#allocation3 + $0x8] sm:$0xff] (!%p3235_p6)  ;;  %v5067_v45 = vld [vmem:[#allocation3 + $0x10] sm:$0xff] (!%p3235_p6) }
 0x4b1   : > { %v1825_v52 = vpop.f32.mrb[34].mxu0  ;;  %2237 = vperm.xlu1 (!%p3235_p6), %3973, %v2193_v46   ;;  %2234 = vperm.xlu0 (!%p3235_p6), %3972, %v2192_v47   ;;  %v2369_v46 = vld [vmem:[%s5589_s0 + $0x50] sm:$0xff] (!%p3235_p6)  ;;  %v1985_v47 = vmax.f32 (!%p3235_p6), %v5065_v44, 1.0 }
 0x4b2   : > { %v1913_v53 = vadd.f32 %v1825_v52, %v1698_v50  ;;  %v3573_v54 = vpop.f32.mrb[35].mxu0  ;;  %v2416_v50 = vld [vmem:[%s5598_s9 + $0x38] sm:$0xff] (!%p3235_p6)  ;;  %v2360_v52 = vld [vmem:[%s5589_s0 + $0x8] sm:$0xff] (!%p3235_p6)  ;;  %3832 = vmatpush1.bf16.msra.mxu1 (!%p3235_p6), %v3831_v48  ;;  %v1986_v48 = vmax.f32 (!%p3235_p6), %v5067_v45, 1.0 }
 0x4b3   : > { %3261 = vmatprep.mubr.msk.f32.mxu1 (!%p3235_p6), %vm2433_vm4, %v2360_v52  ;;  %v2194_v54 = vld [vmem:[%s5593_s4 + $0x50] sm:$0xff] (!%p3235_p6)  ;;  %3833 = vmatprep.subr.bf16.mxu1 (!%p3235_p6), %v4043_v32  ;;  %3979 = vrcp.f32 (!%p3235_p6), %v1985_v47  ;;  %v2371_v52 = vld [vmem:[%s5589_s0 + $0x60] sm:$0xff] (!%p3235_p6) }
 0x4b4   : > { %1939 = vst.msk [vmem:[#allocation3 + $0x48] sm:$0xff] %vm1929_vm2, %v1913_v53  ;;  %v2195_v53 = vld [vmem:[%s5593_s4 + $0x58] sm:$0xff] (!%p3235_p6)  ;;  %3981 = vrcp.f32 (!%p3235_p6), %v1986_v48  ;;  %v5174_v48 = vld [vmem:[#allocation3 + $0x98] sm:$0xff] (!%p3235_p6) }
 0x4b5   : > { %v1830_v56 = vpop.f32.mrb[36].mxu0  ;;  %2243 = vperm.xlu1 (!%p3235_p6), %3973, %v2195_v53   ;;  %2240 = vperm.xlu0 (!%p3235_p6), %3972, %v2194_v54   ;;  %v2374_v54 = vld [vmem:[%s5589_s0 + $0x78] sm:$0xff] (!%p3235_p6) }
 0x4b6   : > { %v1914_v57 = vadd.f32 %v1830_v56, %v1699_v55  ;;  %v3576_v58 = vpop.f32.mrb[37].mxu0  ;;  %v3834_v55 = vpack.c.bf16 (!%p3235_p6), %v2416_v50, %v2415_v49  ;;  %v2417_v56 = vld [vmem:[%s5598_s9 + $0x40] sm:$0xff] (!%p3235_p6)  ;;  %v2372_v49 = vld [vmem:[%s5589_s0 + $0x68] sm:$0xff] (!%p3235_p6) }
 0x4b7   : > { %v2197_v58 = vld [vmem:[%s5593_s4 + $0x68] sm:$0xff] (!%p3235_p6)  ;;  %v5078_v50 = vld [vmem:[#allocation3 + $0x18] sm:$0xff] (!%p3235_p6) }
 0x4b8   : > { %1940 = vst.msk [vmem:[#allocation3 + $0x50] sm:$0xff] %vm1929_vm2, %v1914_v57  ;;  %v2418_v57 = vld [vmem:[%s5598_s9 + $0x48] sm:$0xff] (!%p3235_p6)  ;;  %3835 = vmatpush1.bf16.msra.mxu1 (!%p3235_p6), %v3834_v55  ;;  %v1987_v53 = vmax.f32 (!%p3235_p6), %v5078_v50, 1.0  ;;  %v4046_v55 = vmov (!%p3235_p6), 4  }
 0x4b9   : > { %v1835_v60 = vpop.f32.mrb[38].mxu0  ;;  %3836 = vmatprep.subr.bf16.mxu1 (!%p3235_p6), %v4043_v32  ;;  %2249 = vperm.xlu1 (!%p3235_p6), %3973, %v2197_v58   ;;  %v3978_v58 = vpop.eup (!%p3235_p6), %3977 }
 0x4ba   : > { %v1915_v62 = vadd.f32 %v1835_v60, %v1700_v59  ;;  %v3579_v63 = vpop.f32.mrb[39].mxu0  ;;  %v2196_v59 = vld [vmem:[%s5593_s4 + $0x60] sm:$0xff] (!%p3235_p6)  ;;  %v3837_v60 = vpack.c.bf16 (!%p3235_p6), %v2418_v57, %v2417_v56  ;;  %3983 = vrcp.f32 (!%p3235_p6), %v1987_v53  ;;  %v5088_v56 = vld [vmem:[#allocation3 + $0x20] sm:$0xff] (!%p3235_p6)  ;;  %v5090_v57 = vld [vmem:[#allocation3 + $0x28] sm:$0xff] (!%p3235_p6) }
 0x4bb   : > { %v2420_v63 = vld [vmem:[%s5598_s9 + $0x58] sm:$0xff] (!%p3235_p6)  ;;  %2246 = vperm.xlu0 (!%p3235_p6), %3972, %v2196_v59   ;;  %v2373_v59 = vld [vmem:[%s5589_s0 + $0x70] sm:$0xff] (!%p3235_p6) }
 0x4bc   : > { %1941 = vst.msk [vmem:[#allocation3 + $0x58] sm:$0xff] %vm1929_vm2, %v1915_v62  ;;  %v2419_v62 = vld [vmem:[%s5598_s9 + $0x50] sm:$0xff] (!%p3235_p6)  ;;  %3838 = vmatpush1.bf16.msra.mxu1 (!%p3235_p6), %v3837_v60  ;;  %v1988_v60 = vmax.f32 (!%p3235_p6), %v5088_v56, 1.0 }
 0x4bd   : > { %v1840_v43 = vpop.f32.mrb[40].mxu0  ;;  %3839 = vmatprep.subr.bf16.mxu1 (!%p3235_p6), %v4043_v32 }
 0x4be   : > { %v1916_v1 = vadd.f32 %v1840_v43, %v1701_v0  ;;  %v3582_v2 = vpop.f32.mrb[41].mxu0  ;;  %v2699_v0 = vld [vmem:[%s5594_s5] sm:$0x3] (!%p3235_p6)  ;;  %v2199_v43 = vld [vmem:[%s5593_s4 + $0x78] sm:$0xff] (!%p3235_p6)  ;;  %3985 = vrcp.f32 (!%p3235_p6), %v1988_v60  ;;  %v5187_v60 = vld [vmem:[#allocation3 + $0xa8] sm:$0xff] (!%p3235_p6) }
 0x4bf   : > { %3620 = vmatpush3.msk.msra.mxu0 (!%p3235_p6), %vm2776_vm5, %v2699_v0  ;;  %v3840_v2 = vpack.c.bf16 (!%p3235_p6), %v2420_v63, %v2419_v62  ;;  %2255 = vperm.xlu1 (!%p3235_p6), %3973, %v2199_v43   ;;  %v1989_v62 = vmax.f32 (!%p3235_p6), %v5090_v57, 1.0  ;;  %v2376_v63 = vld [vmem:[%s5589_s0 + $0x88] sm:$0xff] (!%p3235_p6)  ;;  %v5101_v0 = vld [vmem:[#allocation3 + $0x30] sm:$0xff] (!%p3235_p6)  ;;  %v5103_v43 = vld [vmem:[#allocation3 + $0x38] sm:$0xff] (!%p3235_p6) }
 0x4c0   : > { %1942 = vst.msk [vmem:[#allocation3 + $0x60] sm:$0xff] %vm1929_vm2, %v1916_v1  ;;  %v2198_v1 = vld [vmem:[%s5593_s4 + $0x70] sm:$0xff] (!%p3235_p6) }
 0x4c1   : > { %v1845_v9 = vpop.f32.mrb[42].mxu0  ;;  %2252 = vperm.xlu0 (!%p3235_p6), %3972, %v2198_v1   ;;  %3841 = vmatpush1.bf16.msra.mxu1 (!%p3235_p6), %v3840_v2  ;;  %3987 = vrcp.f32 (!%p3235_p6), %v1989_v62  ;;  %v3980_v1 = vpop.eup (!%p3235_p6), %3979  ;;  %v2375_v2 = vld [vmem:[%s5589_s0 + $0x80] sm:$0xff] (!%p3235_p6) }
 0x4c2   : > { %v1917_v5 = vadd.f32 %v1845_v9, %v1702_v4  ;;  %v3585_v6 = vpop.f32.mrb[43].mxu0  ;;  %v2421_v4 = vld [vmem:[%s5598_s9 + $0x60] sm:$0xff] (!%p3235_p6)  ;;  %v2422_v9 = vld [vmem:[%s5598_s9 + $0x68] sm:$0xff] (!%p3235_p6)  ;;  %3842 = vmatprep.subr.bf16.mxu1 (!%p3235_p6), %v4043_v32 }
 0x4c3   : > { %v2200_v6 = vld [vmem:[%s5593_s4 + $0x80] sm:$0xff] (!%p3235_p6) }
 0x4c4   : > { %1943 = vst.msk [vmem:[#allocation3 + $0x68] sm:$0xff] %vm1929_vm2, %v1917_v5  ;;  %v2201_v5 = vld [vmem:[%s5593_s4 + $0x88] sm:$0xff] (!%p3235_p6) }
 0x4c5   : > { %v1850_v8 = vpop.f32.mrb[44].mxu0  ;;  %2261 = vperm.xlu1 (!%p3235_p6), %3973, %v2201_v5   ;;  %2258 = vperm.xlu0 (!%p3235_p6), %3972, %v2200_v6   ;;  %v3982_v5 = vpop.eup (!%p3235_p6), %3981  ;;  %v2378_v6 = vld [vmem:[%s5589_s0 + $0x98] sm:$0xff] (!%p3235_p6) }
 0x4c6   : > { %v1918_v10 = vadd.f32 %v1850_v8, %v1703_v7  ;;  %v3588_v11 = vpop.f32.mrb[45].mxu0  ;;  %v3843_v7 = vpack.c.bf16 (!%p3235_p6), %v2422_v9, %v2421_v4  ;;  %v2423_v8 = vld [vmem:[%s5598_s9 + $0x70] sm:$0xff] (!%p3235_p6)  ;;  %v1990_v4 = vmax.f32 (!%p3235_p6), %v5101_v0, 1.0  ;;  %v1991_v9 = vmax.f32 (!%p3235_p6), %v5103_v43, 1.0 }
 0x4c7   : > { %v2203_v11 = vld [vmem:[%s5593_s4 + $0x98] sm:$0xff] (!%p3235_p6) }
 0x4c8   : > { %1944 = vst.msk [vmem:[#allocation3 + $0x70] sm:$0xff] %vm1929_vm2, %v1918_v10  ;;  %v2424_v10 = vld [vmem:[%s5598_s9 + $0x78] sm:$0xff] (!%p3235_p6)  ;;  %3844 = vmatpush1.bf16.msra.mxu1 (!%p3235_p6), %v3843_v7  ;;  %3989 = vrcp.f32 (!%p3235_p6), %v1990_v4  ;;  %v5114_v7 = vld [vmem:[#allocation3 + $0x40] sm:$0xff] (!%p3235_p6) }
 0x4c9   : > { %v1855_v13 = vpop.f32.mrb[46].mxu0  ;;  %3845 = vmatprep.subr.bf16.mxu1 (!%p3235_p6), %v4043_v32  ;;  %2267 = vperm.xlu1 (!%p3235_p6), %3973, %v2203_v11   ;;  %3991 = vrcp.f32 (!%p3235_p6), %v1991_v9  ;;  %v2377_v11 = vld [vmem:[%s5589_s0 + $0x90] sm:$0xff] (!%p3235_p6)  ;;  %v2390_v4 = vld [vmem:[%s5589_s0 + $0xf8] sm:$0xff] (!%p3235_p6)  ;;  %v2005_v9 = vmax.f32 (!%p3235_p6), %v5187_v60, 1.0 }
 0x4ca   : > { %v1919_v14 = vadd.f32 %v1855_v13, %v1704_v12  ;;  %v3591_v15 = vpop.f32.mrb[47].mxu0  ;;  %v2202_v12 = vld [vmem:[%s5593_s4 + $0x90] sm:$0xff] (!%p3235_p6)  ;;  %v3846_v13 = vpack.c.bf16 (!%p3235_p6), %v2424_v10, %v2423_v8  ;;  %v3984_v10 = vpop.eup (!%p3235_p6), %3983 }
 0x4cb   : > { %v2426_v15 = vld [vmem:[%s5598_s9 + $0x88] sm:$0xff] (!%p3235_p6)  ;;  %2264 = vperm.xlu0 (!%p3235_p6), %3972, %v2202_v12   ;;  %v5116_v8 = vld [vmem:[#allocation3 + $0x48] sm:$0xff] (!%p3235_p6)  ;;  %v1992_v12 = vmax.f32 (!%p3235_p6), %v5114_v7, 1.0 }
 0x4cc   : > { %1945 = vst.msk [vmem:[#allocation3 + $0x78] sm:$0xff] %vm1929_vm2, %v1919_v14  ;;  %v2425_v14 = vld [vmem:[%s5598_s9 + $0x80] sm:$0xff] (!%p3235_p6)  ;;  %3847 = vmatpush1.bf16.msra.mxu1 (!%p3235_p6), %v3846_v13  ;;  %v1993_v13 = vmax.f32 (!%p3235_p6), %v5116_v8, 1.0 }
 0x4cd   : > { %v1860_v17 = vpop.f32.mrb[48].mxu0  ;;  %3848 = vmatprep.subr.bf16.mxu1 (!%p3235_p6), %v4043_v32  ;;  %3993 = vrcp.f32 (!%p3235_p6), %v1992_v12  ;;  %v2389_v12 = vld [vmem:[%s5589_s0 + $0xf0] sm:$0xff] (!%p3235_p6) }
 0x4ce   : > { %v1920_v18 = vadd.f32 %v1860_v17, %v1705_v16  ;;  %v3594_v19 = vpop.f32.mrb[49].mxu0  ;;  %v2205_v16 = vld [vmem:[%s5593_s4 + $0xa8] sm:$0xff] (!%p3235_p6)  ;;  %v2204_v17 = vld [vmem:[%s5593_s4 + $0xa0] sm:$0xff] (!%p3235_p6)  ;;  %3995 = vrcp.f32 (!%p3235_p6), %v1993_v13 }
 0x4cf   : > { %v2427_v19 = vld [vmem:[%s5598_s9 + $0x90] sm:$0xff] (!%p3235_p6)  ;;  %2273 = vperm.xlu1 (!%p3235_p6), %3973, %v2205_v16   ;;  %2270 = vperm.xlu0 (!%p3235_p6), %3972, %v2204_v17   ;;  %v5129_v16 = vld [vmem:[#allocation3 + $0x58] sm:$0xff] (!%p3235_p6)  ;;  %v3986_v17 = vpop.eup (!%p3235_p6), %3985 }
 0x4d0   : > { %1946 = vst.msk [vmem:[#allocation3 + $0x80] sm:$0xff] %vm1929_vm2, %v1920_v18  ;;  %v3849_v18 = vpack.c.bf16 (!%p3235_p6), %v2426_v15, %v2425_v14  ;;  %v2380_v14 = vld [vmem:[%s5589_s0 + $0xa8] sm:$0xff] (!%p3235_p6)  ;;  %v5127_v15 = vld [vmem:[#allocation3 + $0x50] sm:$0xff] (!%p3235_p6) }
 0x4d1   : > { %v1865_v21 = vpop.f32.mrb[50].mxu0 }
 0x4d2   : > { %v1921_v22 = vadd.f32 %v1865_v21, %v1706_v20  ;;  %v3597_v23 = vpop.f32.mrb[51].mxu0  ;;  %1958 = sbr.rel (%p3235_p6) target bundleno = 1626 (0x65a), region = 72  ;;  %v2428_v20 = vld [vmem:[%s5598_s9 + $0x98] sm:$0xff] (!%p3235_p6)  ;;  %3850 = vmatpush1.bf16.msra.mxu1 (!%p3235_p6), %v3849_v18  ;;  %v2379_v18 = vld [vmem:[%s5589_s0 + $0xa0] sm:$0xff] (!%p3235_p6) }
 0x4d3   : > { %v2207_v21 = vld [vmem:[%s5593_s4 + $0xb8] sm:$0xff] (!%p3235_p6)  ;;  %v3852_v23 = vpack.c.bf16 (!%p3235_p6), %v2428_v20, %v2427_v19  ;;  %3851 = vmatprep.subr.bf16.mxu1 (!%p3235_p6), %v4043_v32  ;;  %v1994_v19 = vmax.f32 (!%p3235_p6), %v5127_v15, 1.0  ;;  %v1995_v20 = vmax.f32 (!%p3235_p6), %v5129_v16, 1.0 }
 0x4d4   : > { %1947 = vst.msk [vmem:[#allocation3 + $0x88] sm:$0xff] %vm1929_vm2, %v1921_v22  ;;  %v2206_v22 = vld [vmem:[%s5593_s4 + $0xb0] sm:$0xff] (!%p3235_p6)  ;;  %2279 = vperm.xlu1 (!%p3235_p6), %3973, %v2207_v21   ;;  %v3988_v21 = vpop.eup (!%p3235_p6), %3987 }
 0x4d5   : > { %v1870_v26 = vpop.f32.mrb[52].mxu0  ;;  %2276 = vperm.xlu0 (!%p3235_p6), %3972, %v2206_v22   ;;  %v2382_v22 = vld [vmem:[%s5589_s0 + $0xb8] sm:$0xff] (!%p3235_p6)  ;;  %3997 = vrcp.f32 (!%p3235_p6), %v1994_v19 }
 0x4d6   : > { %v1922_v27 = vadd.f32 %v1870_v26, %v1707_v25  ;;  %v3600_v28 = vpop.f32.mrb[53].mxu0  ;;  %v2429_v25 = vld [vmem:[%s5598_s9 + $0xa0] sm:$0xff] (!%p3235_p6)  ;;  %v2430_v26 = vld [vmem:[%s5598_s9 + $0xa8] sm:$0xff] (!%p3235_p6)  ;;  %3853 = vmatpush1.bf16.msra.mxu1 (!%p3235_p6), %v3852_v23  ;;  %3999 = vrcp.f32 (!%p3235_p6), %v1995_v20 }
 0x4d7   : > { %v3855_v28 = vpack.c.bf16 (!%p3235_p6), %v2430_v26, %v2429_v25  ;;  %3854 = vmatprep.subr.bf16.mxu1 (!%p3235_p6), %v4043_v32  ;;  %v5140_v23 = vld [vmem:[#allocation3 + $0x60] sm:$0xff] (!%p3235_p6)  ;;  %v5142_v25 = vld [vmem:[#allocation3 + $0x68] sm:$0xff] (!%p3235_p6)  ;;  %v3990_v26 = vpop.eup (!%p3235_p6), %3989 }
 0x4d8   : > { %1948 = vst.msk [vmem:[#allocation3 + $0x90] sm:$0xff] %vm1929_vm2, %v1922_v27  ;;  %v2208_v27 = vld [vmem:[%s5593_s4 + $0xc0] sm:$0xff] (!%p3235_p6)  ;;  %3974 = vset.pattern.permute.xlu1 (!%p3235_p6), %v4046_v55  ;;  %v1996_v29 = vmax.f32 (!%p3235_p6), %v5140_v23, 1.0  ;;  %v1997_v30 = vmax.f32 (!%p3235_p6), %v5142_v25, 1.0 }
 0x4d9   : > { %2282 = vperm.xlu0 %3972, %v2208_v27   ;;  %2036 = vperm.xlu1 %3974, %v3978_v58   ;;  %v2381_v27 = vld [vmem:[%s5589_s0 + $0xb0] sm:$0xff]  ;;  %v2003_v58 = vmax.f32 %v5174_v48, 1.0 }
 0x4da   : > { %3856 = vmatpush1.bf16.msra.mxu1 %v3855_v28  ;;  %v2384_v28 = vld [vmem:[%s5589_s0 + $0xc8] sm:$0xff]  ;;  %4001 = vrcp.f32 %v1996_v29  ;;  %v2393_v29 = vld [vmem:[%s5589_s0 + $0x110] sm:$0xff] }
 0x4db   : > { %3857 = vmatprep.subr.bf16.mxu1 %v4043_v32  ;;  %v2364_v32 = vld [vmem:[%s5589_s0 + $0x28] sm:$0xff]  ;;  %4003 = vrcp.f32 %v1997_v30 }
 0x4dc   : > { %v2396_v30 = vld [vmem:[%s5589_s0 + $0x128] sm:$0xff] }
 0x4dd   : > { %3975 = vset.pattern.permute.xlu0 %v4046_v55  ;;  %2046 = vperm.xlu1 %3974, %v3982_v5   ;;  %v2388_v55 = vld [vmem:[%s5589_s0 + $0xe8] sm:$0xff]  ;;  %v5198_v5 = vld [vmem:[#allocation3 + $0xb0] sm:$0xff] }
 0x4de   : > { %3859 = vmatpush1.bf16.msra.mxu1 %v3858_v51  ;;  %2041 = vperm.xlu0 %3975, %v3980_v1   ;;  %v3992_v51 = vpop.eup %3991  ;;  %v2006_v13 = vmax.f32 %v5198_v5, 1.0 }
 0x4df   : > { %v5172_v47 = vld [vmem:[#allocation3 + $0x90] sm:$0xff] }
 0x4e0   : > { %v2002_v53 = vmax.f32 %v5172_v47, 1.0 }
 0x4e1   : > { %2574 = vmatmul.mubr.f32.vlgmr.msra.gmra.mrb[0].mxu1 %v2359_v61  ;;  %2051 = vperm.xlu1 %3974, %v3984_v10   ;;  %v5153_v61 = vld [vmem:[#allocation3 + $0x70] sm:$0xff]  ;;  %v5200_v10 = vld [vmem:[#allocation3 + $0xb8] sm:$0xff] }
 0x4e2   : > { %3262 = vmatprep.mubr.msk.f32.mxu1 %vm2433_vm4, %v2362_v34  ;;  %2056 = vperm.xlu0 %3975, %v3986_v17   ;;  %v5155_v34 = vld [vmem:[#allocation3 + $0x78] sm:$0xff]  ;;  %v2007_v17 = vmax.f32 %v5200_v10, 1.0 }
 0x4e5   : > { %2579 = vmatmul.mubr.f32.gmra.mrb[2].mxu1 %v2361_v35  ;;  %2061 = vperm.xlu1 %3974, %v3988_v21   ;;  %v5157_v35 = vld [vmem:[#allocation3 + $0x80] sm:$0xff]  ;;  %v2391_v21 = vld [vmem:[%s5589_s0 + $0x100] sm:$0xff] }
 0x4e6   : > { %3263 = vmatprep.mubr.msk.f32.mxu1 %vm2433_vm4, %v2364_v32  ;;  %2066 = vperm.xlu0 %3975, %v3990_v26   ;;  %v1998_v32 = vmax.f32 %v5153_v61, 1.0  ;;  %v2394_v26 = vld [vmem:[%s5589_s0 + $0x118] sm:$0xff] }
 0x4e8   : > { %4005 = vrcp.f32 %v1998_v32 }
 0x4e9   : > { %2584 = vmatmul.mubr.f32.gmra.mrb[4].mxu1 %v2363_v36  ;;  %2071 = vperm.xlu1 %3974, %v3992_v51   ;;  %v1999_v36 = vmax.f32 %v5155_v34, 1.0 }
 0x4ea   : > { %3264 = vmatprep.mubr.msk.f32.mxu1 %vm2433_vm4, %v2366_v37  ;;  %v5161_v37 = vld [vmem:[#allocation3 + $0x88] sm:$0xff] }
 0x4eb   : > { %4007 = vrcp.f32 %v1999_v36  ;;  %v2395_v36 = vld [vmem:[%s5589_s0 + $0x120] sm:$0xff] }
 0x4ed   : > { %2589 = vmatmul.mubr.f32.gmra.mrb[6].mxu1 %v2365_v38  ;;  %v3994_v38 = vpop.eup %3993 }
 0x4ee   : > { %3265 = vmatprep.mubr.msk.f32.mxu1 %vm2433_vm4, %v2368_v39  ;;  %v2383_v39 = vld [vmem:[%s5589_s0 + $0xc0] sm:$0xff]  ;;  %v3996_v41 = vpop.eup %3995  ;;  %2076 = vperm.xlu0 %3975, %v3994_v38   ;;  %v2398_v38 = vld [vmem:[%s5589_s0 + $0x138] sm:$0xff] }
 0x4ef   : > { %2081 = vperm.xlu1 %3974, %v3996_v41  }
 0x4f1   : > { %2594 = vmatmul.mubr.f32.gmra.mrb[8].mxu1 %v2367_v24  ;;  %v2000_v24 = vmax.f32 %v5157_v35, 1.0 }
 0x4f2   : > { %3266 = vmatprep.mubr.msk.f32.mxu1 %vm2433_vm4, %v2370_v42  ;;  %v2386_v42 = vld [vmem:[%s5589_s0 + $0xd8] sm:$0xff] }
 0x4f3   : > { %4009 = vrcp.f32 %v2000_v24 }
 0x4f5   : > { %2599 = vmatmul.mubr.f32.gmra.mrb[10].mxu1 %v2369_v46  ;;  %v2001_v46 = vmax.f32 %v5161_v37, 1.0 }
 0x4f6   : > { %3267 = vmatprep.mubr.msk.f32.mxu1 %vm2433_vm4, %v2372_v49  ;;  %v3998_v49 = vpop.eup %3997 }
 0x4f7   : > { %2086 = vperm.xlu0 %3975, %v3998_v49   ;;  %4011 = vrcp.f32 %v2001_v46  ;;  %v2397_v46 = vld [vmem:[%s5589_s0 + $0x130] sm:$0xff]  ;;  %v2400_v49 = vld [vmem:[%s5589_s0 + $0x148] sm:$0xff] }
 0x4f8   : > { %4013 = vrcp.f32 %v2002_v53 }
 0x4f9   : > { %2604 = vmatmul.mubr.f32.gmra.mrb[12].mxu1 %v2371_v52  ;;  %v2385_v52 = vld [vmem:[%s5589_s0 + $0xd0] sm:$0xff]  ;;  %4015 = vrcp.f32 %v2003_v58  ;;  %v2399_v58 = vld [vmem:[%s5589_s0 + $0x140] sm:$0xff] }
 0x4fa   : > { %3268 = vmatprep.mubr.msk.f32.mxu1 %vm2433_vm4, %v2374_v54  ;;  %v4000_v54 = vpop.eup %3999 }
 0x4fb   : > { %2091 = vperm.xlu1 %3974, %v4000_v54   ;;  %v4002_v62 = vpop.eup %4001 }
 0x4fc   : > { %2096 = vperm.xlu0 %3975, %v4002_v62   ;;  %v2402_v62 = vld [vmem:[%s5589_s0 + $0x158] sm:$0xff] }
 0x4fd   : > { %2609 = vmatmul.mubr.f32.gmra.mrb[14].mxu1 %v2373_v59  ;;  %v5185_v59 = vld [vmem:[#allocation3 + $0xa0] sm:$0xff] }
 0x4fe   : > { %3269 = vmatprep.mubr.msk.f32.mxu1 %vm2433_vm4, %v2376_v63  ;;  %v2387_v63 = vld [vmem:[%s5589_s0 + $0xe0] sm:$0xff]  ;;  %v2004_v1 = vmax.f32 %v5185_v59, 1.0 }
 0x500   : > { %4017 = vrcp.f32 %v2004_v1 }
 0x501   : > { %2614 = vmatmul.mubr.f32.gmra.mrb[16].mxu1 %v2375_v2  ;;  %v4004_v2 = vpop.eup %4003  ;;  %4019 = vrcp.f32 %v2005_v9 }
 0x502   : > { %3270 = vmatprep.mubr.msk.f32.mxu1 %vm2433_vm4, %v2378_v6  ;;  %v4006_v6 = vpop.eup %4005  ;;  %2101 = vperm.xlu1 %3974, %v4004_v2   ;;  %4021 = vrcp.f32 %v2006_v13  ;;  %v2401_v2 = vld [vmem:[%s5589_s0 + $0x150] sm:$0xff] }
 0x503   : > { %2106 = vperm.xlu0 %3975, %v4006_v6   ;;  %4023 = vrcp.f32 %v2007_v17  ;;  %v2408_v17 = vld [vmem:[%s5589_s0 + $0x188] sm:$0xff] }
 0x505   : > { %2619 = vmatmul.mubr.f32.gmra.mrb[18].mxu1 %v2377_v11  ;;  %v4008_v11 = vpop.eup %4007 }
 0x506   : > { %3271 = vmatprep.mubr.msk.f32.mxu1 %vm2433_vm4, %v2380_v14  ;;  %v2392_v14 = vld [vmem:[%s5589_s0 + $0x108] sm:$0xff]  ;;  %v4010_v19 = vpop.eup %4009  ;;  %2111 = vperm.xlu1 %3974, %v4008_v11   ;;  %v2403_v11 = vld [vmem:[%s5589_s0 + $0x160] sm:$0xff] }
 0x507   : > { %v4012_v20 = vpop.eup %4011  ;;  %2116 = vperm.xlu0 %3975, %v4010_v19  }
 0x509   : > { %2624 = vmatmul.mubr.f32.gmra.mrb[20].mxu1 %v2379_v18  ;;  %v5211_v18 = vld [vmem:[#allocation3 + $0xc0] sm:$0xff] }
 0x50a   : > { %3272 = vmatprep.mubr.msk.f32.mxu1 %vm2433_vm4, %v2382_v22  ;;  %v2008_v22 = vmax.f32 %v5211_v18, 1.0  ;;  %2121 = vperm.xlu1 %3974, %v4012_v20  }
 0x50c   : > { %4025 = vrcp.f32 %v2008_v22 }
 0x50d   : > { %2629 = vmatmul.mubr.f32.gmra.mrb[22].mxu1 %v2381_v27  ;;  %v4014_v27 = vpop.eup %4013 }
 0x50e   : > { %3273 = vmatprep.mubr.msk.f32.mxu1 %vm2433_vm4, %v2384_v28  ;;  %v4016_v28 = vpop.eup %4015  ;;  %2126 = vperm.xlu0 %3975, %v4014_v27  }
 0x50f   : > { %v4018_v51 = vpop.eup %4017  ;;  %2131 = vperm.xlu1 %3974, %v4016_v28  }
 0x510   : > { %v4020_v32 = vpop.eup %4019 }
 0x511   : > { %2634 = vmatmul.mubr.f32.gmra.mrb[24].mxu1 %v2383_v39  ;;  %v4022_v39 = vpop.eup %4021 }
 0x512   : > { %3274 = vmatprep.mubr.msk.f32.mxu1 %vm2433_vm4, %v2386_v42  ;;  %2136 = vperm.xlu0 %3975, %v4018_v51   ;;  %v4024_v41 = vpop.eup %4023 }
 0x513   : > { %2141 = vperm.xlu1 %3974, %v4020_v32  }
 0x515   : > { %2639 = vmatmul.mubr.f32.gmra.mrb[26].mxu1 %v2385_v52 }
 0x516   : > { %3275 = vmatprep.mubr.msk.f32.mxu1 %vm2433_vm4, %v2388_v55  ;;  %2146 = vperm.xlu0 %3975, %v4022_v39   ;;  %v4026_v52 = vpop.eup %4025 }
 0x517   : > { %2151 = vperm.xlu1 %3974, %v4024_v41  }
 0x519   : > { %2644 = vmatmul.mubr.f32.gmra.mrb[28].mxu1 %v2387_v63 }
 0x51a   : > { %3276 = vmatprep.mubr.msk.f32.mxu1 %vm2433_vm4, %v2390_v4  ;;  %2156 = vperm.xlu0 %3975, %v4026_v52   ;;  %v2404_v4 = vld [vmem:[%s5589_s0 + $0x168] sm:$0xff] }
 0x51d   : > { %2649 = vmatmul.mubr.f32.gmra.mrb[30].mxu1 %v2389_v12 }
 0x51e   : > { %3277 = vmatprep.mubr.msk.f32.mxu1 %vm2433_vm4, %v2392_v14  ;;  %3976 = vset.pattern.permute.xlu0 %v4042_v31  ;;  %v2406_v31 = vld [vmem:[%s5589_s0 + $0x178] sm:$0xff]  ;;  %v2405_v14 = vld [vmem:[%s5589_s0 + $0x170] sm:$0xff] }
 0x520   : > { %v2211_v24 = vpop.permute.xlu0 %2210  ;;  %v2217_v53 = vpop.permute.xlu1 %2216 }
 0x521   : > { %2654 = vmatmul.mubr.f32.gmra.mrb[32].mxu1 %v2391_v21  ;;  %vm2284_vm8 = vcmp.eq.s32.totalorder %v4571_v3, %v2211_v24  ;;  %vm2286_vm9 = vcmp.eq.s32.totalorder %v4571_v3, %v2217_v53  ;;  %v2407_v21 = vld [vmem:[%s5589_s0 + $0x180] sm:$0xff] }
 0x522   : > { %3278 = vmatprep.mubr.msk.f32.mxu1 %vm2433_vm4, %v2394_v26  ;;  %v3236_v42 = vsel %vm2284_vm8, 1.0, %v4044_v33  ;;  %v3238_v63 = vsel %vm2286_vm9, 1.0, %v4044_v33 }
 0x523   : > { %3622 = vmatmul.mubr.msk.f32.vlgmr.msra.gmra.mrb[0].mxu0 %vm2700_vm7, %v3236_v42 }
 0x524   : > { %v2214_v54 = vpop.permute.xlu0 %2213  ;;  %3624 = vmatprep.mubr.msk.f32.mxu0 %vm4045_vm3, %v4044_v33  ;;  %v2220_v1 = vpop.permute.xlu1 %2219 }
 0x525   : > { %2659 = vmatmul.mubr.f32.gmra.mrb[34].mxu1 %v2393_v29  ;;  %vm2285_vm10 = vcmp.eq.s32.totalorder %v4571_v3, %v2214_v54  ;;  %vm2287_vm11 = vcmp.eq.s32.totalorder %v4571_v3, %v2220_v1 }
 0x526   : > { %3279 = vmatprep.mubr.msk.f32.mxu1 %vm2433_vm4, %v2396_v30  ;;  %v3237_v55 = vsel %vm2285_vm10, 1.0, %v4044_v33  ;;  %v3239_v6 = vsel %vm2287_vm11, 1.0, %v4044_v33 }
 0x527   : > { %3625 = vmatmul.mubr.msk.f32.gmra.mrb[2].mxu0 %vm2700_vm7, %v3237_v55 }
 0x528   : > { %3627 = vmatprep.mubr.msk.f32.mxu0 %vm4045_vm3, %v4044_v33  ;;  %v2223_v9 = vpop.permute.xlu0 %2222  ;;  %v2226_v12 = vpop.permute.xlu1 %2225 }
 0x529   : > { %2664 = vmatmul.mubr.f32.gmra.mrb[36].mxu1 %v2395_v36  ;;  %vm2288_vm12 = vcmp.eq.s32.totalorder %v4571_v3, %v2223_v9  ;;  %vm2289_vm13 = vcmp.eq.s32.totalorder %v4571_v3, %v2226_v12 }
 0x52a   : > { %3280 = vmatprep.mubr.msk.f32.mxu1 %vm2433_vm4, %v2398_v38  ;;  %v3240_v13 = vsel %vm2288_vm12, 1.0, %v4044_v33  ;;  %v3241_v20 = vsel %vm2289_vm13, 1.0, %v4044_v33 }
 0x52b   : > { %3628 = vmatmul.mubr.msk.f32.gmra.mrb[4].mxu0 %vm2700_vm7, %v3238_v63 }
 0x52c   : > { %3630 = vmatprep.mubr.msk.f32.mxu0 %vm4045_vm3, %v4044_v33  ;;  %v2229_v19 = vpop.permute.xlu0 %2228  ;;  %v2232_v22 = vpop.permute.xlu1 %2231 }
 0x52d   : > { %2669 = vmatmul.mubr.f32.gmra.mrb[38].mxu1 %v2397_v46  ;;  %vm2290_vm14 = vcmp.eq.s32.totalorder %v4571_v3, %v2229_v19  ;;  %vm2291_vm15 = vcmp.eq.s32.totalorder %v4571_v3, %v2232_v22 }
 0x52e   : > { %3281 = vmatprep.mubr.msk.f32.mxu1 %vm2433_vm4, %v2400_v49  ;;  %v3242_v26 = vsel %vm2290_vm14, 1.0, %v4044_v33  ;;  %v3243_v28 = vsel %vm2291_vm15, 1.0, %v4044_v33 }
 0x52f   : > { %3631 = vmatmul.mubr.msk.f32.gmra.mrb[6].mxu0 %vm2700_vm7, %v3239_v6 }
 0x530   : > { %3633 = vmatprep.mubr.msk.f32.mxu0 %vm4045_vm3, %v4044_v33  ;;  %v2235_v27 = vpop.permute.xlu0 %2234  ;;  %v2238_v29 = vpop.permute.xlu1 %2237 }
 0x531   : > { %2674 = vmatmul.mubr.f32.gmra.mrb[40].mxu1 %v2399_v58  ;;  %vm2292_vm0 = vcmp.eq.s32.totalorder %v4571_v3, %v2235_v27  ;;  %vm2293_vm1 = vcmp.eq.s32.totalorder %v4571_v3, %v2238_v29 }
 0x532   : > { %3282 = vmatprep.mubr.msk.f32.mxu1 %vm2433_vm4, %v2402_v62  ;;  %v3244_v30 = vsel %vm2292_vm0, 1.0, %v4044_v33  ;;  %v3245_v32 = vsel %vm2293_vm1, 1.0, %v4044_v33 }
 0x533   : > { %3634 = vmatmul.mubr.msk.f32.gmra.mrb[8].mxu0 %vm2700_vm7, %v3240_v13 }
 0x534   : > { %3636 = vmatprep.mubr.msk.f32.mxu0 %vm4045_vm3, %v4044_v33  ;;  %v2241_v51 = vpop.permute.xlu0 %2240  ;;  %v2244_v36 = vpop.permute.xlu1 %2243 }
 0x535   : > { %2679 = vmatmul.mubr.f32.gmra.mrb[42].mxu1 %v2401_v2  ;;  %vm2294_vm2 = vcmp.eq.s32.totalorder %v4571_v3, %v2241_v51 }
 0x536   : > { %3283 = vmatprep.mubr.msk.f32.mxu1 %vm2433_vm4, %v2404_v4  ;;  %v3246_v38 = vsel %vm2294_vm2, 1.0, %v4044_v33 }
 0x537   : > { %3637 = vmatmul.mubr.msk.f32.gmra.mrb[10].mxu0 %vm2700_vm7, %v3241_v20 }
 0x538   : > { %3639 = vmatprep.mubr.msk.f32.mxu0 %vm4045_vm3, %v4044_v33  ;;  %v2250_v41 = vpop.permute.xlu1 %2249 }
 0x539   : > { %2684 = vmatmul.mubr.f32.gmra.mrb[44].mxu1 %v2403_v11  ;;  %vm2297_vm8 = vcmp.eq.s32.totalorder %v4571_v3, %v2250_v41 }
 0x53a   : > { %3284 = vmatprep.mubr.msk.f32.mxu1 %vm2433_vm4, %v2406_v31  ;;  %v2247_v39 = vpop.permute.xlu0 %2246  ;;  %v3249_v49 = vsel %vm2297_vm8, 1.0, %v4044_v33 }
 0x53b   : > { %3640 = vmatmul.mubr.msk.f32.gmra.mrb[12].mxu0 %vm2700_vm7, %v3242_v26  ;;  %vm2296_vm5 = vcmp.eq.s32.totalorder %v4571_v3, %v2247_v39 }
 0x53c   : > { %3642 = vmatprep.mubr.msk.f32.mxu0 %vm4045_vm3, %v4044_v33  ;;  %v3248_v42 = vsel %vm2296_vm5, 1.0, %v4044_v33 }
 0x53d   : > { %2689 = vmatmul.mubr.f32.gmra.mrb[46].mxu1 %v2405_v14 }
 0x53e   : > { %3285 = vmatprep.mubr.msk.f32.mxu1 %vm2433_vm4, %v2408_v17  ;;  %vm2295_vm4 = vcmp.eq.s32.totalorder %v4571_v3, %v2244_v36  ;;  %v2256_v52 = vpop.permute.xlu1 %2255 }
 0x53f   : > { %3643 = vmatmul.mubr.msk.f32.gmra.mrb[14].mxu0 %vm2700_vm7, %v3243_v28  ;;  %v3247_v24 = vsel %vm2295_vm4, 1.0, %v4044_v33  ;;  %vm2299_vm10 = vcmp.eq.s32.totalorder %v4571_v3, %v2256_v52 }
 0x540   : > { %3645 = vmatprep.mubr.msk.f32.mxu0 %vm4045_vm3, %v4044_v33  ;;  %v2253_v46 = vpop.permute.xlu0 %2252  ;;  %v3251_v55 = vsel %vm2299_vm10, 1.0, %v4044_v33 }
 0x541   : > { %2694 = vmatmul.mubr.f32.gmra.mrb[48].mxu1 %v2407_v21  ;;  %vm2298_vm9 = vcmp.eq.s32.totalorder %v4571_v3, %v2253_v46 }
 0x542   : > { %v3250_v53 = vsel %vm2298_vm9, 1.0, %v4044_v33 }
 0x543   : > { %3646 = vmatmul.mubr.msk.f32.gmra.mrb[16].mxu0 %vm2700_vm7, %v3244_v30 }
 0x544   : > { %3648 = vmatprep.mubr.msk.f32.mxu0 %vm4045_vm3, %v4044_v33  ;;  %v2259_v54 = vpop.permute.xlu0 %2258  ;;  %v2262_v58 = vpop.permute.xlu1 %2261 }
 0x545   : > { %vm2300_vm11 = vcmp.eq.s32.totalorder %v4571_v3, %v2259_v54  ;;  %vm2301_vm12 = vcmp.eq.s32.totalorder %v4571_v3, %v2262_v58 }
 0x546   : > { %v3252_v62 = vsel %vm2300_vm11, 1.0, %v4044_v33  ;;  %v3253_v1 = vsel %vm2301_vm12, 1.0, %v4044_v33 }
 0x547   : > { %3649 = vmatmul.mubr.msk.f32.gmra.mrb[18].mxu0 %vm2700_vm7, %v3245_v32 }
 0x548   : > { %3651 = vmatprep.mubr.msk.f32.mxu0 %vm4045_vm3, %v4044_v33  ;;  %v2268_v2 = vpop.permute.xlu1 %2267 }
 0x549   : > { %vm2303_vm14 = vcmp.eq.s32.totalorder %v4571_v3, %v2268_v2 }
 0x54a   : > { %v2265_v63 = vpop.permute.xlu0 %2264  ;;  %v3255_v6 = vsel %vm2303_vm14, 1.0, %v4044_v33 }
 0x54b   : > { %3652 = vmatmul.mubr.msk.f32.gmra.mrb[20].mxu0 %vm2700_vm7, %v3246_v38  ;;  %vm2302_vm13 = vcmp.eq.s32.totalorder %v4571_v3, %v2265_v63 }
 0x54c   : > { %3654 = vmatprep.mubr.msk.f32.mxu0 %vm4045_vm3, %v4044_v33  ;;  %v3254_v4 = vsel %vm2302_vm13, 1.0, %v4044_v33 }
 0x54e   : > { %v2271_v9 = vpop.permute.xlu0 %2270  ;;  %v2274_v11 = vpop.permute.xlu1 %2273 }
 0x54f   : > { %3655 = vmatmul.mubr.msk.f32.gmra.mrb[22].mxu0 %vm2700_vm7, %v3247_v24  ;;  %vm2304_vm15 = vcmp.eq.s32.totalorder %v4571_v3, %v2271_v9  ;;  %vm2305_vm0 = vcmp.eq.s32.totalorder %v4571_v3, %v2274_v11 }
 0x550   : > { %3657 = vmatprep.mubr.msk.f32.mxu0 %vm4045_vm3, %v4044_v33  ;;  %v3256_v31 = vsel %vm2304_vm15, 1.0, %v4044_v33  ;;  %v3257_v13 = vsel %vm2305_vm0, 1.0, %v4044_v33 }
 0x553   : > { %3658 = vmatmul.mubr.msk.f32.gmra.mrb[24].mxu0 %vm2700_vm7, %v3248_v42  ;;  %v2280_v14 = vpop.permute.xlu1 %2279 }
 0x554   : > { %3660 = vmatprep.mubr.msk.f32.mxu0 %vm4045_vm3, %v4044_v33  ;;  %v2277_v12 = vpop.permute.xlu0 %2276  ;;  %vm2307_vm2 = vcmp.eq.s32.totalorder %v4571_v3, %v2280_v14 }
 0x555   : > { %vm2306_vm1 = vcmp.eq.s32.totalorder %v4571_v3, %v2277_v12  ;;  %v3259_v20 = vsel %vm2307_vm2, 1.0, %v4044_v33 }
 0x556   : > { %v3258_v17 = vsel %vm2306_vm1, 1.0, %v4044_v33 }
 0x557   : > { %3661 = vmatmul.mubr.msk.f32.gmra.mrb[26].mxu0 %vm2700_vm7, %v3249_v49 }
 0x558   : > { %3663 = vmatprep.mubr.msk.f32.mxu0 %vm4045_vm3, %v4044_v33  ;;  %v2283_v19 = vpop.permute.xlu0 %2282  ;;  %v2037_v12 = vpop.permute.xlu1 %2036 }
 0x559   : > { %vm2308_vm4 = vcmp.eq.s32.totalorder %v4571_v3, %v2283_v19 }
 0x55a   : > { %v3260_v21 = vsel %vm2308_vm4, 1.0, %v4044_v33 }
 0x55b   : > { %3664 = vmatmul.mubr.msk.f32.gmra.mrb[28].mxu0 %vm2700_vm7, %v3250_v53 }
 0x55c   : > { %3666 = vmatprep.mubr.msk.f32.mxu0 %vm4045_vm3, %v4044_v33 }
 0x55d   : > { %v2042_v19 = vpop.permute.xlu0 %2041 }
 0x55f   : > { %3667 = vmatmul.mubr.msk.f32.gmra.mrb[30].mxu0 %vm2700_vm7, %v3251_v55 }
 0x560   : > { %3669 = vmatprep.mubr.msk.f32.mxu0 %vm4045_vm3, %v4044_v33 }
 0x563   : > { %3670 = vmatmul.mubr.msk.f32.gmra.mrb[32].mxu0 %vm2700_vm7, %v3252_v62 }
 0x564   : > { %3672 = vmatprep.mubr.msk.f32.mxu0 %vm4045_vm3, %v4044_v33 }
 0x567   : > { %3673 = vmatmul.mubr.msk.f32.gmra.mrb[34].mxu0 %vm2700_vm7, %v3253_v1 }
 0x568   : > { %3675 = vmatprep.mubr.msk.f32.mxu0 %vm4045_vm3, %v4044_v33 }
 0x56b   : > { %3676 = vmatmul.mubr.msk.f32.gmra.mrb[36].mxu0 %vm2700_vm7, %v3254_v4 }
 0x56c   : > { %3678 = vmatprep.mubr.msk.f32.mxu0 %vm4045_vm3, %v4044_v33 }
 0x56f   : > { %3679 = vmatmul.mubr.msk.f32.gmra.mrb[38].mxu0 %vm2700_vm7, %v3255_v6 }
 0x570   : > { %3681 = vmatprep.mubr.msk.f32.mxu0 %vm4045_vm3, %v4044_v33 }
 0x573   : > { %3682 = vmatmul.mubr.msk.f32.gmra.mrb[40].mxu0 %vm2700_vm7, %v3256_v31 }
 0x574   : > { %3684 = vmatprep.mubr.msk.f32.mxu0 %vm4045_vm3, %v4044_v33 }
 0x577   : > { %3685 = vmatmul.mubr.msk.f32.gmra.mrb[42].mxu0 %vm2700_vm7, %v3257_v13 }
 0x578   : > { %3687 = vmatprep.mubr.msk.f32.mxu0 %vm4045_vm3, %v4044_v33 }
 0x57b   : > { %3688 = vmatmul.mubr.msk.f32.gmra.mrb[44].mxu0 %vm2700_vm7, %v3258_v17  ;;  %v2159_v17 = vmul.f32 %v2037_v12, %v5055_v40  ;;  %v2057_v12 = vpop.permute.xlu0 %2056 }
 0x57c   : > { %3690 = vmatprep.mubr.msk.f32.mxu0 %vm4045_vm3, %v4044_v33 }
 0x57f   : > { %3691 = vmatmul.mubr.msk.f32.gmra.mrb[46].mxu0 %vm2700_vm7, %v3259_v20 }
 0x580   : > { %3693 = vmatprep.mubr.msk.f32.mxu0 %vm4045_vm3, %v4044_v33 }
 0x583   : > { %3694 = vmatmul.mubr.msk.f32.gmra.mrb[48].mxu0 %vm2700_vm7, %v3260_v21 }
 0x5b4   : > { %v2575_v22 = vpop.f32.mrb[0].mxu1 }
 0x5b5   : > { %v2577_v26 = vpop.f32.mrb[1].mxu1 }
 0x5b6   : > { %v2576_v26 = vadd.f32 %v2575_v22, %v2159_v17 }
 0x5b8   : > { %v2580_v27 = vpop.f32.mrb[2].mxu1 }
 0x5b9   : > { %v2582_v28 = vpop.f32.mrb[3].mxu1 }
 0x5ba   : > { %v2160_v28 = vmul.f32 %v2042_v19, %v5065_v44  ;;  %v2163_v19 = vmul.f32 %v2057_v12, %v5088_v56 }
 0x5bc   : > { %v2585_v29 = vpop.f32.mrb[4].mxu1 }
 0x5bd   : > { %v2587_v30 = vpop.f32.mrb[5].mxu1 }
 0x5be   : > { %v2047_v30 = vpop.permute.xlu1 %2046 }
 0x5c0   : > { %v2590_v51 = vpop.f32.mrb[6].mxu1 }
 0x5c1   : > { %v2592_v32 = vpop.f32.mrb[7].mxu1 }
 0x5c2   : > { %v2052_v44 = vpop.permute.xlu1 %2051 }
 0x5c4   : > { %v5398_v36 = vpop.f32.mrb[8].mxu1 }
 0x5c5   : > { %v2597_v3 = vpop.f32.mrb[9].mxu1 }
 0x5c8   : > { %v5400_v38 = vpop.f32.mrb[10].mxu1 }
 0x5c9   : > { %v2602_v39 = vpop.f32.mrb[11].mxu1 }
 0x5cc   : > { %v5402_v24 = vpop.f32.mrb[12].mxu1 }
 0x5cd   : > { %v2607_v41 = vpop.f32.mrb[13].mxu1 }
 0x5d0   : > { %v5404_v33 = vpop.f32.mrb[14].mxu1 }
 0x5d1   : > { %v2612_v42 = vpop.f32.mrb[15].mxu1 }
 0x5d2   : > { %v2161_v42 = vmul.f32 %v2047_v30, %v5067_v45 }
 0x5d4   : > { %v5406_v46 = vpop.f32.mrb[16].mxu1 }
 0x5d5   : > { %v2617_v49 = vpop.f32.mrb[17].mxu1 }
 0x5d6   : > { %v2581_v49 = vadd.f32 %v2580_v27, %v2160_v28 }
 0x5d8   : > { %v5408_v52 = vpop.f32.mrb[18].mxu1 }
 0x5d9   : > { %v2622_v53 = vpop.f32.mrb[19].mxu1 }
 0x5dc   : > { %v5410_v54 = vpop.f32.mrb[20].mxu1 }
 0x5dd   : > { %v2627_v55 = vpop.f32.mrb[21].mxu1 }
 0x5e0   : > { %v5412_v58 = vpop.f32.mrb[22].mxu1 }
 0x5e1   : > { %v2632_v62 = vpop.f32.mrb[23].mxu1 }
 0x5e2   : > { %v2586_v62 = vadd.f32 %v2585_v29, %v2161_v42  ;;  %v2067_v42 = vpop.permute.xlu0 %2066 }
 0x5e4   : > { %v5414_v63 = vpop.f32.mrb[24].mxu1 }
 0x5e5   : > { %v2637_v1 = vpop.f32.mrb[25].mxu1 }
 0x5e6   : > { %v2077_v12 = vpop.permute.xlu0 %2076 }
 0x5e8   : > { %v5416_v2 = vpop.f32.mrb[26].mxu1 }
 0x5e9   : > { %v2642_v4 = vpop.f32.mrb[27].mxu1 }
 0x5ea   : > { %v2162_v4 = vmul.f32 %v2052_v44, %v5078_v50 }
 0x5ec   : > { %v5418_v9 = vpop.f32.mrb[28].mxu1 }
 0x5ed   : > { %v2647_v6 = vpop.f32.mrb[29].mxu1 }
 0x5f0   : > { %v5420_v11 = vpop.f32.mrb[30].mxu1 }
 0x5f1   : > { %v2652_v31 = vpop.f32.mrb[31].mxu1 }
 0x5f4   : > { %v5422_v13 = vpop.f32.mrb[32].mxu1 }
 0x5f5   : > { %v2657_v14 = vpop.f32.mrb[33].mxu1 }
 0x5f6   : > { %v2846_v39 = vpop.f32.mrb[0].mxu0  ;;  %v2591_v14 = vadd.f32 %v2590_v51, %v2162_v4  ;;  %v2596_v51 = vadd.f32 %v5398_v36, %v2163_v19  ;;  %v2167_v19 = vmul.f32 %v2077_v12, %v5114_v7  ;;  %v2087_v7 = vpop.permute.xlu0 %2086 }
 0x5f7   : > { %v2970_v41 = vadd.f32 %v2846_v39, %v2576_v26  ;;  %v3623_v53 = vpop.f32.mrb[1].mxu0  ;;  %v2062_v26 = vpop.permute.xlu1 %2061 }
 0x5f8   : > { %v5425_v20 = vpop.f32.mrb[34].mxu1  ;;  %v2164_v30 = vmul.f32 %v2062_v26, %v5090_v57 }
 0x5f9   : > { %v2662_v21 = vpop.f32.mrb[35].mxu1  ;;  %2995 = vst.msk [vmem:[%s5600_s11] sm:$0xff] %vm1567_vm6, %v2970_v41 }
 0x5fa   : > { %v2851_v22 = vpop.f32.mrb[2].mxu0  ;;  %v2601_v53 = vadd.f32 %v5400_v38, %v2164_v30 }
 0x5fb   : > { %v2971_v1 = vadd.f32 %v2851_v22, %v2581_v49  ;;  %v3626_v6 = vpop.f32.mrb[3].mxu0 }
 0x5fc   : > { %v5428_v32 = vpop.f32.mrb[36].mxu1 }
 0x5fd   : > { %v2667_v3 = vpop.f32.mrb[37].mxu1  ;;  %2996 = vst.msk [vmem:[%s5600_s11 + $0x8] sm:$0xff] %vm1567_vm6, %v2971_v1 }
 0x5fe   : > { %v2856_v27 = vpop.f32.mrb[4].mxu0 }
 0x5ff   : > { %v2972_v17 = vadd.f32 %v2856_v27, %v2586_v62  ;;  %v3629_v21 = vpop.f32.mrb[5].mxu0  ;;  %v2072_v62 = vpop.permute.xlu1 %2071 }
 0x600   : > { %v5431_v55 = vpop.f32.mrb[38].mxu1  ;;  %v2166_v4 = vmul.f32 %v2072_v62, %v5103_v43 }
 0x601   : > { %v2672_v40 = vpop.f32.mrb[39].mxu1  ;;  %2997 = vst.msk [vmem:[%s5600_s11 + $0x10] sm:$0xff] %vm1567_vm6, %v2972_v17 }
 0x602   : > { %v2861_v28 = vpop.f32.mrb[6].mxu0  ;;  %v2165_v40 = vmul.f32 %v2067_v42, %v5101_v0  ;;  %v2611_v17 = vadd.f32 %v5404_v33, %v2166_v4 }
 0x603   : > { %v2973_v3 = vadd.f32 %v2861_v28, %v2591_v14  ;;  %v3632_v39 = vpop.f32.mrb[7].mxu0 }
 0x604   : > { %v5438_v31 = vpop.f32.mrb[40].mxu1  ;;  %v2606_v38 = vadd.f32 %v5402_v24, %v2165_v40  ;;  %v2082_v24 = vpop.permute.xlu1 %2081 }
 0x605   : > { %v2677_v45 = vpop.f32.mrb[41].mxu1  ;;  %2998 = vst.msk [vmem:[%s5600_s11 + $0x18] sm:$0xff] %vm1567_vm6, %v2973_v3  ;;  %v2168_v26 = vmul.f32 %v2082_v24, %v5116_v8  ;;  %v2616_v3 = vadd.f32 %v5406_v46, %v2167_v19 }
 0x606   : > { %v2866_v49 = vpop.f32.mrb[8].mxu0 }
 0x607   : > { %v2974_v22 = vadd.f32 %v2866_v49, %v2596_v51  ;;  %v3635_v57 = vpop.f32.mrb[9].mxu0  ;;  %v2621_v39 = vadd.f32 %v5408_v52, %v2168_v26  ;;  %v2169_v51 = vmul.f32 %v2087_v7, %v5127_v15  ;;  %v2097_v15 = vpop.permute.xlu0 %2096 }
 0x608   : > { %v5445_v29 = vpop.f32.mrb[42].mxu1  ;;  %v2092_v8 = vpop.permute.xlu1 %2091 }
 0x609   : > { %v2682_v50 = vpop.f32.mrb[43].mxu1  ;;  %2999 = vst.msk [vmem:[%s5600_s11 + $0x20] sm:$0xff] %vm1567_vm6, %v2974_v22  ;;  %v2170_v49 = vmul.f32 %v2092_v8, %v5129_v16  ;;  %v2626_v22 = vadd.f32 %v5410_v54, %v2169_v51 }
 0x60a   : > { %v2871_v1 = vpop.f32.mrb[10].mxu0 }
 0x60b   : > { %v2975_v6 = vadd.f32 %v2871_v1, %v2601_v53  ;;  %v3638_v45 = vpop.f32.mrb[11].mxu0  ;;  %v2631_v57 = vadd.f32 %v5412_v58, %v2170_v49  ;;  %v2107_v12 = vpop.permute.xlu0 %2106 }
 0x60c   : > { %v5453_v41 = vpop.f32.mrb[44].mxu1  ;;  %v2102_v45 = vpop.permute.xlu1 %2101 }
 0x60d   : > { %v2687_v56 = vpop.f32.mrb[45].mxu1  ;;  %3000 = vst.msk [vmem:[%s5600_s11 + $0x28] sm:$0xff] %vm1567_vm6, %v2975_v6 }
 0x60e   : > { %v2876_v14 = vpop.f32.mrb[12].mxu0 }
 0x60f   : > { %v2976_v21 = vadd.f32 %v2876_v14, %v2606_v38  ;;  %v3641_v43 = vpop.f32.mrb[13].mxu0  ;;  %v2172_v38 = vmul.f32 %v2102_v45, %v5142_v25  ;;  %v2117_v26 = vpop.permute.xlu0 %2116 }
 0x610   : > { %v5461_v44 = vpop.f32.mrb[46].mxu1 }
 0x611   : > { %v2692_v36 = vpop.f32.mrb[47].mxu1  ;;  %3001 = vst.msk [vmem:[%s5600_s11 + $0x30] sm:$0xff] %vm1567_vm6, %v2976_v21  ;;  %v2641_v14 = vadd.f32 %v5416_v2, %v2172_v38  ;;  %v2112_v21 = vpop.permute.xlu1 %2111 }
 0x612   : > { %v2881_v50 = vpop.f32.mrb[14].mxu0  ;;  %v2171_v36 = vmul.f32 %v2097_v15, %v5140_v23  ;;  %v2174_v43 = vmul.f32 %v2112_v21, %v5155_v34 }
 0x613   : > { %v2977_v28 = vadd.f32 %v2881_v50, %v2611_v17  ;;  %v3644_v30 = vpop.f32.mrb[15].mxu0  ;;  %v2173_v17 = vmul.f32 %v2107_v12, %v5153_v61 }
 0x614   : > { %v5469_v27 = vpop.f32.mrb[48].mxu1  ;;  %v2636_v6 = vadd.f32 %v5414_v63, %v2171_v36  ;;  %v2175_v30 = vmul.f32 %v2117_v26, %v5157_v35 }
 0x615   : > { %v2697_v0 = vpop.f32.mrb[49].mxu1  ;;  %3002 = vst.msk [vmem:[%s5600_s11 + $0x38] sm:$0xff] %vm1567_vm6, %v2977_v28  ;;  %v2646_v2 = vadd.f32 %v5418_v9, %v2173_v17  ;;  %v2651_v28 = vadd.f32 %v5420_v11, %v2174_v43 }
 0x616   : > { %v2886_v33 = vpop.f32.mrb[16].mxu0  ;;  %v2656_v9 = vadd.f32 %v5422_v13, %v2175_v30 }
 0x617   : > { %v2978_v56 = vadd.f32 %v2886_v33, %v2616_v3  ;;  %v3647_v42 = vpop.f32.mrb[17].mxu0  ;;  %v2122_v33 = vpop.permute.xlu1 %2121 }
 0x619   : > { %3003 = vst.msk [vmem:[%s5600_s11 + $0x40] sm:$0xff] %vm1567_vm6, %v2978_v56  ;;  %v2127_v56 = vpop.permute.xlu0 %2126 }
 0x61a   : > { %v2891_v46 = vpop.f32.mrb[18].mxu0  ;;  %v2177_v8 = vmul.f32 %v2127_v56, %v5172_v47 }
 0x61b   : > { %v2979_v53 = vadd.f32 %v2891_v46, %v2621_v39  ;;  %v3650_v40 = vpop.f32.mrb[19].mxu0  ;;  %v2176_v39 = vmul.f32 %v2122_v33, %v5161_v37 }
 0x61c   : > { %v2666_v13 = vadd.f32 %v5428_v32, %v2177_v8 }
 0x61d   : > { %3004 = vst.msk [vmem:[%s5600_s11 + $0x48] sm:$0xff] %vm1567_vm6, %v2979_v53  ;;  %v2661_v42 = vadd.f32 %v5425_v20, %v2176_v39  ;;  %v2132_v53 = vpop.permute.xlu1 %2131  ;;  %v2137_v15 = vpop.permute.xlu0 %2136 }
 0x61e   : > { %v2896_v52 = vpop.f32.mrb[20].mxu0  ;;  %v2178_v40 = vmul.f32 %v2132_v53, %v5174_v48 }
 0x61f   : > { %v2980_v62 = vadd.f32 %v2896_v52, %v2626_v22  ;;  %v3653_v1 = vpop.f32.mrb[21].mxu0 }
 0x620   : > { %v2671_v52 = vadd.f32 %v5431_v55, %v2178_v40 }
 0x621   : > { %3005 = vst.msk [vmem:[%s5600_s11 + $0x50] sm:$0xff] %vm1567_vm6, %v2980_v62  ;;  %v2142_v1 = vpop.permute.xlu1 %2141 }
 0x622   : > { %v2901_v16 = vpop.f32.mrb[22].mxu0 }
 0x623   : > { %v2981_v54 = vadd.f32 %v2901_v16, %v2631_v57  ;;  %v3656_v4 = vpop.f32.mrb[23].mxu0  ;;  %v2179_v57 = vmul.f32 %v2137_v15, %v5185_v59  ;;  %v2180_v16 = vmul.f32 %v2142_v1, %v5187_v60 }
 0x624   : > { %v2147_v4 = vpop.permute.xlu0 %2146 }
 0x625   : > { %3006 = vst.msk [vmem:[%s5600_s11 + $0x58] sm:$0xff] %vm1567_vm6, %v2981_v54  ;;  %v2676_v32 = vadd.f32 %v5438_v31, %v2179_v57  ;;  %v2181_v45 = vmul.f32 %v2147_v4, %v5198_v5  ;;  %v2152_v60 = vpop.permute.xlu1 %2151 }
 0x626   : > { %v2906_v23 = vpop.f32.mrb[24].mxu0 }
 0x627   : > { %v2982_v58 = vadd.f32 %v2906_v23, %v2636_v6  ;;  %v3659_v0 = vpop.f32.mrb[25].mxu0  ;;  %v2681_v6 = vadd.f32 %v5445_v29, %v2180_v16  ;;  %v2686_v31 = vadd.f32 %v5453_v41, %v2181_v45 }
 0x628   : > { %v2182_v0 = vmul.f32 %v2152_v60, %v5200_v10  ;;  %v2157_v29 = vpop.permute.xlu0 %2156 }
 0x629   : > { %3007 = vst.msk [vmem:[%s5600_s11 + $0x60] sm:$0xff] %vm1567_vm6, %v2982_v58 }
 0x62a   : > { %v2911_v63 = vpop.f32.mrb[26].mxu0  ;;  %v2691_v17 = vadd.f32 %v5461_v44, %v2182_v0 }
 0x62b   : > { %v2983_v25 = vadd.f32 %v2911_v63, %v2641_v14  ;;  %v3662_v19 = vpop.f32.mrb[27].mxu0  ;;  %v2183_v63 = vmul.f32 %v2157_v29, %v5211_v18 }
 0x62d   : > { %3008 = vst.msk [vmem:[%s5600_s11 + $0x68] sm:$0xff] %vm1567_vm6, %v2983_v25  ;;  %v2696_v21 = vadd.f32 %v5469_v27, %v2183_v63 }
 0x62e   : > { %v2916_v24 = vpop.f32.mrb[28].mxu0 }
 0x62f   : > { %v2984_v61 = vadd.f32 %v2916_v24, %v2646_v2  ;;  %v3665_v50 = vpop.f32.mrb[29].mxu0 }
 0x631   : > { %3009 = vst.msk [vmem:[%s5600_s11 + $0x70] sm:$0xff] %vm1567_vm6, %v2984_v61 }
 0x632   : > { %v2921_v34 = vpop.f32.mrb[30].mxu0 }
 0x633   : > { %v2985_v3 = vadd.f32 %v2921_v34, %v2651_v28  ;;  %v3668_v7 = vpop.f32.mrb[31].mxu0 }
 0x635   : > { %3010 = vst.msk [vmem:[%s5600_s11 + $0x78] sm:$0xff] %vm1567_vm6, %v2985_v3 }
 0x636   : > { %v2926_v11 = vpop.f32.mrb[32].mxu0 }
 0x637   : > { %v2986_v35 = vadd.f32 %v2926_v11, %v2656_v9  ;;  %v3671_v51 = vpop.f32.mrb[33].mxu0 }
 0x639   : > { %3011 = vst.msk [vmem:[%s5600_s11 + $0x80] sm:$0xff] %vm1567_vm6, %v2986_v35 }
 0x63a   : > { %v2931_v37 = vpop.f32.mrb[34].mxu0 }
 0x63b   : > { %v2987_v46 = vadd.f32 %v2931_v37, %v2661_v42  ;;  %v3674_v49 = vpop.f32.mrb[35].mxu0 }
 0x63d   : > { %3012 = vst.msk [vmem:[%s5600_s11 + $0x88] sm:$0xff] %vm1567_vm6, %v2987_v46 }
 0x63e   : > { %v2936_v20 = vpop.f32.mrb[36].mxu0 }
 0x63f   : > { %v2988_v47 = vadd.f32 %v2936_v20, %v2666_v13  ;;  %v3677_v22 = vpop.f32.mrb[37].mxu0 }
 0x641   : > { %3013 = vst.msk [vmem:[%s5600_s11 + $0x90] sm:$0xff] %vm1567_vm6, %v2988_v47 }
 0x642   : > { %v2941_v48 = vpop.f32.mrb[38].mxu0 }
 0x643   : > { %v2989_v36 = vadd.f32 %v2941_v48, %v2671_v52  ;;  %v3680_v62 = vpop.f32.mrb[39].mxu0 }
 0x645   : > { %3014 = vst.msk [vmem:[%s5600_s11 + $0x98] sm:$0xff] %vm1567_vm6, %v2989_v36 }
 0x646   : > { %v2946_v55 = vpop.f32.mrb[40].mxu0 }
 0x647   : > { %v2990_v59 = vadd.f32 %v2946_v55, %v2676_v32  ;;  %v3683_v54 = vpop.f32.mrb[41].mxu0 }
 0x649   : > { %3015 = vst.msk [vmem:[%s5600_s11 + $0xa0] sm:$0xff] %vm1567_vm6, %v2990_v59 }
 0x64a   : > { %v2951_v38 = vpop.f32.mrb[42].mxu0 }
 0x64b   : > { %v2991_v23 = vadd.f32 %v2951_v38, %v2681_v6  ;;  %v3686_v58 = vpop.f32.mrb[43].mxu0 }
 0x64d   : > { %3016 = vst.msk [vmem:[%s5600_s11 + $0xa8] sm:$0xff] %vm1567_vm6, %v2991_v23 }
 0x64e   : > { %v2956_v5 = vpop.f32.mrb[44].mxu0 }
 0x64f   : > { %v2992_v12 = vadd.f32 %v2956_v5, %v2686_v31  ;;  %v3689_v14 = vpop.f32.mrb[45].mxu0 }
 0x651   : > { %3017 = vst.msk [vmem:[%s5600_s11 + $0xb0] sm:$0xff] %vm1567_vm6, %v2992_v12 }
 0x652   : > { %v2961_v10 = vpop.f32.mrb[46].mxu0 }
 0x653   : > { %v2993_v25 = vadd.f32 %v2961_v10, %v2691_v17  ;;  %v3692_v19 = vpop.f32.mrb[47].mxu0 }
 0x655   : > { %3018 = vst.msk [vmem:[%s5600_s11 + $0xb8] sm:$0xff] %vm1567_vm6, %v2993_v25 }
 0x656   : > { %v2966_v41 = vpop.f32.mrb[48].mxu0 }
 0x657   : > { %v2994_v43 = vadd.f32 %v2966_v41, %v2696_v21  ;;  %v3695_v44 = vpop.f32.mrb[49].mxu0 }
 0x659   : > { %3019 = vst.msk [vmem:[%s5600_s11 + $0xc0] sm:$0xff] %vm1567_vm6, %v2994_v43 }
 0x65a PF: > { %s21_s17 = sadd.s32 1, %s4033_s17  }
 0x65b   : > { %p18_p7 = scmp.ge.s32.totalorder %s21_s17, 4  }
 0x65d   :  { %20 = sbr.rel (!%p18_p7) target bundleno = 1 (0x1), region = 104 }

</bundles_post_ra>
